<compile_context>
chip_gen: v7x
topology: tpu7x:2x2x1
jax: 0.10.0
libtpu: 0.0.40
codegen_flags: <defaults>
</compile_context>

<pallas_src>
import jax
import jax.numpy as jnp
from jax.experimental import pallas as pl
from jax.experimental.pallas import tpu as pltpu


# ----------------------------------------------------------------------------
# Fused kernel: 2-layer LSTM recurrence (state in vregs) + MLP head.
# All operands are full blocks resident in VMEM (total < 1 MiB at these sizes;
# for much larger hidden sizes on v7x's 64 MiB VMEM, tile the 4H gate dim
# across a grid axis and/or add a "parallel" batch-tile axis for its 2 TCs).
# ----------------------------------------------------------------------------
def _fused_lstm_mlp_kernel(xg_ref, whh0_ref, wih1_ref, whh1_ref, bl1_ref,
                           fc1w_ref, fc1b_ref, fc2w_ref, fc2b_ref,
                           fc3w_ref, fc3b_ref, out_ref):
    T, B, G = xg_ref.shape          # G = 4 * H
    H = G // 4

    # Hoist weight loads and the (1,4H)->(B,4H) bias broadcast out of the
    # time loop (JAX does not CSE broadcast_in_dim inside loops).
    whh0 = whh0_ref[...]
    wih1 = wih1_ref[...]
    whh1 = whh1_ref[...]
    bl1 = jnp.broadcast_to(bl1_ref[...], (B, G))

    def gates_to_hc(gates, c_prev):
        # PyTorch gate order [i, f, g, o]; with H=128 each slice is a full
        # 128-lane chunk (no masked lane extracts).
        i_g = jax.nn.sigmoid(gates[:, 0 * H:1 * H])
        f_g = jax.nn.sigmoid(gates[:, 1 * H:2 * H])
        g_g = jnp.tanh(gates[:, 2 * H:3 * H])
        o_g = jax.nn.sigmoid(gates[:, 3 * H:4 * H])
        c_new = f_g * c_prev + i_g * g_g
        h_new = o_g * jnp.tanh(c_new)
        return h_new, c_new

    def step(t, carry):
        h1, c1, h2, c2 = carry
        # Layer 0: input projection (x@W_ih + b) precomputed for all t in xg.
        g0 = xg_ref[t] + jnp.dot(h1, whh0, preferred_element_type=jnp.float32)
        h1, c1 = gates_to_hc(g0, c1)
        # Layer 1: input is layer-0 hidden at this timestep.
        g1 = (jnp.dot(h1, wih1, preferred_element_type=jnp.float32)
              + jnp.dot(h2, whh1, preferred_element_type=jnp.float32)
              + bl1)
        h2, c2 = gates_to_hc(g1, c2)
        return h1, c1, h2, c2

    z = jnp.zeros((B, H), jnp.float32)
    _, _, h2, _ = jax.lax.fori_loop(0, T, step, (z, z, z, z), unroll=True)

    # Fused MLP head: relu(fc1) -> relu(fc2) -> fc3 (dropout = identity).
    y = jnp.maximum(
        jnp.dot(h2, fc1w_ref[...], preferred_element_type=jnp.float32)
        + fc1b_ref[...], 0.0)
    y = jnp.maximum(
        jnp.dot(y, fc2w_ref[...], preferred_element_type=jnp.float32)
        + fc2b_ref[...], 0.0)
    out_ref[...] = (jnp.dot(y, fc3w_ref[...], preferred_element_type=jnp.float32)
                    + fc3b_ref[...])


def _fused_lstm_mlp(xg, whh0, wih1, whh1, bl1, fc1w, fc1b, fc2w, fc2b, fc3w, fc3b):
    """xg: (T, B, 4H) precomputed layer-0 input projection. Returns (B, 1)."""
    T, B, G = xg.shape
    vmem = lambda: pl.BlockSpec(memory_space=pltpu.MemorySpace.VMEM)
    return pl.pallas_call(
        _fused_lstm_mlp_kernel,
        out_shape=jax.ShapeDtypeStruct((B, 1), jnp.float32),
        in_specs=[vmem() for _ in range(11)],
        out_specs=vmem(),
    )(xg, whh0, wih1, whh1, bl1, fc1w, fc1b, fc2w, fc2b, fc3w, fc3b)


# ----------------------------------------------------------------------------
# Full model forward (x is batch-first (B, T, input_size), like PyTorch).
# ----------------------------------------------------------------------------
@jax.jit
def lstm_model_forward(x, params):
    x = x.astype(jnp.float32)
    # Hoisted layer-0 input projection for ALL timesteps as one matmul, output
    # time-major.  This replaces both the old wrapper transpose of x and the
    # per-step x@W_ih matmul on the serial path.
    xg = jnp.einsum("btd,dg->tbg", x, params["wih0"],
                    precision=jax.lax.Precision.HIGHEST) + params["b0"]
    return _fused_lstm_mlp(
        xg,
        params["whh0"], params["wih1"], params["whh1"], params["b1"],
        params["fc1_w"], params["fc1_b"],
        params["fc2_w"], params["fc2_b"],
        params["fc3_w"], params["fc3_b"])


# ----------------------------------------------------------------------------
# Pure-JAX reference (full-precision f32 matmuls) for the correctness check.
# ----------------------------------------------------------------------------
def reference_forward(x, params):
    B, T, _ = x.shape
    H = params["whh0"].shape[0]
    hp = jax.lax.Precision.HIGHEST

    def cell(x_in, h, c, wih, whh, b):
        g = (jnp.dot(x_in, wih, precision=hp)
             + jnp.dot(h, whh, precision=hp) + b)
        i_g = jax.nn.sigmoid(g[:, 0 * H:1 * H])
        f_g = jax.nn.sigmoid(g[:, 1 * H:2 * H])
        g_g = jnp.tanh(g[:, 2 * H:3 * H])
        o_g = jax.nn.sigmoid(g[:, 3 * H:4 * H])
        c = f_g * c + i_g * g_g
        return o_g * jnp.tanh(c), c

    h1 = c1 = h2 = c2 = jnp.zeros((B, H), jnp.float32)
    for t in range(T):
        h1, c1 = cell(x[:, t, :], h1, c1, params["wih0"], params["whh0"], params["b0"])
        h2, c2 = cell(h1, h2, c2, params["wih1"], params["whh1"], params["b1"])
    y = jnp.maximum(jnp.dot(h2, params["fc1_w"], precision=hp) + params["fc1_b"], 0.0)
    y = jnp.maximum(jnp.dot(y, params["fc2_w"], precision=hp) + params["fc2_b"], 0.0)
    return jnp.dot(y, params["fc3_w"], precision=hp) + params["fc3_b"]


def init_params(key, input_size, hidden_size):
    H = hidden_size
    ks = jax.random.split(key, 12)
    s = 1.0 / jnp.sqrt(H)

    def u(k, shape):
        return jax.random.uniform(k, shape, jnp.float32, -s, s)

    # LSTM weights stored transposed ((in, 4H)) so the kernel does x @ W.
    # Biases pre-folded: b = b_ih + b_hh.
    return {
        "wih0": u(ks[0], (input_size, 4 * H)),
        "whh0": u(ks[1], (H, 4 * H)),
        "b0":   u(ks[2], (1, 4 * H)) * 2.0,
        "wih1": u(ks[3], (H, 4 * H)),
        "whh1": u(ks[4], (H, 4 * H)),
        "b1":   u(ks[5], (1, 4 * H)) * 2.0,
        "fc1_w": u(ks[6], (H, 64)),
        "fc1_b": u(ks[7], (1, 64)),
        "fc2_w": u(ks[8], (64, 32)),
        "fc2_b": u(ks[9], (1, 32)),
        "fc3_w": u(ks[10], (32, 1)),
        "fc3_b": u(ks[11], (1, 1)),
    }


if __name__ == "__main__":
    # hidden=128 matches the PyTorch module's default hidden_size.
    B, T, D_IN, HIDDEN = 2, 8, 16, 128

    key = jax.random.PRNGKey(0)
    k_x, k_p = jax.random.split(key)
    x = jax.random.normal(k_x, (B, T, D_IN), jnp.float32)
    params = init_params(k_p, D_IN, HIDDEN)

    out = lstm_model_forward(x, params)
    out = jax.block_until_ready(out)

    ref = reference_forward(x, params)
    assert out.shape == (B, 1), out.shape
    assert jnp.allclose(out, ref, atol=5e-3, rtol=5e-3), (out, ref)

    print("KERNEL_OK")
</pallas_src>

<mosaic_0001>
module attributes {stable_mosaic.version = 11 : i64} {
  func.func @_fused_lstm_mlp_kernel(%arg0: memref<8x2x512xf32, #tpu.memory_space<vmem>>, %arg1: memref<128x512xf32, #tpu.memory_space<vmem>>, %arg2: memref<128x512xf32, #tpu.memory_space<vmem>>, %arg3: memref<128x512xf32, #tpu.memory_space<vmem>>, %arg4: memref<1x512xf32, #tpu.memory_space<vmem>>, %arg5: memref<128x64xf32, #tpu.memory_space<vmem>>, %arg6: memref<1x64xf32, #tpu.memory_space<vmem>>, %arg7: memref<64x32xf32, #tpu.memory_space<vmem>>, %arg8: memref<1x32xf32, #tpu.memory_space<vmem>>, %arg9: memref<32x1xf32, #tpu.memory_space<vmem>>, %arg10: memref<1x1xf32, #tpu.memory_space<vmem>>, %arg11: memref<2x1xf32, #tpu.memory_space<vmem>>) attributes {dimension_semantics = [], scalar_prefetch = 0 : i64, scratch_operands = 0 : i64, tpu.core_type = #tpu.core_type<tc>} {
    %c0 = arith.constant 0 : index
    %c0_0 = arith.constant 0 : index
    %0 = vector.load %arg1[%c0, %c0_0] : memref<128x512xf32, #tpu.memory_space<vmem>>, vector<128x512xf32>
    %c0_1 = arith.constant 0 : index
    %c0_2 = arith.constant 0 : index
    %1 = vector.load %arg2[%c0_1, %c0_2] : memref<128x512xf32, #tpu.memory_space<vmem>>, vector<128x512xf32>
    %c0_3 = arith.constant 0 : index
    %c0_4 = arith.constant 0 : index
    %2 = vector.load %arg3[%c0_3, %c0_4] : memref<128x512xf32, #tpu.memory_space<vmem>>, vector<128x512xf32>
    %c0_5 = arith.constant 0 : index
    %c0_6 = arith.constant 0 : index
    %3 = vector.load %arg4[%c0_5, %c0_6] : memref<1x512xf32, #tpu.memory_space<vmem>>, vector<1x512xf32>
    %4 = vector.shape_cast %3 : vector<1x512xf32> to vector<1x512xf32>
    %5 = vector.broadcast %4 : vector<1x512xf32> to vector<2x512xf32>
    %cst = arith.constant 0.000000e+00 : f32
    %6 = vector.broadcast %cst : f32 to vector<2x128xf32>
    %c0_i32 = arith.constant 0 : i32
    %7 = arith.index_cast %c0_i32 : i32 to index
    %c0_7 = arith.constant 0 : index
    %c0_8 = arith.constant 0 : index
    %8 = vector.load %arg0[%7, %c0_7, %c0_8] : memref<8x2x512xf32, #tpu.memory_space<vmem>>, vector<1x2x512xf32>
    %9 = vector.shape_cast %8 : vector<1x2x512xf32> to vector<2x512xf32>
    %cst_9 = arith.constant dense<0.000000e+00> : vector<2x512xf32>
    %10 = tpu.matmul %6, %0, %cst_9 {dimension_numbers = #tpu.dot_dimension_numbers<[1], [0], [0], [1], [0, 0, 1, 1], [], []>} : vector<2x128xf32>, vector<128x512xf32>, vector<2x512xf32> -> vector<2x512xf32>
    %11 = arith.addf %9, %10 : vector<2x512xf32>
    %12 = vector.extract_strided_slice %11 {offsets = [0, 0], sizes = [2, 128], strides = [1, 1]} : vector<2x512xf32> to vector<2x128xf32>
    %13 = arith.negf %12 : vector<2x128xf32>
    %14 = math.exp %13 : vector<2x128xf32>
    %cst_10 = arith.constant 1.000000e+00 : f32
    %15 = vector.broadcast %cst_10 : f32 to vector<2x128xf32>
    %16 = arith.addf %15, %14 : vector<2x128xf32>
    %17 = arith.divf %15, %16 : vector<2x128xf32>
    %18 = vector.extract_strided_slice %11 {offsets = [0, 128], sizes = [2, 128], strides = [1, 1]} : vector<2x512xf32> to vector<2x128xf32>
    %19 = arith.negf %18 : vector<2x128xf32>
    %20 = math.exp %19 : vector<2x128xf32>
    %cst_11 = arith.constant 1.000000e+00 : f32
    %21 = vector.broadcast %cst_11 : f32 to vector<2x128xf32>
    %22 = arith.addf %21, %20 : vector<2x128xf32>
    %23 = arith.divf %21, %22 : vector<2x128xf32>
    %24 = vector.extract_strided_slice %11 {offsets = [0, 256], sizes = [2, 128], strides = [1, 1]} : vector<2x512xf32> to vector<2x128xf32>
    %25 = math.tanh %24 : vector<2x128xf32>
    %26 = vector.extract_strided_slice %11 {offsets = [0, 384], sizes = [2, 128], strides = [1, 1]} : vector<2x512xf32> to vector<2x128xf32>
    %27 = arith.negf %26 : vector<2x128xf32>
    %28 = math.exp %27 : vector<2x128xf32>
    %cst_12 = arith.constant 1.000000e+00 : f32
    %29 = vector.broadcast %cst_12 : f32 to vector<2x128xf32>
    %30 = arith.addf %29, %28 : vector<2x128xf32>
    %31 = arith.divf %29, %30 : vector<2x128xf32>
    %32 = arith.mulf %23, %6 : vector<2x128xf32>
    %33 = arith.mulf %17, %25 : vector<2x128xf32>
    %34 = arith.addf %32, %33 : vector<2x128xf32>
    %35 = math.tanh %34 : vector<2x128xf32>
    %36 = arith.mulf %31, %35 : vector<2x128xf32>
    %cst_13 = arith.constant dense<0.000000e+00> : vector<2x512xf32>
    %37 = tpu.matmul %36, %1, %cst_13 {dimension_numbers = #tpu.dot_dimension_numbers<[1], [0], [0], [1], [0, 0, 1, 1], [], []>} : vector<2x128xf32>, vector<128x512xf32>, vector<2x512xf32> -> vector<2x512xf32>
    %cst_14 = arith.constant dense<0.000000e+00> : vector<2x512xf32>
    %38 = tpu.matmul %6, %2, %cst_14 {dimension_numbers = #tpu.dot_dimension_numbers<[1], [0], [0], [1], [0, 0, 1, 1], [], []>} : vector<2x128xf32>, vector<128x512xf32>, vector<2x512xf32> -> vector<2x512xf32>
    %39 = arith.addf %37, %38 : vector<2x512xf32>
    %40 = arith.addf %39, %5 : vector<2x512xf32>
    %41 = vector.extract_strided_slice %40 {offsets = [0, 0], sizes = [2, 128], strides = [1, 1]} : vector<2x512xf32> to vector<2x128xf32>
    %42 = arith.negf %41 : vector<2x128xf32>
    %43 = math.exp %42 : vector<2x128xf32>
    %cst_15 = arith.constant 1.000000e+00 : f32
    %44 = vector.broadcast %cst_15 : f32 to vector<2x128xf32>
    %45 = arith.addf %44, %43 : vector<2x128xf32>
    %46 = arith.divf %44, %45 : vector<2x128xf32>
    %47 = vector.extract_strided_slice %40 {offsets = [0, 128], sizes = [2, 128], strides = [1, 1]} : vector<2x512xf32> to vector<2x128xf32>
    %48 = arith.negf %47 : vector<2x128xf32>
    %49 = math.exp %48 : vector<2x128xf32>
    %cst_16 = arith.constant 1.000000e+00 : f32
    %50 = vector.broadcast %cst_16 : f32 to vector<2x128xf32>
    %51 = arith.addf %50, %49 : vector<2x128xf32>
    %52 = arith.divf %50, %51 : vector<2x128xf32>
    %53 = vector.extract_strided_slice %40 {offsets = [0, 256], sizes = [2, 128], strides = [1, 1]} : vector<2x512xf32> to vector<2x128xf32>
    %54 = math.tanh %53 : vector<2x128xf32>
    %55 = vector.extract_strided_slice %40 {offsets = [0, 384], sizes = [2, 128], strides = [1, 1]} : vector<2x512xf32> to vector<2x128xf32>
    %56 = arith.negf %55 : vector<2x128xf32>
    %57 = math.exp %56 : vector<2x128xf32>
    %cst_17 = arith.constant 1.000000e+00 : f32
    %58 = vector.broadcast %cst_17 : f32 to vector<2x128xf32>
    %59 = arith.addf %58, %57 : vector<2x128xf32>
    %60 = arith.divf %58, %59 : vector<2x128xf32>
    %61 = arith.mulf %52, %6 : vector<2x128xf32>
    %62 = arith.mulf %46, %54 : vector<2x128xf32>
    %63 = arith.addf %61, %62 : vector<2x128xf32>
    %64 = math.tanh %63 : vector<2x128xf32>
    %65 = arith.mulf %60, %64 : vector<2x128xf32>
    %c1_i32 = arith.constant 1 : i32
    %66 = arith.index_cast %c1_i32 : i32 to index
    %c0_18 = arith.constant 0 : index
    %c0_19 = arith.constant 0 : index
    %67 = vector.load %arg0[%66, %c0_18, %c0_19] : memref<8x2x512xf32, #tpu.memory_space<vmem>>, vector<1x2x512xf32>
    %68 = vector.shape_cast %67 : vector<1x2x512xf32> to vector<2x512xf32>
    %cst_20 = arith.constant dense<0.000000e+00> : vector<2x512xf32>
    %69 = tpu.matmul %36, %0, %cst_20 {dimension_numbers = #tpu.dot_dimension_numbers<[1], [0], [0], [1], [0, 0, 1, 1], [], []>} : vector<2x128xf32>, vector<128x512xf32>, vector<2x512xf32> -> vector<2x512xf32>
    %70 = arith.addf %68, %69 : vector<2x512xf32>
    %71 = vector.extract_strided_slice %70 {offsets = [0, 0], sizes = [2, 128], strides = [1, 1]} : vector<2x512xf32> to vector<2x128xf32>
    %72 = arith.negf %71 : vector<2x128xf32>
    %73 = math.exp %72 : vector<2x128xf32>
    %cst_21 = arith.constant 1.000000e+00 : f32
    %74 = vector.broadcast %cst_21 : f32 to vector<2x128xf32>
    %75 = arith.addf %74, %73 : vector<2x128xf32>
    %76 = arith.divf %74, %75 : vector<2x128xf32>
    %77 = vector.extract_strided_slice %70 {offsets = [0, 128], sizes = [2, 128], strides = [1, 1]} : vector<2x512xf32> to vector<2x128xf32>
    %78 = arith.negf %77 : vector<2x128xf32>
    %79 = math.exp %78 : vector<2x128xf32>
    %cst_22 = arith.constant 1.000000e+00 : f32
    %80 = vector.broadcast %cst_22 : f32 to vector<2x128xf32>
    %81 = arith.addf %80, %79 : vector<2x128xf32>
    %82 = arith.divf %80, %81 : vector<2x128xf32>
    %83 = vector.extract_strided_slice %70 {offsets = [0, 256], sizes = [2, 128], strides = [1, 1]} : vector<2x512xf32> to vector<2x128xf32>
    %84 = math.tanh %83 : vector<2x128xf32>
    %85 = vector.extract_strided_slice %70 {offsets = [0, 384], sizes = [2, 128], strides = [1, 1]} : vector<2x512xf32> to vector<2x128xf32>
    %86 = arith.negf %85 : vector<2x128xf32>
    %87 = math.exp %86 : vector<2x128xf32>
    %cst_23 = arith.constant 1.000000e+00 : f32
    %88 = vector.broadcast %cst_23 : f32 to vector<2x128xf32>
    %89 = arith.addf %88, %87 : vector<2x128xf32>
    %90 = arith.divf %88, %89 : vector<2x128xf32>
    %91 = arith.mulf %82, %34 : vector<2x128xf32>
    %92 = arith.mulf %76, %84 : vector<2x128xf32>
    %93 = arith.addf %91, %92 : vector<2x128xf32>
    %94 = math.tanh %93 : vector<2x128xf32>
    %95 = arith.mulf %90, %94 : vector<2x128xf32>
    %cst_24 = arith.constant dense<0.000000e+00> : vector<2x512xf32>
    %96 = tpu.matmul %95, %1, %cst_24 {dimension_numbers = #tpu.dot_dimension_numbers<[1], [0], [0], [1], [0, 0, 1, 1], [], []>} : vector<2x128xf32>, vector<128x512xf32>, vector<2x512xf32> -> vector<2x512xf32>
    %cst_25 = arith.constant dense<0.000000e+00> : vector<2x512xf32>
    %97 = tpu.matmul %65, %2, %cst_25 {dimension_numbers = #tpu.dot_dimension_numbers<[1], [0], [0], [1], [0, 0, 1, 1], [], []>} : vector<2x128xf32>, vector<128x512xf32>, vector<2x512xf32> -> vector<2x512xf32>
    %98 = arith.addf %96, %97 : vector<2x512xf32>
    %99 = arith.addf %98, %5 : vector<2x512xf32>
    %100 = vector.extract_strided_slice %99 {offsets = [0, 0], sizes = [2, 128], strides = [1, 1]} : vector<2x512xf32> to vector<2x128xf32>
    %101 = arith.negf %100 : vector<2x128xf32>
    %102 = math.exp %101 : vector<2x128xf32>
    %cst_26 = arith.constant 1.000000e+00 : f32
    %103 = vector.broadcast %cst_26 : f32 to vector<2x128xf32>
    %104 = arith.addf %103, %102 : vector<2x128xf32>
    %105 = arith.divf %103, %104 : vector<2x128xf32>
    %106 = vector.extract_strided_slice %99 {offsets = [0, 128], sizes = [2, 128], strides = [1, 1]} : vector<2x512xf32> to vector<2x128xf32>
    %107 = arith.negf %106 : vector<2x128xf32>
    %108 = math.exp %107 : vector<2x128xf32>
    %cst_27 = arith.constant 1.000000e+00 : f32
    %109 = vector.broadcast %cst_27 : f32 to vector<2x128xf32>
    %110 = arith.addf %109, %108 : vector<2x128xf32>
    %111 = arith.divf %109, %110 : vector<2x128xf32>
    %112 = vector.extract_strided_slice %99 {offsets = [0, 256], sizes = [2, 128], strides = [1, 1]} : vector<2x512xf32> to vector<2x128xf32>
    %113 = math.tanh %112 : vector<2x128xf32>
    %114 = vector.extract_strided_slice %99 {offsets = [0, 384], sizes = [2, 128], strides = [1, 1]} : vector<2x512xf32> to vector<2x128xf32>
    %115 = arith.negf %114 : vector<2x128xf32>
    %116 = math.exp %115 : vector<2x128xf32>
    %cst_28 = arith.constant 1.000000e+00 : f32
    %117 = vector.broadcast %cst_28 : f32 to vector<2x128xf32>
    %118 = arith.addf %117, %116 : vector<2x128xf32>
    %119 = arith.divf %117, %118 : vector<2x128xf32>
    %120 = arith.mulf %111, %63 : vector<2x128xf32>
    %121 = arith.mulf %105, %113 : vector<2x128xf32>
    %122 = arith.addf %120, %121 : vector<2x128xf32>
    %123 = math.tanh %122 : vector<2x128xf32>
    %124 = arith.mulf %119, %123 : vector<2x128xf32>
    %c2_i32 = arith.constant 2 : i32
    %125 = arith.index_cast %c2_i32 : i32 to index
    %c0_29 = arith.constant 0 : index
    %c0_30 = arith.constant 0 : index
    %126 = vector.load %arg0[%125, %c0_29, %c0_30] : memref<8x2x512xf32, #tpu.memory_space<vmem>>, vector<1x2x512xf32>
    %127 = vector.shape_cast %126 : vector<1x2x512xf32> to vector<2x512xf32>
    %cst_31 = arith.constant dense<0.000000e+00> : vector<2x512xf32>
    %128 = tpu.matmul %95, %0, %cst_31 {dimension_numbers = #tpu.dot_dimension_numbers<[1], [0], [0], [1], [0, 0, 1, 1], [], []>} : vector<2x128xf32>, vector<128x512xf32>, vector<2x512xf32> -> vector<2x512xf32>
    %129 = arith.addf %127, %128 : vector<2x512xf32>
    %130 = vector.extract_strided_slice %129 {offsets = [0, 0], sizes = [2, 128], strides = [1, 1]} : vector<2x512xf32> to vector<2x128xf32>
    %131 = arith.negf %130 : vector<2x128xf32>
    %132 = math.exp %131 : vector<2x128xf32>
    %cst_32 = arith.constant 1.000000e+00 : f32
    %133 = vector.broadcast %cst_32 : f32 to vector<2x128xf32>
    %134 = arith.addf %133, %132 : vector<2x128xf32>
    %135 = arith.divf %133, %134 : vector<2x128xf32>
    %136 = vector.extract_strided_slice %129 {offsets = [0, 128], sizes = [2, 128], strides = [1, 1]} : vector<2x512xf32> to vector<2x128xf32>
    %137 = arith.negf %136 : vector<2x128xf32>
    %138 = math.exp %137 : vector<2x128xf32>
    %cst_33 = arith.constant 1.000000e+00 : f32
    %139 = vector.broadcast %cst_33 : f32 to vector<2x128xf32>
    %140 = arith.addf %139, %138 : vector<2x128xf32>
    %141 = arith.divf %139, %140 : vector<2x128xf32>
    %142 = vector.extract_strided_slice %129 {offsets = [0, 256], sizes = [2, 128], strides = [1, 1]} : vector<2x512xf32> to vector<2x128xf32>
    %143 = math.tanh %142 : vector<2x128xf32>
    %144 = vector.extract_strided_slice %129 {offsets = [0, 384], sizes = [2, 128], strides = [1, 1]} : vector<2x512xf32> to vector<2x128xf32>
    %145 = arith.negf %144 : vector<2x128xf32>
    %146 = math.exp %145 : vector<2x128xf32>
    %cst_34 = arith.constant 1.000000e+00 : f32
    %147 = vector.broadcast %cst_34 : f32 to vector<2x128xf32>
    %148 = arith.addf %147, %146 : vector<2x128xf32>
    %149 = arith.divf %147, %148 : vector<2x128xf32>
    %150 = arith.mulf %141, %93 : vector<2x128xf32>
    %151 = arith.mulf %135, %143 : vector<2x128xf32>
    %152 = arith.addf %150, %151 : vector<2x128xf32>
    %153 = math.tanh %152 : vector<2x128xf32>
    %154 = arith.mulf %149, %153 : vector<2x128xf32>
    %cst_35 = arith.constant dense<0.000000e+00> : vector<2x512xf32>
    %155 = tpu.matmul %154, %1, %cst_35 {dimension_numbers = #tpu.dot_dimension_numbers<[1], [0], [0], [1], [0, 0, 1, 1], [], []>} : vector<2x128xf32>, vector<128x512xf32>, vector<2x512xf32> -> vector<2x512xf32>
    %cst_36 = arith.constant dense<0.000000e+00> : vector<2x512xf32>
    %156 = tpu.matmul %124, %2, %cst_36 {dimension_numbers = #tpu.dot_dimension_numbers<[1], [0], [0], [1], [0, 0, 1, 1], [], []>} : vector<2x128xf32>, vector<128x512xf32>, vector<2x512xf32> -> vector<2x512xf32>
    %157 = arith.addf %155, %156 : vector<2x512xf32>
    %158 = arith.addf %157, %5 : vector<2x512xf32>
    %159 = vector.extract_strided_slice %158 {offsets = [0, 0], sizes = [2, 128], strides = [1, 1]} : vector<2x512xf32> to vector<2x128xf32>
    %160 = arith.negf %159 : vector<2x128xf32>
    %161 = math.exp %160 : vector<2x128xf32>
    %cst_37 = arith.constant 1.000000e+00 : f32
    %162 = vector.broadcast %cst_37 : f32 to vector<2x128xf32>
    %163 = arith.addf %162, %161 : vector<2x128xf32>
    %164 = arith.divf %162, %163 : vector<2x128xf32>
    %165 = vector.extract_strided_slice %158 {offsets = [0, 128], sizes = [2, 128], strides = [1, 1]} : vector<2x512xf32> to vector<2x128xf32>
    %166 = arith.negf %165 : vector<2x128xf32>
    %167 = math.exp %166 : vector<2x128xf32>
    %cst_38 = arith.constant 1.000000e+00 : f32
    %168 = vector.broadcast %cst_38 : f32 to vector<2x128xf32>
    %169 = arith.addf %168, %167 : vector<2x128xf32>
    %170 = arith.divf %168, %169 : vector<2x128xf32>
    %171 = vector.extract_strided_slice %158 {offsets = [0, 256], sizes = [2, 128], strides = [1, 1]} : vector<2x512xf32> to vector<2x128xf32>
    %172 = math.tanh %171 : vector<2x128xf32>
    %173 = vector.extract_strided_slice %158 {offsets = [0, 384], sizes = [2, 128], strides = [1, 1]} : vector<2x512xf32> to vector<2x128xf32>
    %174 = arith.negf %173 : vector<2x128xf32>
    %175 = math.exp %174 : vector<2x128xf32>
    %cst_39 = arith.constant 1.000000e+00 : f32
    %176 = vector.broadcast %cst_39 : f32 to vector<2x128xf32>
    %177 = arith.addf %176, %175 : vector<2x128xf32>
    %178 = arith.divf %176, %177 : vector<2x128xf32>
    %179 = arith.mulf %170, %122 : vector<2x128xf32>
    %180 = arith.mulf %164, %172 : vector<2x128xf32>
    %181 = arith.addf %179, %180 : vector<2x128xf32>
    %182 = math.tanh %181 : vector<2x128xf32>
    %183 = arith.mulf %178, %182 : vector<2x128xf32>
    %c3_i32 = arith.constant 3 : i32
    %184 = arith.index_cast %c3_i32 : i32 to index
    %c0_40 = arith.constant 0 : index
    %c0_41 = arith.constant 0 : index
    %185 = vector.load %arg0[%184, %c0_40, %c0_41] : memref<8x2x512xf32, #tpu.memory_space<vmem>>, vector<1x2x512xf32>
    %186 = vector.shape_cast %185 : vector<1x2x512xf32> to vector<2x512xf32>
    %cst_42 = arith.constant dense<0.000000e+00> : vector<2x512xf32>
    %187 = tpu.matmul %154, %0, %cst_42 {dimension_numbers = #tpu.dot_dimension_numbers<[1], [0], [0], [1], [0, 0, 1, 1], [], []>} : vector<2x128xf32>, vector<128x512xf32>, vector<2x512xf32> -> vector<2x512xf32>
    %188 = arith.addf %186, %187 : vector<2x512xf32>
    %189 = vector.extract_strided_slice %188 {offsets = [0, 0], sizes = [2, 128], strides = [1, 1]} : vector<2x512xf32> to vector<2x128xf32>
    %190 = arith.negf %189 : vector<2x128xf32>
    %191 = math.exp %190 : vector<2x128xf32>
    %cst_43 = arith.constant 1.000000e+00 : f32
    %192 = vector.broadcast %cst_43 : f32 to vector<2x128xf32>
    %193 = arith.addf %192, %191 : vector<2x128xf32>
    %194 = arith.divf %192, %193 : vector<2x128xf32>
    %195 = vector.extract_strided_slice %188 {offsets = [0, 128], sizes = [2, 128], strides = [1, 1]} : vector<2x512xf32> to vector<2x128xf32>
    %196 = arith.negf %195 : vector<2x128xf32>
    %197 = math.exp %196 : vector<2x128xf32>
    %cst_44 = arith.constant 1.000000e+00 : f32
    %198 = vector.broadcast %cst_44 : f32 to vector<2x128xf32>
    %199 = arith.addf %198, %197 : vector<2x128xf32>
    %200 = arith.divf %198, %199 : vector<2x128xf32>
    %201 = vector.extract_strided_slice %188 {offsets = [0, 256], sizes = [2, 128], strides = [1, 1]} : vector<2x512xf32> to vector<2x128xf32>
    %202 = math.tanh %201 : vector<2x128xf32>
    %203 = vector.extract_strided_slice %188 {offsets = [0, 384], sizes = [2, 128], strides = [1, 1]} : vector<2x512xf32> to vector<2x128xf32>
    %204 = arith.negf %203 : vector<2x128xf32>
    %205 = math.exp %204 : vector<2x128xf32>
    %cst_45 = arith.constant 1.000000e+00 : f32
    %206 = vector.broadcast %cst_45 : f32 to vector<2x128xf32>
    %207 = arith.addf %206, %205 : vector<2x128xf32>
    %208 = arith.divf %206, %207 : vector<2x128xf32>
    %209 = arith.mulf %200, %152 : vector<2x128xf32>
    %210 = arith.mulf %194, %202 : vector<2x128xf32>
    %211 = arith.addf %209, %210 : vector<2x128xf32>
    %212 = math.tanh %211 : vector<2x128xf32>
    %213 = arith.mulf %208, %212 : vector<2x128xf32>
    %cst_46 = arith.constant dense<0.000000e+00> : vector<2x512xf32>
    %214 = tpu.matmul %213, %1, %cst_46 {dimension_numbers = #tpu.dot_dimension_numbers<[1], [0], [0], [1], [0, 0, 1, 1], [], []>} : vector<2x128xf32>, vector<128x512xf32>, vector<2x512xf32> -> vector<2x512xf32>
    %cst_47 = arith.constant dense<0.000000e+00> : vector<2x512xf32>
    %215 = tpu.matmul %183, %2, %cst_47 {dimension_numbers = #tpu.dot_dimension_numbers<[1], [0], [0], [1], [0, 0, 1, 1], [], []>} : vector<2x128xf32>, vector<128x512xf32>, vector<2x512xf32> -> vector<2x512xf32>
    %216 = arith.addf %214, %215 : vector<2x512xf32>
    %217 = arith.addf %216, %5 : vector<2x512xf32>
    %218 = vector.extract_strided_slice %217 {offsets = [0, 0], sizes = [2, 128], strides = [1, 1]} : vector<2x512xf32> to vector<2x128xf32>
    %219 = arith.negf %218 : vector<2x128xf32>
    %220 = math.exp %219 : vector<2x128xf32>
    %cst_48 = arith.constant 1.000000e+00 : f32
    %221 = vector.broadcast %cst_48 : f32 to vector<2x128xf32>
    %222 = arith.addf %221, %220 : vector<2x128xf32>
    %223 = arith.divf %221, %222 : vector<2x128xf32>
    %224 = vector.extract_strided_slice %217 {offsets = [0, 128], sizes = [2, 128], strides = [1, 1]} : vector<2x512xf32> to vector<2x128xf32>
    %225 = arith.negf %224 : vector<2x128xf32>
    %226 = math.exp %225 : vector<2x128xf32>
    %cst_49 = arith.constant 1.000000e+00 : f32
    %227 = vector.broadcast %cst_49 : f32 to vector<2x128xf32>
    %228 = arith.addf %227, %226 : vector<2x128xf32>
    %229 = arith.divf %227, %228 : vector<2x128xf32>
    %230 = vector.extract_strided_slice %217 {offsets = [0, 256], sizes = [2, 128], strides = [1, 1]} : vector<2x512xf32> to vector<2x128xf32>
    %231 = math.tanh %230 : vector<2x128xf32>
    %232 = vector.extract_strided_slice %217 {offsets = [0, 384], sizes = [2, 128], strides = [1, 1]} : vector<2x512xf32> to vector<2x128xf32>
    %233 = arith.negf %232 : vector<2x128xf32>
    %234 = math.exp %233 : vector<2x128xf32>
    %cst_50 = arith.constant 1.000000e+00 : f32
    %235 = vector.broadcast %cst_50 : f32 to vector<2x128xf32>
    %236 = arith.addf %235, %234 : vector<2x128xf32>
    %237 = arith.divf %235, %236 : vector<2x128xf32>
    %238 = arith.mulf %229, %181 : vector<2x128xf32>
    %239 = arith.mulf %223, %231 : vector<2x128xf32>
    %240 = arith.addf %238, %239 : vector<2x128xf32>
    %241 = math.tanh %240 : vector<2x128xf32>
    %242 = arith.mulf %237, %241 : vector<2x128xf32>
    %c4_i32 = arith.constant 4 : i32
    %243 = arith.index_cast %c4_i32 : i32 to index
    %c0_51 = arith.constant 0 : index
    %c0_52 = arith.constant 0 : index
    %244 = vector.load %arg0[%243, %c0_51, %c0_52] : memref<8x2x512xf32, #tpu.memory_space<vmem>>, vector<1x2x512xf32>
    %245 = vector.shape_cast %244 : vector<1x2x512xf32> to vector<2x512xf32>
    %cst_53 = arith.constant dense<0.000000e+00> : vector<2x512xf32>
    %246 = tpu.matmul %213, %0, %cst_53 {dimension_numbers = #tpu.dot_dimension_numbers<[1], [0], [0], [1], [0, 0, 1, 1], [], []>} : vector<2x128xf32>, vector<128x512xf32>, vector<2x512xf32> -> vector<2x512xf32>
    %247 = arith.addf %245, %246 : vector<2x512xf32>
    %248 = vector.extract_strided_slice %247 {offsets = [0, 0], sizes = [2, 128], strides = [1, 1]} : vector<2x512xf32> to vector<2x128xf32>
    %249 = arith.negf %248 : vector<2x128xf32>
    %250 = math.exp %249 : vector<2x128xf32>
    %cst_54 = arith.constant 1.000000e+00 : f32
    %251 = vector.broadcast %cst_54 : f32 to vector<2x128xf32>
    %252 = arith.addf %251, %250 : vector<2x128xf32>
    %253 = arith.divf %251, %252 : vector<2x128xf32>
    %254 = vector.extract_strided_slice %247 {offsets = [0, 128], sizes = [2, 128], strides = [1, 1]} : vector<2x512xf32> to vector<2x128xf32>
    %255 = arith.negf %254 : vector<2x128xf32>
    %256 = math.exp %255 : vector<2x128xf32>
    %cst_55 = arith.constant 1.000000e+00 : f32
    %257 = vector.broadcast %cst_55 : f32 to vector<2x128xf32>
    %258 = arith.addf %257, %256 : vector<2x128xf32>
    %259 = arith.divf %257, %258 : vector<2x128xf32>
    %260 = vector.extract_strided_slice %247 {offsets = [0, 256], sizes = [2, 128], strides = [1, 1]} : vector<2x512xf32> to vector<2x128xf32>
    %261 = math.tanh %260 : vector<2x128xf32>
    %262 = vector.extract_strided_slice %247 {offsets = [0, 384], sizes = [2, 128], strides = [1, 1]} : vector<2x512xf32> to vector<2x128xf32>
    %263 = arith.negf %262 : vector<2x128xf32>
    %264 = math.exp %263 : vector<2x128xf32>
    %cst_56 = arith.constant 1.000000e+00 : f32
    %265 = vector.broadcast %cst_56 : f32 to vector<2x128xf32>
    %266 = arith.addf %265, %264 : vector<2x128xf32>
    %267 = arith.divf %265, %266 : vector<2x128xf32>
    %268 = arith.mulf %259, %211 : vector<2x128xf32>
    %269 = arith.mulf %253, %261 : vector<2x128xf32>
    %270 = arith.addf %268, %269 : vector<2x128xf32>
    %271 = math.tanh %270 : vector<2x128xf32>
    %272 = arith.mulf %267, %271 : vector<2x128xf32>
    %cst_57 = arith.constant dense<0.000000e+00> : vector<2x512xf32>
    %273 = tpu.matmul %272, %1, %cst_57 {dimension_numbers = #tpu.dot_dimension_numbers<[1], [0], [0], [1], [0, 0, 1, 1], [], []>} : vector<2x128xf32>, vector<128x512xf32>, vector<2x512xf32> -> vector<2x512xf32>
    %cst_58 = arith.constant dense<0.000000e+00> : vector<2x512xf32>
    %274 = tpu.matmul %242, %2, %cst_58 {dimension_numbers = #tpu.dot_dimension_numbers<[1], [0], [0], [1], [0, 0, 1, 1], [], []>} : vector<2x128xf32>, vector<128x512xf32>, vector<2x512xf32> -> vector<2x512xf32>
    %275 = arith.addf %273, %274 : vector<2x512xf32>
    %276 = arith.addf %275, %5 : vector<2x512xf32>
    %277 = vector.extract_strided_slice %276 {offsets = [0, 0], sizes = [2, 128], strides = [1, 1]} : vector<2x512xf32> to vector<2x128xf32>
    %278 = arith.negf %277 : vector<2x128xf32>
    %279 = math.exp %278 : vector<2x128xf32>
    %cst_59 = arith.constant 1.000000e+00 : f32
    %280 = vector.broadcast %cst_59 : f32 to vector<2x128xf32>
    %281 = arith.addf %280, %279 : vector<2x128xf32>
    %282 = arith.divf %280, %281 : vector<2x128xf32>
    %283 = vector.extract_strided_slice %276 {offsets = [0, 128], sizes = [2, 128], strides = [1, 1]} : vector<2x512xf32> to vector<2x128xf32>
    %284 = arith.negf %283 : vector<2x128xf32>
    %285 = math.exp %284 : vector<2x128xf32>
    %cst_60 = arith.constant 1.000000e+00 : f32
    %286 = vector.broadcast %cst_60 : f32 to vector<2x128xf32>
    %287 = arith.addf %286, %285 : vector<2x128xf32>
    %288 = arith.divf %286, %287 : vector<2x128xf32>
    %289 = vector.extract_strided_slice %276 {offsets = [0, 256], sizes = [2, 128], strides = [1, 1]} : vector<2x512xf32> to vector<2x128xf32>
    %290 = math.tanh %289 : vector<2x128xf32>
    %291 = vector.extract_strided_slice %276 {offsets = [0, 384], sizes = [2, 128], strides = [1, 1]} : vector<2x512xf32> to vector<2x128xf32>
    %292 = arith.negf %291 : vector<2x128xf32>
    %293 = math.exp %292 : vector<2x128xf32>
    %cst_61 = arith.constant 1.000000e+00 : f32
    %294 = vector.broadcast %cst_61 : f32 to vector<2x128xf32>
    %295 = arith.addf %294, %293 : vector<2x128xf32>
    %296 = arith.divf %294, %295 : vector<2x128xf32>
    %297 = arith.mulf %288, %240 : vector<2x128xf32>
    %298 = arith.mulf %282, %290 : vector<2x128xf32>
    %299 = arith.addf %297, %298 : vector<2x128xf32>
    %300 = math.tanh %299 : vector<2x128xf32>
    %301 = arith.mulf %296, %300 : vector<2x128xf32>
    %c5_i32 = arith.constant 5 : i32
    %302 = arith.index_cast %c5_i32 : i32 to index
    %c0_62 = arith.constant 0 : index
    %c0_63 = arith.constant 0 : index
    %303 = vector.load %arg0[%302, %c0_62, %c0_63] : memref<8x2x512xf32, #tpu.memory_space<vmem>>, vector<1x2x512xf32>
    %304 = vector.shape_cast %303 : vector<1x2x512xf32> to vector<2x512xf32>
    %cst_64 = arith.constant dense<0.000000e+00> : vector<2x512xf32>
    %305 = tpu.matmul %272, %0, %cst_64 {dimension_numbers = #tpu.dot_dimension_numbers<[1], [0], [0], [1], [0, 0, 1, 1], [], []>} : vector<2x128xf32>, vector<128x512xf32>, vector<2x512xf32> -> vector<2x512xf32>
    %306 = arith.addf %304, %305 : vector<2x512xf32>
    %307 = vector.extract_strided_slice %306 {offsets = [0, 0], sizes = [2, 128], strides = [1, 1]} : vector<2x512xf32> to vector<2x128xf32>
    %308 = arith.negf %307 : vector<2x128xf32>
    %309 = math.exp %308 : vector<2x128xf32>
    %cst_65 = arith.constant 1.000000e+00 : f32
    %310 = vector.broadcast %cst_65 : f32 to vector<2x128xf32>
    %311 = arith.addf %310, %309 : vector<2x128xf32>
    %312 = arith.divf %310, %311 : vector<2x128xf32>
    %313 = vector.extract_strided_slice %306 {offsets = [0, 128], sizes = [2, 128], strides = [1, 1]} : vector<2x512xf32> to vector<2x128xf32>
    %314 = arith.negf %313 : vector<2x128xf32>
    %315 = math.exp %314 : vector<2x128xf32>
    %cst_66 = arith.constant 1.000000e+00 : f32
    %316 = vector.broadcast %cst_66 : f32 to vector<2x128xf32>
    %317 = arith.addf %316, %315 : vector<2x128xf32>
    %318 = arith.divf %316, %317 : vector<2x128xf32>
    %319 = vector.extract_strided_slice %306 {offsets = [0, 256], sizes = [2, 128], strides = [1, 1]} : vector<2x512xf32> to vector<2x128xf32>
    %320 = math.tanh %319 : vector<2x128xf32>
    %321 = vector.extract_strided_slice %306 {offsets = [0, 384], sizes = [2, 128], strides = [1, 1]} : vector<2x512xf32> to vector<2x128xf32>
    %322 = arith.negf %321 : vector<2x128xf32>
    %323 = math.exp %322 : vector<2x128xf32>
    %cst_67 = arith.constant 1.000000e+00 : f32
    %324 = vector.broadcast %cst_67 : f32 to vector<2x128xf32>
    %325 = arith.addf %324, %323 : vector<2x128xf32>
    %326 = arith.divf %324, %325 : vector<2x128xf32>
    %327 = arith.mulf %318, %270 : vector<2x128xf32>
    %328 = arith.mulf %312, %320 : vector<2x128xf32>
    %329 = arith.addf %327, %328 : vector<2x128xf32>
    %330 = math.tanh %329 : vector<2x128xf32>
    %331 = arith.mulf %326, %330 : vector<2x128xf32>
    %cst_68 = arith.constant dense<0.000000e+00> : vector<2x512xf32>
    %332 = tpu.matmul %331, %1, %cst_68 {dimension_numbers = #tpu.dot_dimension_numbers<[1], [0], [0], [1], [0, 0, 1, 1], [], []>} : vector<2x128xf32>, vector<128x512xf32>, vector<2x512xf32> -> vector<2x512xf32>
    %cst_69 = arith.constant dense<0.000000e+00> : vector<2x512xf32>
    %333 = tpu.matmul %301, %2, %cst_69 {dimension_numbers = #tpu.dot_dimension_numbers<[1], [0], [0], [1], [0, 0, 1, 1], [], []>} : vector<2x128xf32>, vector<128x512xf32>, vector<2x512xf32> -> vector<2x512xf32>
    %334 = arith.addf %332, %333 : vector<2x512xf32>
    %335 = arith.addf %334, %5 : vector<2x512xf32>
    %336 = vector.extract_strided_slice %335 {offsets = [0, 0], sizes = [2, 128], strides = [1, 1]} : vector<2x512xf32> to vector<2x128xf32>
    %337 = arith.negf %336 : vector<2x128xf32>
    %338 = math.exp %337 : vector<2x128xf32>
    %cst_70 = arith.constant 1.000000e+00 : f32
    %339 = vector.broadcast %cst_70 : f32 to vector<2x128xf32>
    %340 = arith.addf %339, %338 : vector<2x128xf32>
    %341 = arith.divf %339, %340 : vector<2x128xf32>
    %342 = vector.extract_strided_slice %335 {offsets = [0, 128], sizes = [2, 128], strides = [1, 1]} : vector<2x512xf32> to vector<2x128xf32>
    %343 = arith.negf %342 : vector<2x128xf32>
    %344 = math.exp %343 : vector<2x128xf32>
    %cst_71 = arith.constant 1.000000e+00 : f32
    %345 = vector.broadcast %cst_71 : f32 to vector<2x128xf32>
    %346 = arith.addf %345, %344 : vector<2x128xf32>
    %347 = arith.divf %345, %346 : vector<2x128xf32>
    %348 = vector.extract_strided_slice %335 {offsets = [0, 256], sizes = [2, 128], strides = [1, 1]} : vector<2x512xf32> to vector<2x128xf32>
    %349 = math.tanh %348 : vector<2x128xf32>
    %350 = vector.extract_strided_slice %335 {offsets = [0, 384], sizes = [2, 128], strides = [1, 1]} : vector<2x512xf32> to vector<2x128xf32>
    %351 = arith.negf %350 : vector<2x128xf32>
    %352 = math.exp %351 : vector<2x128xf32>
    %cst_72 = arith.constant 1.000000e+00 : f32
    %353 = vector.broadcast %cst_72 : f32 to vector<2x128xf32>
    %354 = arith.addf %353, %352 : vector<2x128xf32>
    %355 = arith.divf %353, %354 : vector<2x128xf32>
    %356 = arith.mulf %347, %299 : vector<2x128xf32>
    %357 = arith.mulf %341, %349 : vector<2x128xf32>
    %358 = arith.addf %356, %357 : vector<2x128xf32>
    %359 = math.tanh %358 : vector<2x128xf32>
    %360 = arith.mulf %355, %359 : vector<2x128xf32>
    %c6_i32 = arith.constant 6 : i32
    %361 = arith.index_cast %c6_i32 : i32 to index
    %c0_73 = arith.constant 0 : index
    %c0_74 = arith.constant 0 : index
    %362 = vector.load %arg0[%361, %c0_73, %c0_74] : memref<8x2x512xf32, #tpu.memory_space<vmem>>, vector<1x2x512xf32>
    %363 = vector.shape_cast %362 : vector<1x2x512xf32> to vector<2x512xf32>
    %cst_75 = arith.constant dense<0.000000e+00> : vector<2x512xf32>
    %364 = tpu.matmul %331, %0, %cst_75 {dimension_numbers = #tpu.dot_dimension_numbers<[1], [0], [0], [1], [0, 0, 1, 1], [], []>} : vector<2x128xf32>, vector<128x512xf32>, vector<2x512xf32> -> vector<2x512xf32>
    %365 = arith.addf %363, %364 : vector<2x512xf32>
    %366 = vector.extract_strided_slice %365 {offsets = [0, 0], sizes = [2, 128], strides = [1, 1]} : vector<2x512xf32> to vector<2x128xf32>
    %367 = arith.negf %366 : vector<2x128xf32>
    %368 = math.exp %367 : vector<2x128xf32>
    %cst_76 = arith.constant 1.000000e+00 : f32
    %369 = vector.broadcast %cst_76 : f32 to vector<2x128xf32>
    %370 = arith.addf %369, %368 : vector<2x128xf32>
    %371 = arith.divf %369, %370 : vector<2x128xf32>
    %372 = vector.extract_strided_slice %365 {offsets = [0, 128], sizes = [2, 128], strides = [1, 1]} : vector<2x512xf32> to vector<2x128xf32>
    %373 = arith.negf %372 : vector<2x128xf32>
    %374 = math.exp %373 : vector<2x128xf32>
    %cst_77 = arith.constant 1.000000e+00 : f32
    %375 = vector.broadcast %cst_77 : f32 to vector<2x128xf32>
    %376 = arith.addf %375, %374 : vector<2x128xf32>
    %377 = arith.divf %375, %376 : vector<2x128xf32>
    %378 = vector.extract_strided_slice %365 {offsets = [0, 256], sizes = [2, 128], strides = [1, 1]} : vector<2x512xf32> to vector<2x128xf32>
    %379 = math.tanh %378 : vector<2x128xf32>
    %380 = vector.extract_strided_slice %365 {offsets = [0, 384], sizes = [2, 128], strides = [1, 1]} : vector<2x512xf32> to vector<2x128xf32>
    %381 = arith.negf %380 : vector<2x128xf32>
    %382 = math.exp %381 : vector<2x128xf32>
    %cst_78 = arith.constant 1.000000e+00 : f32
    %383 = vector.broadcast %cst_78 : f32 to vector<2x128xf32>
    %384 = arith.addf %383, %382 : vector<2x128xf32>
    %385 = arith.divf %383, %384 : vector<2x128xf32>
    %386 = arith.mulf %377, %329 : vector<2x128xf32>
    %387 = arith.mulf %371, %379 : vector<2x128xf32>
    %388 = arith.addf %386, %387 : vector<2x128xf32>
    %389 = math.tanh %388 : vector<2x128xf32>
    %390 = arith.mulf %385, %389 : vector<2x128xf32>
    %cst_79 = arith.constant dense<0.000000e+00> : vector<2x512xf32>
    %391 = tpu.matmul %390, %1, %cst_79 {dimension_numbers = #tpu.dot_dimension_numbers<[1], [0], [0], [1], [0, 0, 1, 1], [], []>} : vector<2x128xf32>, vector<128x512xf32>, vector<2x512xf32> -> vector<2x512xf32>
    %cst_80 = arith.constant dense<0.000000e+00> : vector<2x512xf32>
    %392 = tpu.matmul %360, %2, %cst_80 {dimension_numbers = #tpu.dot_dimension_numbers<[1], [0], [0], [1], [0, 0, 1, 1], [], []>} : vector<2x128xf32>, vector<128x512xf32>, vector<2x512xf32> -> vector<2x512xf32>
    %393 = arith.addf %391, %392 : vector<2x512xf32>
    %394 = arith.addf %393, %5 : vector<2x512xf32>
    %395 = vector.extract_strided_slice %394 {offsets = [0, 0], sizes = [2, 128], strides = [1, 1]} : vector<2x512xf32> to vector<2x128xf32>
    %396 = arith.negf %395 : vector<2x128xf32>
    %397 = math.exp %396 : vector<2x128xf32>
    %cst_81 = arith.constant 1.000000e+00 : f32
    %398 = vector.broadcast %cst_81 : f32 to vector<2x128xf32>
    %399 = arith.addf %398, %397 : vector<2x128xf32>
    %400 = arith.divf %398, %399 : vector<2x128xf32>
    %401 = vector.extract_strided_slice %394 {offsets = [0, 128], sizes = [2, 128], strides = [1, 1]} : vector<2x512xf32> to vector<2x128xf32>
    %402 = arith.negf %401 : vector<2x128xf32>
    %403 = math.exp %402 : vector<2x128xf32>
    %cst_82 = arith.constant 1.000000e+00 : f32
    %404 = vector.broadcast %cst_82 : f32 to vector<2x128xf32>
    %405 = arith.addf %404, %403 : vector<2x128xf32>
    %406 = arith.divf %404, %405 : vector<2x128xf32>
    %407 = vector.extract_strided_slice %394 {offsets = [0, 256], sizes = [2, 128], strides = [1, 1]} : vector<2x512xf32> to vector<2x128xf32>
    %408 = math.tanh %407 : vector<2x128xf32>
    %409 = vector.extract_strided_slice %394 {offsets = [0, 384], sizes = [2, 128], strides = [1, 1]} : vector<2x512xf32> to vector<2x128xf32>
    %410 = arith.negf %409 : vector<2x128xf32>
    %411 = math.exp %410 : vector<2x128xf32>
    %cst_83 = arith.constant 1.000000e+00 : f32
    %412 = vector.broadcast %cst_83 : f32 to vector<2x128xf32>
    %413 = arith.addf %412, %411 : vector<2x128xf32>
    %414 = arith.divf %412, %413 : vector<2x128xf32>
    %415 = arith.mulf %406, %358 : vector<2x128xf32>
    %416 = arith.mulf %400, %408 : vector<2x128xf32>
    %417 = arith.addf %415, %416 : vector<2x128xf32>
    %418 = math.tanh %417 : vector<2x128xf32>
    %419 = arith.mulf %414, %418 : vector<2x128xf32>
    %c7_i32 = arith.constant 7 : i32
    %420 = arith.index_cast %c7_i32 : i32 to index
    %c0_84 = arith.constant 0 : index
    %c0_85 = arith.constant 0 : index
    %421 = vector.load %arg0[%420, %c0_84, %c0_85] : memref<8x2x512xf32, #tpu.memory_space<vmem>>, vector<1x2x512xf32>
    %422 = vector.shape_cast %421 : vector<1x2x512xf32> to vector<2x512xf32>
    %cst_86 = arith.constant dense<0.000000e+00> : vector<2x512xf32>
    %423 = tpu.matmul %390, %0, %cst_86 {dimension_numbers = #tpu.dot_dimension_numbers<[1], [0], [0], [1], [0, 0, 1, 1], [], []>} : vector<2x128xf32>, vector<128x512xf32>, vector<2x512xf32> -> vector<2x512xf32>
    %424 = arith.addf %422, %423 : vector<2x512xf32>
    %425 = vector.extract_strided_slice %424 {offsets = [0, 0], sizes = [2, 128], strides = [1, 1]} : vector<2x512xf32> to vector<2x128xf32>
    %426 = arith.negf %425 : vector<2x128xf32>
    %427 = math.exp %426 : vector<2x128xf32>
    %cst_87 = arith.constant 1.000000e+00 : f32
    %428 = vector.broadcast %cst_87 : f32 to vector<2x128xf32>
    %429 = arith.addf %428, %427 : vector<2x128xf32>
    %430 = arith.divf %428, %429 : vector<2x128xf32>
    %431 = vector.extract_strided_slice %424 {offsets = [0, 128], sizes = [2, 128], strides = [1, 1]} : vector<2x512xf32> to vector<2x128xf32>
    %432 = arith.negf %431 : vector<2x128xf32>
    %433 = math.exp %432 : vector<2x128xf32>
    %cst_88 = arith.constant 1.000000e+00 : f32
    %434 = vector.broadcast %cst_88 : f32 to vector<2x128xf32>
    %435 = arith.addf %434, %433 : vector<2x128xf32>
    %436 = arith.divf %434, %435 : vector<2x128xf32>
    %437 = vector.extract_strided_slice %424 {offsets = [0, 256], sizes = [2, 128], strides = [1, 1]} : vector<2x512xf32> to vector<2x128xf32>
    %438 = math.tanh %437 : vector<2x128xf32>
    %439 = vector.extract_strided_slice %424 {offsets = [0, 384], sizes = [2, 128], strides = [1, 1]} : vector<2x512xf32> to vector<2x128xf32>
    %440 = arith.negf %439 : vector<2x128xf32>
    %441 = math.exp %440 : vector<2x128xf32>
    %cst_89 = arith.constant 1.000000e+00 : f32
    %442 = vector.broadcast %cst_89 : f32 to vector<2x128xf32>
    %443 = arith.addf %442, %441 : vector<2x128xf32>
    %444 = arith.divf %442, %443 : vector<2x128xf32>
    %445 = arith.mulf %436, %388 : vector<2x128xf32>
    %446 = arith.mulf %430, %438 : vector<2x128xf32>
    %447 = arith.addf %445, %446 : vector<2x128xf32>
    %448 = math.tanh %447 : vector<2x128xf32>
    %449 = arith.mulf %444, %448 : vector<2x128xf32>
    %cst_90 = arith.constant dense<0.000000e+00> : vector<2x512xf32>
    %450 = tpu.matmul %449, %1, %cst_90 {dimension_numbers = #tpu.dot_dimension_numbers<[1], [0], [0], [1], [0, 0, 1, 1], [], []>} : vector<2x128xf32>, vector<128x512xf32>, vector<2x512xf32> -> vector<2x512xf32>
    %cst_91 = arith.constant dense<0.000000e+00> : vector<2x512xf32>
    %451 = tpu.matmul %419, %2, %cst_91 {dimension_numbers = #tpu.dot_dimension_numbers<[1], [0], [0], [1], [0, 0, 1, 1], [], []>} : vector<2x128xf32>, vector<128x512xf32>, vector<2x512xf32> -> vector<2x512xf32>
    %452 = arith.addf %450, %451 : vector<2x512xf32>
    %453 = arith.addf %452, %5 : vector<2x512xf32>
    %454 = vector.extract_strided_slice %453 {offsets = [0, 0], sizes = [2, 128], strides = [1, 1]} : vector<2x512xf32> to vector<2x128xf32>
    %455 = arith.negf %454 : vector<2x128xf32>
    %456 = math.exp %455 : vector<2x128xf32>
    %cst_92 = arith.constant 1.000000e+00 : f32
    %457 = vector.broadcast %cst_92 : f32 to vector<2x128xf32>
    %458 = arith.addf %457, %456 : vector<2x128xf32>
    %459 = arith.divf %457, %458 : vector<2x128xf32>
    %460 = vector.extract_strided_slice %453 {offsets = [0, 128], sizes = [2, 128], strides = [1, 1]} : vector<2x512xf32> to vector<2x128xf32>
    %461 = arith.negf %460 : vector<2x128xf32>
    %462 = math.exp %461 : vector<2x128xf32>
    %cst_93 = arith.constant 1.000000e+00 : f32
    %463 = vector.broadcast %cst_93 : f32 to vector<2x128xf32>
    %464 = arith.addf %463, %462 : vector<2x128xf32>
    %465 = arith.divf %463, %464 : vector<2x128xf32>
    %466 = vector.extract_strided_slice %453 {offsets = [0, 256], sizes = [2, 128], strides = [1, 1]} : vector<2x512xf32> to vector<2x128xf32>
    %467 = math.tanh %466 : vector<2x128xf32>
    %468 = vector.extract_strided_slice %453 {offsets = [0, 384], sizes = [2, 128], strides = [1, 1]} : vector<2x512xf32> to vector<2x128xf32>
    %469 = arith.negf %468 : vector<2x128xf32>
    %470 = math.exp %469 : vector<2x128xf32>
    %cst_94 = arith.constant 1.000000e+00 : f32
    %471 = vector.broadcast %cst_94 : f32 to vector<2x128xf32>
    %472 = arith.addf %471, %470 : vector<2x128xf32>
    %473 = arith.divf %471, %472 : vector<2x128xf32>
    %474 = arith.mulf %465, %417 : vector<2x128xf32>
    %475 = arith.mulf %459, %467 : vector<2x128xf32>
    %476 = arith.addf %474, %475 : vector<2x128xf32>
    %477 = math.tanh %476 : vector<2x128xf32>
    %478 = arith.mulf %473, %477 : vector<2x128xf32>
    %c8_i32 = arith.constant 8 : i32
    %c0_95 = arith.constant 0 : index
    %c0_96 = arith.constant 0 : index
    %479 = vector.load %arg5[%c0_95, %c0_96] : memref<128x64xf32, #tpu.memory_space<vmem>>, vector<128x64xf32>
    %cst_97 = arith.constant dense<0.000000e+00> : vector<2x64xf32>
    %480 = tpu.matmul %478, %479, %cst_97 {dimension_numbers = #tpu.dot_dimension_numbers<[1], [0], [0], [1], [0, 0, 1, 1], [], []>} : vector<2x128xf32>, vector<128x64xf32>, vector<2x64xf32> -> vector<2x64xf32>
    %c0_98 = arith.constant 0 : index
    %c0_99 = arith.constant 0 : index
    %481 = vector.load %arg6[%c0_98, %c0_99] : memref<1x64xf32, #tpu.memory_space<vmem>>, vector<1x64xf32>
    %482 = vector.broadcast %481 : vector<1x64xf32> to vector<2x64xf32>
    %483 = arith.addf %480, %482 : vector<2x64xf32>
    %cst_100 = arith.constant 0.000000e+00 : f32
    %484 = vector.broadcast %cst_100 : f32 to vector<2x64xf32>
    %485 = arith.maximumf %483, %484 : vector<2x64xf32>
    %c0_101 = arith.constant 0 : index
    %c0_102 = arith.constant 0 : index
    %486 = vector.load %arg7[%c0_101, %c0_102] : memref<64x32xf32, #tpu.memory_space<vmem>>, vector<64x32xf32>
    %cst_103 = arith.constant dense<0.000000e+00> : vector<2x32xf32>
    %487 = tpu.matmul %485, %486, %cst_103 {dimension_numbers = #tpu.dot_dimension_numbers<[1], [0], [0], [1], [0, 0, 1, 1], [], []>} : vector<2x64xf32>, vector<64x32xf32>, vector<2x32xf32> -> vector<2x32xf32>
    %c0_104 = arith.constant 0 : index
    %c0_105 = arith.constant 0 : index
    %488 = vector.load %arg8[%c0_104, %c0_105] : memref<1x32xf32, #tpu.memory_space<vmem>>, vector<1x32xf32>
    %489 = vector.broadcast %488 : vector<1x32xf32> to vector<2x32xf32>
    %490 = arith.addf %487, %489 : vector<2x32xf32>
    %cst_106 = arith.constant 0.000000e+00 : f32
    %491 = vector.broadcast %cst_106 : f32 to vector<2x32xf32>
    %492 = arith.maximumf %490, %491 : vector<2x32xf32>
    %c0_107 = arith.constant 0 : index
    %c0_108 = arith.constant 0 : index
    %493 = vector.load %arg9[%c0_107, %c0_108] : memref<32x1xf32, #tpu.memory_space<vmem>>, vector<32x1xf32>
    %cst_109 = arith.constant dense<0.000000e+00> : vector<2x1xf32>
    %494 = tpu.matmul %492, %493, %cst_109 {dimension_numbers = #tpu.dot_dimension_numbers<[1], [0], [0], [1], [0, 0, 1, 1], [], []>} : vector<2x32xf32>, vector<32x1xf32>, vector<2x1xf32> -> vector<2x1xf32>
    %c0_110 = arith.constant 0 : index
    %c0_111 = arith.constant 0 : index
    %495 = vector.load %arg10[%c0_110, %c0_111] : memref<1x1xf32, #tpu.memory_space<vmem>>, vector<1x1xf32>
    %496 = vector.broadcast %495 : vector<1x1xf32> to vector<2x1xf32>
    %497 = arith.addf %494, %496 : vector<2x1xf32>
    %c0_112 = arith.constant 0 : index
    %c0_113 = arith.constant 0 : index
    %498 = vector.load %arg11[%c0_112, %c0_113] : memref<2x1xf32, #tpu.memory_space<vmem>>, vector<2x1xf32>
    tpu.vector_store %arg11[%c0_112, %c0_113], %497 {strides = array<i32>} : memref<2x1xf32, #tpu.memory_space<vmem>>, vector<2x1xf32>,
    return
  }
}

</mosaic_0001>

<bundles_post_ra>
// kernel: lstm_model_forward.1
= control target key start
LH: loop header
LB: loop body
LE: loop exit
PB: predicated region body
PF: predicated region fallthrough
CT: control target
= control target key end

     0   :  { %s8276_s0 = inlined_call_operand.vmem [shape: f32[8,2,512], index: 0, kind: input, shape index: {}]   ;;  %s8277_s1 = inlined_call_operand.vmem [shape: f32[128,512], index: 1, kind: input, shape index: {}]   ;;  %s8278_s2 = inlined_call_operand.hbm [shape: f32[128,512], index: 2, kind: input, shape index: {}]   ;;  %s8279_s3 = inlined_call_operand.hbm [shape: f32[128,512], index: 3, kind: input, shape index: {}]   ;;  %s8280_s4 = inlined_call_operand.vmem [shape: f32[1,512], index: 4, kind: input, shape index: {}]   ;;  %s8281_s5 = inlined_call_operand.vmem [shape: f32[128,64], index: 5, kind: input, shape index: {}]   ;;  %s8282_s6 = inlined_call_operand.vmem [shape: f32[1,64], index: 6, kind: input, shape index: {}]   ;;  %s8283_s7 = inlined_call_operand.vmem [shape: f32[64,32], index: 7, kind: input, shape index: {}]   ;;  %s8284_s8 = inlined_call_operand.vmem [shape: f32[1,32], index: 8, kind: input, shape index: {}]   ;;  %s8285_s9 = inlined_call_operand.vmem [shape: f32[32,1], index: 9, kind: input, shape index: {}]   ;;  %s8286_s10 = inlined_call_operand.<no memory space> [shape: f32[1,1], index: 10, kind: input, shape index: {}]   ;;  %s8287_s11 = inlined_call_operand.vmem [shape: f32[2,1], index: 11, kind: output, shape index: {}]  }
   0x1   :  { %v16_v0 = vstv %s8286_s10 }
   0x2   :  { %17 = vst [vmem:[#allocation2] sm:$0x1] %v16_v0 }
   0x3   :  { %18 = vsyncpa [#allocation4], 0 }
   0x4   :  { %19 = vsyncpa [#allocation6], 0  ;;  %s6716_s19 = smov [#allocation3]   ;;  %s6668_s23 = scalar_lea.hbm %s8278_s2, 8192 }
   0x5   :  { %s29_s20 = sshll.u32 %s6716_s19, 4  ;;  %p6669_p0 = scmp.ne.s32.totalorder %s8278_s2, %s6668_s23  ;;  %s30_s20 = int_to_ptr.vmem [resolvable:$true] %s29_s20 }
   0x6   :  { %p6672_p1 = scmp.lt.u32.totalorder %s6668_s23, %s8278_s2 }
   0x8   :  { %p6674_p2 = pnand %p6672_p1, %p6669_p0 }
   0xa   :  { %6677 = shalt.err (!%p6674_p2)
}
   0xb   :  { %s6678_s10 = scalar_lea.vmem %s30_s20, 8192  ;;  %p6683_p4 = scmp.lt.s32.totalorder %s30_s20, %s30_s20 }
   0xc   :  { %p6679_p3 = scmp.ne.s32.totalorder %s30_s20, %s6678_s10  ;;  %p6684_p5 = scmp.lt.s32.totalorder %s6678_s10, %s6678_s10 }
   0xe   :  { %p6685_p6 = por %p6684_p5, %p6683_p4 }
  0x10   :  { %p6686_p7 = pnand %p6685_p6, %p6679_p3 }
  0x12   :  { %6689 = shalt.err (!%p6686_p7)
}
  0x13   :  { %s6717_s28 = smov 512   ;;  %s6718_s29 = smov 32  }
  0x14   :  { %35 = dma.hbm_to_vmem [thread:$0]  %s8278_s2, 8192, %s30_s20, [#allocation4], %s6717_s28, %s6717_s28, %s6718_s29  }
  0x15   :  { %s6719_s13 = smov [#allocation5]   ;;  %s6690_s17 = scalar_lea.hbm %s8279_s3, 8192 }
  0x16   :  { %s41_s14 = sshll.u32 %s6719_s13, 4  ;;  %p6691_p8 = scmp.ne.s32.totalorder %s8279_s3, %s6690_s17  ;;  %s42_s14 = int_to_ptr.vmem [resolvable:$true] %s41_s14 }
  0x17   :  { %p6694_p9 = scmp.lt.u32.totalorder %s6690_s17, %s8279_s3 }
  0x19   :  { %p6696_p10 = pnand %p6694_p9, %p6691_p8 }
  0x1b   :  { %6699 = shalt.err (!%p6696_p10)
}
  0x1c   :  { %s6700_s23 = scalar_lea.vmem %s42_s14, 8192  ;;  %p6705_p12 = scmp.lt.s32.totalorder %s42_s14, %s42_s14 }
  0x1d   :  { %p6701_p11 = scmp.ne.s32.totalorder %s42_s14, %s6700_s23  ;;  %p6706_p13 = scmp.lt.s32.totalorder %s6700_s23, %s6700_s23 }
  0x1f   :  { %p6707_p0 = por %p6706_p13, %p6705_p12 }
  0x21   :  { %p6708_p1 = pnand %p6707_p0, %p6701_p11 }
  0x23   :  { %6711 = shalt.err (!%p6708_p1)
}
  0x24   :  { %47 = dma.hbm_to_vmem [thread:$0]  %s8279_s3, 8192, %s42_s14, [#allocation6], %s6717_s28, %s6717_s28, %s6718_s29  }
  0x25   :  { %6712 = dma.done.wait [#allocation4], 8192  }
  0x26   :  { %6713 = vsyncadd [#allocation4], 4294959104 }
  0x27   :  { %6714 = dma.done.wait [#allocation6], 8192  }
  0x28   :  { %6715 = vsyncadd [#allocation6], 4294959104  ;;  %v8288_v1 = vmov 0.0   ;;  %v69_v2 = vld [vmem:[%s8277_s1 + $0x8] sm:$0xff]  ;;  %v71_v4 = vld [vmem:[%s8277_s1 + $0x18] sm:$0xff]  ;;  %vm6723_vm0 = vmmov 0  }
  0x29   :  { %347 = vmatprep.mubr.f32.mxu0 %v8288_v1  ;;  %418 = vmatprep.mubr.f32.mxu1 %v8288_v1  ;;  %v73_v3 = vld [vmem:[%s8277_s1 + $0x28] sm:$0xff]  ;;  %v75_v6 = vld [vmem:[%s8277_s1 + $0x38] sm:$0xff]  ;;  %v68_v7 = vld [vmem:[%s8277_s1] sm:$0xff]  ;;  %vm4470_vm1 = vcmask 523264   ;;  %vm4556_vm2 = vcmask 261120   ;;  %vm4630_vm3 = vcmask 1024  }
  0x2a   :  { %v6822_v5 = vpack.c.bf16 %v73_v3, %v69_v2  ;;  %v72_v8 = vld [vmem:[%s8277_s1 + $0x20] sm:$0xff]  ;;  %v6833_v9 = vpack.c.bf16 %v75_v6, %v71_v4  ;;  %v70_v11 = vld [vmem:[%s8277_s1 + $0x10] sm:$0xff]  ;;  %v77_v13 = vld [vmem:[%s8277_s1 + $0x48] sm:$0xff] }
  0x2b   :  { %v6835_v10 = vpack.c.bf16 %v72_v8, %v68_v7  ;;  %v74_v12 = vld [vmem:[%s8277_s1 + $0x30] sm:$0xff]  ;;  %v81_v15 = vld [vmem:[%s8277_s1 + $0x68] sm:$0xff]  ;;  %v79_v16 = vld [vmem:[%s8277_s1 + $0x58] sm:$0xff] }
  0x2c   :  { %8466 = vst [vmem:[#allocation9_spill] sm:$0xff] %v6822_v5  ;;  %8467 = vst [vmem:[#allocation10_spill] sm:$0xff] %v6833_v9  ;;  %4795 = vmatprep.subr.bf16.mxu0 %v6822_v5  ;;  %v6847_v14 = vpack.c.bf16 %v74_v12, %v70_v11  ;;  %v83_v17 = vld [vmem:[%s8277_s1 + $0x78] sm:$0xff]  ;;  %4827 = vmatprep.subr.bf16.mxu1 %v6833_v9  ;;  %v6860_v18 = vpack.c.bf16 %v81_v15, %v77_v13  ;;  %v76_v20 = vld [vmem:[%s8277_s1 + $0x40] sm:$0xff] }
  0x2d   :  { %4797 = vmatpush1.bf16.msra.mxu0 %v6835_v10  ;;  %v6862_v19 = vpack.c.bf16 %v83_v17, %v79_v16  ;;  %v80_v21 = vld [vmem:[%s8277_s1 + $0x60] sm:$0xff]  ;;  %v78_v22 = vld [vmem:[%s8277_s1 + $0x50] sm:$0xff]  ;;  %v85_v25 = vld [vmem:[%s8277_s1 + $0x88] sm:$0xff] }
  0x2e   :  { %4829 = vmatpush1.bf16.msra.mxu1 %v6847_v14  ;;  %v6874_v23 = vpack.c.bf16 %v80_v21, %v76_v20  ;;  %v82_v24 = vld [vmem:[%s8277_s1 + $0x70] sm:$0xff]  ;;  %v89_v26 = vld [vmem:[%s8277_s1 + $0xa8] sm:$0xff]  ;;  %4799 = vmatprep.subr.bf16.mxu0 %v6860_v18  ;;  %v87_v29 = vld [vmem:[%s8277_s1 + $0x98] sm:$0xff] }
  0x2f   :  { %4831 = vmatprep.subr.bf16.mxu1 %v6862_v19  ;;  %v6887_v27 = vpack.c.bf16 %v82_v24, %v78_v22  ;;  %v6889_v28 = vpack.c.bf16 %v89_v26, %v85_v25  ;;  %v91_v30 = vld [vmem:[%s8277_s1 + $0xb8] sm:$0xff]  ;;  %v84_v31 = vld [vmem:[%s8277_s1 + $0x80] sm:$0xff]  ;;  %v86_v34 = vld [vmem:[%s8277_s1 + $0x90] sm:$0xff] }
  0x30   :  { %v6900_v32 = vpack.c.bf16 %v91_v30, %v87_v29  ;;  %v88_v33 = vld [vmem:[%s8277_s1 + $0xa0] sm:$0xff]  ;;  %v90_v35 = vld [vmem:[%s8277_s1 + $0xb0] sm:$0xff]  ;;  %v93_v37 = vld [vmem:[%s8277_s1 + $0xc8] sm:$0xff] }
  0x31   :  { %4801 = vmatpush1.bf16.msra.mxu0 %v6874_v23  ;;  %v6912_v36 = vpack.c.bf16 %v88_v33, %v84_v31  ;;  %v97_v38 = vld [vmem:[%s8277_s1 + $0xe8] sm:$0xff]  ;;  %v95_v39 = vld [vmem:[%s8277_s1 + $0xd8] sm:$0xff]  ;;  %v6925_v40 = vpack.c.bf16 %v90_v35, %v86_v34  ;;  %v92_v43 = vld [vmem:[%s8277_s1 + $0xc0] sm:$0xff] }
  0x32   :  { %4833 = vmatpush1.bf16.msra.mxu1 %v6887_v27  ;;  %4803 = vmatprep.subr.bf16.mxu0 %v6889_v28  ;;  %v6927_v41 = vpack.c.bf16 %v97_v38, %v93_v37  ;;  %v99_v42 = vld [vmem:[%s8277_s1 + $0xf8] sm:$0xff]  ;;  %v96_v44 = vld [vmem:[%s8277_s1 + $0xe0] sm:$0xff]  ;;  %v94_v46 = vld [vmem:[%s8277_s1 + $0xd0] sm:$0xff] }
  0x33   :  { %8468 = vst [vmem:[#allocation11_spill] sm:$0xff] %v6925_v40  ;;  %4835 = vmatprep.subr.bf16.mxu1 %v6900_v32  ;;  %v6939_v45 = vpack.c.bf16 %v99_v42, %v95_v39  ;;  %v98_v47 = vld [vmem:[%s8277_s1 + $0xf0] sm:$0xff]  ;;  %v101_v48 = vld [vmem:[%s8277_s1 + $0x108] sm:$0xff]  ;;  %v103_v50 = vld [vmem:[%s8277_s1 + $0x118] sm:$0xff]  ;;  %v6960_v52 = vpack.c.bf16 %v96_v44, %v92_v43 }
  0x34   :  { %8469 = vst [vmem:[#allocation12_spill] sm:$0xff] %v6927_v41  ;;  %v105_v49 = vld [vmem:[%s8277_s1 + $0x128] sm:$0xff]  ;;  %v107_v51 = vld [vmem:[%s8277_s1 + $0x138] sm:$0xff]  ;;  %v6964_v53 = vpack.c.bf16 %v98_v47, %v94_v46  ;;  %v100_v55 = vld [vmem:[%s8277_s1 + $0x100] sm:$0xff] }
  0x35   :  { %8470 = vst [vmem:[#allocation13_spill] sm:$0xff] %v6939_v45  ;;  %4805 = vmatpush1.bf16.msra.mxu0 %v6912_v36  ;;  %8471 = vst [vmem:[#allocation14_spill] sm:$0xff] %v6960_v52  ;;  %v6966_v54 = vpack.c.bf16 %v105_v49, %v101_v48  ;;  %v104_v56 = vld [vmem:[%s8277_s1 + $0x120] sm:$0xff]  ;;  %v102_v57 = vld [vmem:[%s8277_s1 + $0x110] sm:$0xff]  ;;  %v6978_v58 = vpack.c.bf16 %v107_v51, %v103_v50 }
  0x36   :  { %4837 = vmatpush1.bf16.msra.mxu1 %v6925_v40  ;;  %4807 = vmatprep.subr.bf16.mxu0 %v6927_v41  ;;  %8472 = vst [vmem:[#allocation15_spill] sm:$0xff] %v6964_v53  ;;  %v106_v59 = vld [vmem:[%s8277_s1 + $0x130] sm:$0xff]  ;;  %v109_v60 = vld [vmem:[%s8277_s1 + $0x148] sm:$0xff]  ;;  %v111_v62 = vld [vmem:[%s8277_s1 + $0x158] sm:$0xff]  ;;  %v6996_v0 = vpack.c.bf16 %v104_v56, %v100_v55 }
  0x37   :  { %8473 = vst [vmem:[#allocation16_spill] sm:$0xff] %v6966_v54  ;;  %4839 = vmatprep.subr.bf16.mxu1 %v6939_v45  ;;  %8474 = vst [vmem:[#allocation17_spill] sm:$0xff] %v6978_v58  ;;  %v113_v61 = vld [vmem:[%s8277_s1 + $0x168] sm:$0xff]  ;;  %v115_v63 = vld [vmem:[%s8277_s1 + $0x178] sm:$0xff]  ;;  %v7000_v2 = vpack.c.bf16 %v106_v59, %v102_v57 }
  0x38   :  { %8475 = vst [vmem:[#allocation18_spill] sm:$0xff] %v6996_v0  ;;  %v7002_v3 = vpack.c.bf16 %v113_v61, %v109_v60  ;;  %v108_v4 = vld [vmem:[%s8277_s1 + $0x140] sm:$0xff]  ;;  %v110_v7 = vld [vmem:[%s8277_s1 + $0x150] sm:$0xff]  ;;  %v7014_v8 = vpack.c.bf16 %v115_v63, %v111_v62  ;;  %v117_v12 = vld [vmem:[%s8277_s1 + $0x188] sm:$0xff] }
  0x39   :  { %4809 = vmatpush1.bf16.msra.mxu0 %v6960_v52  ;;  %8476 = vst [vmem:[#allocation19_spill] sm:$0xff] %v7000_v2  ;;  %v112_v6 = vld [vmem:[%s8277_s1 + $0x160] sm:$0xff]  ;;  %v114_v11 = vld [vmem:[%s8277_s1 + $0x170] sm:$0xff]  ;;  %v121_v13 = vld [vmem:[%s8277_s1 + $0x1a8] sm:$0xff] }
  0x3a   :  { %4841 = vmatpush1.bf16.msra.mxu1 %v6964_v53  ;;  %4811 = vmatprep.subr.bf16.mxu0 %v6966_v54  ;;  %8477 = vst [vmem:[#allocation20_spill] sm:$0xff] %v7002_v3  ;;  %8478 = vst [vmem:[#allocation21_spill] sm:$0xff] %v7014_v8  ;;  %v119_v15 = vld [vmem:[%s8277_s1 + $0x198] sm:$0xff]  ;;  %v7032_v17 = vpack.c.bf16 %v112_v6, %v108_v4  ;;  %v7036_v20 = vpack.c.bf16 %v114_v11, %v110_v7  ;;  %v116_v22 = vld [vmem:[%s8277_s1 + $0x180] sm:$0xff] }
  0x3b   :  { %4843 = vmatprep.subr.bf16.mxu1 %v6978_v58  ;;  %v123_v16 = vld [vmem:[%s8277_s1 + $0x1b8] sm:$0xff]  ;;  %v7038_v21 = vpack.c.bf16 %v121_v13, %v117_v12  ;;  %v120_v24 = vld [vmem:[%s8277_s1 + $0x1a0] sm:$0xff]  ;;  %v118_v25 = vld [vmem:[%s8277_s1 + $0x190] sm:$0xff] }
  0x3c   :  { %8479 = vst [vmem:[#allocation22_spill] sm:$0xff] %v7032_v17  ;;  %8480 = vst [vmem:[#allocation23_spill] sm:$0xff] %v7036_v20  ;;  %v7050_v26 = vpack.c.bf16 %v123_v16, %v119_v15  ;;  %v122_v29 = vld [vmem:[%s8277_s1 + $0x1b0] sm:$0xff]  ;;  %v125_v30 = vld [vmem:[%s8277_s1 + $0x1c8] sm:$0xff]  ;;  %v7068_v35 = vpack.c.bf16 %v120_v24, %v116_v22 }
  0x3d   :  { %4813 = vmatpush1.bf16.msra.mxu0 %v6996_v0  ;;  %8481 = vst [vmem:[#allocation24_spill] sm:$0xff] %v7038_v21  ;;  %v129_v31 = vld [vmem:[%s8277_s1 + $0x1e8] sm:$0xff]  ;;  %v127_v33 = vld [vmem:[%s8277_s1 + $0x1d8] sm:$0xff]  ;;  %v7072_v37 = vpack.c.bf16 %v122_v29, %v118_v25  ;;  %v124_v39 = vld [vmem:[%s8277_s1 + $0x1c0] sm:$0xff] }
  0x3e   :  { %4845 = vmatpush1.bf16.msra.mxu1 %v7000_v2  ;;  %4815 = vmatprep.subr.bf16.mxu0 %v7002_v3  ;;  %8482 = vst [vmem:[#allocation25_spill] sm:$0xff] %v7050_v26  ;;  %v131_v34 = vld [vmem:[%s8277_s1 + $0x1f8] sm:$0xff]  ;;  %8483 = vst [vmem:[#allocation26_spill] sm:$0xff] %v7068_v35  ;;  %v7074_v38 = vpack.c.bf16 %v129_v31, %v125_v30  ;;  %v128_v42 = vld [vmem:[%s8277_s1 + $0x1e0] sm:$0xff] }
  0x3f   :  { %4847 = vmatprep.subr.bf16.mxu1 %v7014_v8  ;;  %8484 = vst [vmem:[#allocation27_spill] sm:$0xff] %v7072_v37  ;;  %v126_v43 = vld [vmem:[%s8277_s1 + $0x1d0] sm:$0xff]  ;;  %v7086_v44 = vpack.c.bf16 %v131_v34, %v127_v33  ;;  %v199_v49 = vld [vmem:[#allocation5 + $0x18] sm:$0xff]  ;;  %v7092_v51 = vpack.c.bf16 %v128_v42, %v124_v39  ;;  %v196_v57 = vld [vmem:[#allocation5] sm:$0xff] }
  0x40   :  { %8485 = vst [vmem:[#allocation28_spill] sm:$0xff] %v7074_v38  ;;  %v130_v46 = vld [vmem:[%s8277_s1 + $0x1f0] sm:$0xff]  ;;  %v203_v50 = vld [vmem:[#allocation5 + $0x38] sm:$0xff]  ;;  %v200_v59 = vld [vmem:[#allocation5 + $0x20] sm:$0xff] }
  0x41   :  { %4817 = vmatpush1.bf16.msra.mxu0 %v7032_v17  ;;  %8486 = vst [vmem:[#allocation29_spill] sm:$0xff] %v7086_v44  ;;  %v197_v47 = vld [vmem:[#allocation5 + $0x8] sm:$0xff]  ;;  %8487 = vst [vmem:[#allocation30_spill] sm:$0xff] %v7092_v51  ;;  %v7096_v55 = vpack.c.bf16 %v130_v46, %v126_v43  ;;  %v198_v60 = vld [vmem:[#allocation5 + $0x10] sm:$0xff]  ;;  %v7101_v61 = vpack.c.bf16 %v203_v50, %v199_v49  ;;  %v7104_v11 = vpack.c.bf16 %v200_v59, %v196_v57 }
  0x42   :  { %4849 = vmatpush1.bf16.msra.mxu1 %v7036_v20  ;;  %4819 = vmatprep.subr.bf16.mxu0 %v7038_v21  ;;  %v201_v48 = vld [vmem:[#allocation5 + $0x28] sm:$0xff]  ;;  %v202_v62 = vld [vmem:[#allocation5 + $0x30] sm:$0xff]  ;;  %v207_v6 = vld [vmem:[#allocation5 + $0x58] sm:$0xff] }
  0x43   :  { %4851 = vmatprep.subr.bf16.mxu1 %v7050_v26  ;;  %8488 = vst [vmem:[#allocation31_spill] sm:$0xff] %v7096_v55  ;;  %v7098_v56 = vpack.c.bf16 %v201_v48, %v197_v47  ;;  %8490 = vst [vmem:[#allocation33_spill] sm:$0xff] %v7101_v61  ;;  %v205_v63 = vld [vmem:[#allocation5 + $0x48] sm:$0xff]  ;;  %v211_v7 = vld [vmem:[#allocation5 + $0x78] sm:$0xff]  ;;  %v7108_v12 = vpack.c.bf16 %v202_v62, %v198_v60 }
  0x44   :  { %v209_v4 = vld [vmem:[#allocation5 + $0x68] sm:$0xff]  ;;  %8491 = vst [vmem:[#allocation34_spill] sm:$0xff] %v7104_v11  ;;  %v204_v15 = vld [vmem:[#allocation5 + $0x40] sm:$0xff]  ;;  %v206_v22 = vld [vmem:[#allocation5 + $0x50] sm:$0xff]  ;;  %v7113_v24 = vpack.c.bf16 %v211_v7, %v207_v6 }
  0x45   :  { %4821 = vmatpush1.bf16.msra.mxu0 %v7068_v35  ;;  %8489 = vst [vmem:[#allocation32_spill] sm:$0xff] %v7098_v56  ;;  %8492 = vst [vmem:[#allocation35_spill] sm:$0xff] %v7108_v12  ;;  %v7110_v13 = vpack.c.bf16 %v209_v4, %v205_v63  ;;  %v208_v16 = vld [vmem:[#allocation5 + $0x60] sm:$0xff]  ;;  %v210_v25 = vld [vmem:[#allocation5 + $0x70] sm:$0xff] }
  0x46   :  { %4853 = vmatpush1.bf16.msra.mxu1 %v7072_v37  ;;  %4823 = vmatprep.subr.bf16.mxu0 %v7074_v38  ;;  %8494 = vst [vmem:[#allocation37_spill] sm:$0xff] %v7113_v24  ;;  %v213_v29 = vld [vmem:[#allocation5 + $0x88] sm:$0xff]  ;;  %v215_v31 = vld [vmem:[#allocation5 + $0x98] sm:$0xff]  ;;  %v7118_v34 = vpack.c.bf16 %v208_v16, %v204_v15  ;;  %v7122_v39 = vpack.c.bf16 %v210_v25, %v206_v22  ;;  %v212_v43 = vld [vmem:[#allocation5 + $0x80] sm:$0xff] }
  0x47   :  { %4855 = vmatprep.subr.bf16.mxu1 %v7086_v44  ;;  %8493 = vst [vmem:[#allocation36_spill] sm:$0xff] %v7110_v13  ;;  %v217_v30 = vld [vmem:[#allocation5 + $0xa8] sm:$0xff]  ;;  %v219_v33 = vld [vmem:[#allocation5 + $0xb8] sm:$0xff]  ;;  %v216_v46 = vld [vmem:[#allocation5 + $0xa0] sm:$0xff] }
  0x48   :  { %8495 = vst [vmem:[#allocation38_spill] sm:$0xff] %v7118_v34  ;;  %8496 = vst [vmem:[#allocation39_spill] sm:$0xff] %v7122_v39  ;;  %v7124_v42 = vpack.c.bf16 %v217_v30, %v213_v29  ;;  %v7127_v47 = vpack.c.bf16 %v219_v33, %v215_v31  ;;  %v214_v48 = vld [vmem:[#allocation5 + $0x90] sm:$0xff]  ;;  %v7132_v50 = vpack.c.bf16 %v216_v46, %v212_v43  ;;  %v221_v59 = vld [vmem:[#allocation5 + $0xc8] sm:$0xff] }
  0x49   :  { %4825 = vmatpush1.bf16.msra.mxu0 %v7092_v51  ;;  %v218_v49 = vld [vmem:[#allocation5 + $0xb0] sm:$0xff]  ;;  %v225_v60 = vld [vmem:[#allocation5 + $0xe8] sm:$0xff]  ;;  %v223_v62 = vld [vmem:[#allocation5 + $0xd8] sm:$0xff] }
  0x4a   :  { %4857 = vmatpush1.bf16.msra.mxu1 %v7096_v55  ;;  %4859 = vmatprep.subr.bf16.mxu0 %v7098_v56  ;;  %8497 = vst [vmem:[#allocation40_spill] sm:$0xff] %v7124_v42  ;;  %8498 = vst [vmem:[#allocation41_spill] sm:$0xff] %v7127_v47  ;;  %v7136_v57 = vpack.c.bf16 %v218_v49, %v214_v48  ;;  %v7141_v63 = vpack.c.bf16 %v225_v60, %v221_v59  ;;  %v227_v4 = vld [vmem:[#allocation5 + $0xf8] sm:$0xff]  ;;  %v220_v6 = vld [vmem:[#allocation5 + $0xc0] sm:$0xff] }
  0x4b   :  { %4891 = vmatprep.subr.bf16.mxu1 %v7101_v61  ;;  %8499 = vst [vmem:[#allocation42_spill] sm:$0xff] %v7132_v50  ;;  %v224_v7 = vld [vmem:[#allocation5 + $0xe0] sm:$0xff]  ;;  %v7143_v15 = vpack.c.bf16 %v227_v4, %v223_v62  ;;  %v222_v22 = vld [vmem:[#allocation5 + $0xd0] sm:$0xff]  ;;  %v229_v30 = vld [vmem:[#allocation5 + $0x108] sm:$0xff] }
  0x4c   :  { %348 = vmatmul.mubr.f32.vlgmr.msra.gmra.mrb[0].mxu0 %v8288_v1  ;;  %8500 = vst [vmem:[#allocation43_spill] sm:$0xff] %v7136_v57  ;;  %8501 = vst [vmem:[#allocation44_spill] sm:$0xff] %v7141_v63  ;;  %v7145_v16 = vpack.c.bf16 %v224_v7, %v220_v6  ;;  %v226_v25 = vld [vmem:[#allocation5 + $0xf0] sm:$0xff]  ;;  %v233_v31 = vld [vmem:[#allocation5 + $0x128] sm:$0xff] }
  0x4d   :  { %419 = vmatmul.mubr.f32.vlgmr.msra.gmra.mrb[0].mxu1 %v8288_v1  ;;  %4861 = vmatpush1.bf16.msra.mxu0 %v7104_v11  ;;  %8502 = vst [vmem:[#allocation45_spill] sm:$0xff] %v7143_v15  ;;  %v7148_v29 = vpack.c.bf16 %v226_v25, %v222_v22  ;;  %v231_v33 = vld [vmem:[#allocation5 + $0x118] sm:$0xff]  ;;  %v7153_v43 = vpack.c.bf16 %v233_v31, %v229_v30  ;;  %v228_v48 = vld [vmem:[#allocation5 + $0x100] sm:$0xff]  ;;  %v230_v62 = vld [vmem:[#allocation5 + $0x110] sm:$0xff] }
  0x4e   :  { %4893 = vmatpush1.bf16.msra.mxu1 %v7108_v12  ;;  %4863 = vmatprep.subr.bf16.mxu0 %v7110_v13  ;;  %8503 = vst [vmem:[#allocation46_spill] sm:$0xff] %v7145_v16  ;;  %v235_v46 = vld [vmem:[#allocation5 + $0x138] sm:$0xff]  ;;  %v232_v49 = vld [vmem:[#allocation5 + $0x120] sm:$0xff]  ;;  %v234_v4 = vld [vmem:[#allocation5 + $0x130] sm:$0xff] }
  0x4f   :  { %4895 = vmatprep.subr.bf16.mxu1 %v7113_v24  ;;  %543 = vmatprep.mubr.f32.mxu0 %v8288_v1  ;;  %8504 = vst [vmem:[#allocation47_spill] sm:$0xff] %v7148_v29  ;;  %8505 = vst [vmem:[#allocation48_spill] sm:$0xff] %v7153_v43  ;;  %v7155_v59 = vpack.c.bf16 %v235_v46, %v231_v33  ;;  %v7157_v60 = vpack.c.bf16 %v232_v49, %v228_v48  ;;  %v237_v7 = vld [vmem:[#allocation5 + $0x148] sm:$0xff]  ;;  %v239_v25 = vld [vmem:[#allocation5 + $0x158] sm:$0xff] }
  0x50   :  { %614 = vmatprep.mubr.f32.mxu1 %v8288_v1  ;;  %v7160_v6 = vpack.c.bf16 %v234_v4, %v230_v62  ;;  %v241_v22 = vld [vmem:[#allocation5 + $0x168] sm:$0xff]  ;;  %v243_v31 = vld [vmem:[#allocation5 + $0x178] sm:$0xff]  ;;  %v236_v33 = vld [vmem:[#allocation5 + $0x140] sm:$0xff] }
  0x51   :  { %4865 = vmatpush1.bf16.msra.mxu0 %v7118_v34  ;;  %8506 = vst [vmem:[#allocation49_spill] sm:$0xff] %v7155_v59  ;;  %8507 = vst [vmem:[#allocation50_spill] sm:$0xff] %v7157_v60  ;;  %v7165_v30 = vpack.c.bf16 %v241_v22, %v237_v7  ;;  %v240_v46 = vld [vmem:[#allocation5 + $0x160] sm:$0xff]  ;;  %v7167_v48 = vpack.c.bf16 %v243_v31, %v239_v25  ;;  %v238_v62 = vld [vmem:[#allocation5 + $0x150] sm:$0xff] }
  0x52   :  { %4897 = vmatpush1.bf16.msra.mxu1 %v7122_v39  ;;  %4867 = vmatprep.subr.bf16.mxu0 %v7124_v42  ;;  %8508 = vst [vmem:[#allocation51_spill] sm:$0xff] %v7160_v6  ;;  %v7169_v49 = vpack.c.bf16 %v240_v46, %v236_v33  ;;  %v242_v4 = vld [vmem:[#allocation5 + $0x170] sm:$0xff]  ;;  %v249_v7 = vld [vmem:[#allocation5 + $0x1a8] sm:$0xff]  ;;  %v247_v22 = vld [vmem:[#allocation5 + $0x198] sm:$0xff] }
  0x53   :  { %4899 = vmatprep.subr.bf16.mxu1 %v7127_v47  ;;  %8509 = vst [vmem:[#allocation52_spill] sm:$0xff] %v7165_v30  ;;  %8510 = vst [vmem:[#allocation53_spill] sm:$0xff] %v7167_v48  ;;  %v7172_v1 = vpack.c.bf16 %v242_v4, %v238_v62  ;;  %v251_v25 = vld [vmem:[#allocation5 + $0x1b8] sm:$0xff]  ;;  %v244_v31 = vld [vmem:[#allocation5 + $0x180] sm:$0xff] }
  0x54   :  { %8511 = vst [vmem:[#allocation54_spill] sm:$0xff] %v7169_v49  ;;  %v248_v33 = vld [vmem:[#allocation5 + $0x1a0] sm:$0xff]  ;;  %v7179_v46 = vpack.c.bf16 %v251_v25, %v247_v22  ;;  %v246_v62 = vld [vmem:[#allocation5 + $0x190] sm:$0xff]  ;;  %v259_v22 = vld [vmem:[#allocation5 + $0x1f8] sm:$0xff] }
  0x55   :  { %4869 = vmatpush1.bf16.msra.mxu0 %v7132_v50  ;;  %8512 = vst [vmem:[#allocation55_spill] sm:$0xff] %v7172_v1  ;;  %v250_v4 = vld [vmem:[#allocation5 + $0x1b0] sm:$0xff]  ;;  %v252_v25 = vld [vmem:[#allocation5 + $0x1c0] sm:$0xff] }
  0x56   :  { %4901 = vmatpush1.bf16.msra.mxu1 %v7136_v57  ;;  %4871 = vmatprep.subr.bf16.mxu0 %v7141_v63  ;;  %8514 = vst [vmem:[#allocation57_spill] sm:$0xff] %v7179_v46  ;;  %v191_v63 = vld [vmem:[#allocation3 + $0x1d8] sm:$0xff]  ;;  %v194_v57 = vld [vmem:[#allocation3 + $0x1f0] sm:$0xff] }
  0x57   :  { %4903 = vmatprep.subr.bf16.mxu1 %v7143_v15  ;;  %v193_v15 = vld [vmem:[#allocation3 + $0x1e8] sm:$0xff] }
  0x59   :  { %4873 = vmatpush1.bf16.msra.mxu0 %v7145_v16  ;;  %v179_v16 = vld [vmem:[#allocation3 + $0x178] sm:$0xff] }
  0x5a   :  { %4905 = vmatpush1.bf16.msra.mxu1 %v7148_v29  ;;  %4875 = vmatprep.subr.bf16.mxu0 %v7153_v43  ;;  %v177_v29 = vld [vmem:[#allocation3 + $0x168] sm:$0xff] }
  0x5b   :  { %4907 = vmatprep.subr.bf16.mxu1 %v7155_v59  ;;  %v7181_v59 = vpack.c.bf16 %v248_v33, %v244_v31  ;;  %v256_v31 = vld [vmem:[#allocation5 + $0x1e0] sm:$0xff] }
  0x5d   :  { %4877 = vmatpush1.bf16.msra.mxu0 %v7157_v60  ;;  %8515 = vst [vmem:[#allocation58_spill] sm:$0xff] %v7181_v59 }
  0x5e   :  { %4909 = vmatpush1.bf16.msra.mxu1 %v7160_v6  ;;  %4879 = vmatprep.subr.bf16.mxu0 %v7165_v30  ;;  %v245_v6 = vld [vmem:[#allocation5 + $0x188] sm:$0xff]  ;;  %v7193_v30 = vpack.c.bf16 %v256_v31, %v252_v25  ;;  %v136_v25 = vld [vmem:[#allocation3 + $0x20] sm:$0xff] }
  0x5f   :  { %4911 = vmatprep.subr.bf16.mxu1 %v7167_v48  ;;  %v7177_v60 = vpack.c.bf16 %v249_v7, %v245_v6  ;;  %v7184_v48 = vpack.c.bf16 %v250_v4, %v246_v62  ;;  %v257_v6 = vld [vmem:[#allocation5 + $0x1e8] sm:$0xff]  ;;  %v255_v7 = vld [vmem:[#allocation5 + $0x1d8] sm:$0xff]  ;;  %v254_v62 = vld [vmem:[#allocation5 + $0x1d0] sm:$0xff] }
  0x60   :  { %v7191_v33 = vpack.c.bf16 %v259_v22, %v255_v7  ;;  %8519 = vst [vmem:[#allocation62_spill] sm:$0xff] %v7193_v30  ;;  %v258_v4 = vld [vmem:[#allocation5 + $0x1f0] sm:$0xff]  ;;  %v139_v7 = vld [vmem:[#allocation3 + $0x38] sm:$0xff]  ;;  %v132_v22 = vld [vmem:[#allocation3] sm:$0xff] }
  0x61   :  { %4881 = vmatpush1.bf16.msra.mxu0 %v7169_v49  ;;  %8513 = vst [vmem:[#allocation56_spill] sm:$0xff] %v7177_v60  ;;  %8516 = vst [vmem:[#allocation59_spill] sm:$0xff] %v7184_v48 }
  0x62   :  { %4913 = vmatpush1.bf16.msra.mxu1 %v7172_v1  ;;  %4883 = vmatprep.subr.bf16.mxu0 %v7177_v60  ;;  %v253_v1 = vld [vmem:[#allocation5 + $0x1c8] sm:$0xff]  ;;  %8518 = vst [vmem:[#allocation61_spill] sm:$0xff] %v7191_v33  ;;  %v7205_v60 = vpack.c.bf16 %v136_v25, %v132_v22  ;;  %v140_v22 = vld [vmem:[#allocation3 + $0x40] sm:$0xff] }
  0x63   :  { %4915 = vmatprep.subr.bf16.mxu1 %v7179_v46  ;;  %v7189_v49 = vpack.c.bf16 %v257_v6, %v253_v1  ;;  %v7196_v46 = vpack.c.bf16 %v258_v4, %v254_v62  ;;  %v137_v1 = vld [vmem:[#allocation3 + $0x28] sm:$0xff]  ;;  %v135_v6 = vld [vmem:[#allocation3 + $0x18] sm:$0xff]  ;;  %v134_v62 = vld [vmem:[#allocation3 + $0x10] sm:$0xff] }
  0x64   :  { %v7203_v31 = vpack.c.bf16 %v139_v7, %v135_v6  ;;  %8523 = vst [vmem:[#allocation66_spill] sm:$0xff] %v7205_v60  ;;  %v138_v4 = vld [vmem:[#allocation3 + $0x30] sm:$0xff]  ;;  %v147_v7 = vld [vmem:[#allocation3 + $0x78] sm:$0xff]  ;;  %v144_v25 = vld [vmem:[#allocation3 + $0x60] sm:$0xff] }
  0x65   :  { %4885 = vmatpush1.bf16.msra.mxu0 %v7181_v59  ;;  %8517 = vst [vmem:[#allocation60_spill] sm:$0xff] %v7189_v49  ;;  %8520 = vst [vmem:[#allocation63_spill] sm:$0xff] %v7196_v46 }
  0x66   :  { %4917 = vmatpush1.bf16.msra.mxu1 %v7184_v48  ;;  %4887 = vmatprep.subr.bf16.mxu0 %v7189_v49  ;;  %v133_v48 = vld [vmem:[#allocation3 + $0x8] sm:$0xff]  ;;  %8522 = vst [vmem:[#allocation65_spill] sm:$0xff] %v7203_v31 }
  0x67   :  { %4919 = vmatprep.subr.bf16.mxu1 %v7191_v33  ;;  %v7201_v59 = vpack.c.bf16 %v137_v1, %v133_v48  ;;  %v8524_v33 = vmov 0.0   ;;  %v141_v48 = vld [vmem:[#allocation3 + $0x48] sm:$0xff] }
  0x68   :  { %v145_v1 = vld [vmem:[#allocation3 + $0x68] sm:$0xff] }
  0x69   :  { %4889 = vmatpush1.bf16.msra.mxu0 %v7193_v30  ;;  %8521 = vst [vmem:[#allocation64_spill] sm:$0xff] %v7201_v59  ;;  %v7209_v30 = vpack.c.bf16 %v138_v4, %v134_v62  ;;  %v7215_v6 = vpack.c.bf16 %v145_v1, %v141_v48  ;;  %v7219_v62 = vpack.c.bf16 %v144_v25, %v140_v22  ;;  %v142_v4 = vld [vmem:[#allocation3 + $0x50] sm:$0xff]  ;;  %v149_v48 = vld [vmem:[#allocation3 + $0x88] sm:$0xff]  ;;  %v148_v22 = vld [vmem:[#allocation3 + $0x80] sm:$0xff] }
  0x6a   :  { %4921 = vmatpush1.bf16.msra.mxu1 %v7196_v46  ;;  %4923 = vmatprep.subr.bf16.mxu0 %v7201_v59  ;;  %v143_v46 = vld [vmem:[#allocation3 + $0x58] sm:$0xff]  ;;  %v153_v1 = vld [vmem:[#allocation3 + $0xa8] sm:$0xff]  ;;  %v152_v25 = vld [vmem:[#allocation3 + $0xa0] sm:$0xff] }
  0x6b   :  { %8525 = vst [vmem:[#allocation67_spill] sm:$0xff] %v7209_v30  ;;  %4955 = vmatprep.subr.bf16.mxu1 %v7203_v31  ;;  %8526 = vst [vmem:[#allocation68_spill] sm:$0xff] %v7215_v6  ;;  %v7217_v59 = vpack.c.bf16 %v147_v7, %v143_v46  ;;  %v146_v31 = vld [vmem:[#allocation3 + $0x70] sm:$0xff]  ;;  %v7229_v46 = vpack.c.bf16 %v153_v1, %v149_v48  ;;  %v155_v7 = vld [vmem:[#allocation3 + $0xb8] sm:$0xff]  ;;  %v7233_v43 = vpack.c.bf16 %v152_v25, %v148_v22 }
  0x6c   :  { %544 = vmatmul.mubr.f32.vlgmr.msra.gmra.mrb[2].mxu0 %v8524_v33  ;;  %8528 = vst [vmem:[#allocation70_spill] sm:$0xff] %v7219_v62  ;;  %v156_v1 = vld [vmem:[#allocation3 + $0xc0] sm:$0xff] }
  0x6d   :  { %615 = vmatmul.mubr.f32.vlgmr.msra.gmra.mrb[2].mxu1 %v8524_v33  ;;  %4925 = vmatpush1.bf16.msra.mxu0 %v7205_v60  ;;  %8527 = vst [vmem:[#allocation69_spill] sm:$0xff] %v7217_v59  ;;  %v7224_v60 = vpack.c.bf16 %v146_v31, %v142_v4  ;;  %8530 = vst [vmem:[#allocation72_spill] sm:$0xff] %v7229_v46  ;;  %v150_v31 = vld [vmem:[#allocation3 + $0x90] sm:$0xff] }
  0x6e   :  { %4957 = vmatpush1.bf16.msra.mxu1 %v7209_v30  ;;  %685 = vmatprep.mubr.f32.mxu0 %v8524_v33  ;;  %v151_v30 = vld [vmem:[#allocation3 + $0x98] sm:$0xff]  ;;  %8532 = vst [vmem:[#allocation74_spill] sm:$0xff] %v7233_v43  ;;  %v154_v4 = vld [vmem:[#allocation3 + $0xb0] sm:$0xff] }
  0x6f   :  { %756 = vmatprep.mubr.f32.mxu1 %v8524_v33  ;;  %4927 = vmatprep.subr.bf16.mxu0 %v7215_v6  ;;  %8529 = vst [vmem:[#allocation71_spill] sm:$0xff] %v7224_v60  ;;  %v7231_v49 = vpack.c.bf16 %v155_v7, %v151_v30  ;;  %v161_v6 = vld [vmem:[#allocation3 + $0xe8] sm:$0xff]  ;;  %v163_v30 = vld [vmem:[#allocation3 + $0xf8] sm:$0xff]  ;;  %v160_v7 = vld [vmem:[#allocation3 + $0xe0] sm:$0xff] }
  0x70   :  { %4959 = vmatprep.subr.bf16.mxu1 %v7217_v59  ;;  %v7236_v59 = vpack.c.bf16 %v154_v4, %v150_v31  ;;  %v7245_v25 = vpack.c.bf16 %v160_v7, %v156_v1  ;;  %v158_v31 = vld [vmem:[#allocation3 + $0xd0] sm:$0xff] }
  0x71   :  { %4929 = vmatpush1.bf16.msra.mxu0 %v7219_v62  ;;  %8531 = vst [vmem:[#allocation73_spill] sm:$0xff] %v7231_v49  ;;  %v157_v62 = vld [vmem:[#allocation3 + $0xc8] sm:$0xff]  ;;  %v162_v4 = vld [vmem:[#allocation3 + $0xf0] sm:$0xff] }
  0x72   :  { %4961 = vmatpush1.bf16.msra.mxu1 %v7224_v60  ;;  %4931 = vmatprep.subr.bf16.mxu0 %v7229_v46  ;;  %8533 = vst [vmem:[#allocation75_spill] sm:$0xff] %v7236_v59  ;;  %v159_v60 = vld [vmem:[#allocation3 + $0xd8] sm:$0xff]  ;;  %v7241_v48 = vpack.c.bf16 %v161_v6, %v157_v62  ;;  %8536 = vst [vmem:[#allocation78_spill] sm:$0xff] %v7245_v25  ;;  %v169_v46 = vld [vmem:[#allocation3 + $0x128] sm:$0xff] }
  0x73   :  { %4963 = vmatprep.subr.bf16.mxu1 %v7231_v49  ;;  %v7243_v22 = vpack.c.bf16 %v163_v30, %v159_v60  ;;  %v7248_v49 = vpack.c.bf16 %v162_v4, %v158_v31  ;;  %v171_v60 = vld [vmem:[#allocation3 + $0x138] sm:$0xff]  ;;  %v164_v62 = vld [vmem:[#allocation3 + $0x100] sm:$0xff]  ;;  %v166_v31 = vld [vmem:[#allocation3 + $0x110] sm:$0xff] }
  0x74   :  { %8534 = vst [vmem:[#allocation76_spill] sm:$0xff] %v7241_v48  ;;  %v168_v30 = vld [vmem:[#allocation3 + $0x120] sm:$0xff]  ;;  %v170_v4 = vld [vmem:[#allocation3 + $0x130] sm:$0xff] }
  0x75   :  { %4933 = vmatpush1.bf16.msra.mxu0 %v7233_v43  ;;  %8535 = vst [vmem:[#allocation77_spill] sm:$0xff] %v7243_v22  ;;  %8537 = vst [vmem:[#allocation79_spill] sm:$0xff] %v7248_v49  ;;  %v165_v43 = vld [vmem:[#allocation3 + $0x108] sm:$0xff]  ;;  %v7257_v7 = vpack.c.bf16 %v168_v30, %v164_v62  ;;  %v174_v62 = vld [vmem:[#allocation3 + $0x150] sm:$0xff] }
  0x76   :  { %4965 = vmatpush1.bf16.msra.mxu1 %v7236_v59  ;;  %4935 = vmatprep.subr.bf16.mxu0 %v7241_v48  ;;  %v167_v59 = vld [vmem:[#allocation3 + $0x118] sm:$0xff]  ;;  %v7253_v6 = vpack.c.bf16 %v169_v46, %v165_v43  ;;  %v173_v48 = vld [vmem:[#allocation3 + $0x148] sm:$0xff] }
  0x77   :  { %4967 = vmatprep.subr.bf16.mxu1 %v7243_v22  ;;  %v7255_v1 = vpack.c.bf16 %v171_v60, %v167_v59  ;;  %8540 = vst [vmem:[#allocation82_spill] sm:$0xff] %v7257_v7  ;;  %v7260_v22 = vpack.c.bf16 %v170_v4, %v166_v31  ;;  %v7263_v43 = vpack.c.bf16 %v177_v29, %v173_v48  ;;  %v172_v59 = vld [vmem:[#allocation3 + $0x140] sm:$0xff]  ;;  %v178_v31 = vld [vmem:[#allocation3 + $0x170] sm:$0xff]  ;;  %v181_v4 = vld [vmem:[#allocation3 + $0x188] sm:$0xff] }
  0x78   :  { %8538 = vst [vmem:[#allocation80_spill] sm:$0xff] %v7253_v6  ;;  %v176_v60 = vld [vmem:[#allocation3 + $0x160] sm:$0xff]  ;;  %v7273_v29 = vpack.c.bf16 %v178_v31, %v174_v62  ;;  %v183_v48 = vld [vmem:[#allocation3 + $0x198] sm:$0xff] }
  0x79   :  { %4937 = vmatpush1.bf16.msra.mxu0 %v7245_v25  ;;  %8539 = vst [vmem:[#allocation81_spill] sm:$0xff] %v7255_v1  ;;  %8541 = vst [vmem:[#allocation83_spill] sm:$0xff] %v7260_v22  ;;  %v175_v25 = vld [vmem:[#allocation3 + $0x158] sm:$0xff]  ;;  %v7269_v30 = vpack.c.bf16 %v176_v60, %v172_v59  ;;  %v186_v59 = vld [vmem:[#allocation3 + $0x1b0] sm:$0xff] }
  0x7a   :  { %4969 = vmatpush1.bf16.msra.mxu1 %v7248_v49  ;;  %4939 = vmatprep.subr.bf16.mxu0 %v7253_v6  ;;  %8542 = vst [vmem:[#allocation84_spill] sm:$0xff] %v7263_v43  ;;  %v7265_v46 = vpack.c.bf16 %v179_v16, %v175_v25  ;;  %v185_v6 = vld [vmem:[#allocation3 + $0x1a8] sm:$0xff]  ;;  %v187_v25 = vld [vmem:[#allocation3 + $0x1b8] sm:$0xff]  ;;  %v188_v31 = vld [vmem:[#allocation3 + $0x1c0] sm:$0xff] }
  0x7b   :  { %4971 = vmatprep.subr.bf16.mxu1 %v7255_v1  ;;  %8544 = vst [vmem:[#allocation86_spill] sm:$0xff] %v7269_v30  ;;  %v7275_v16 = vpack.c.bf16 %v185_v6, %v181_v4  ;;  %v180_v1 = vld [vmem:[#allocation3 + $0x180] sm:$0xff]  ;;  %v7277_v49 = vpack.c.bf16 %v187_v25, %v183_v48  ;;  %v189_v60 = vld [vmem:[#allocation3 + $0x1c8] sm:$0xff]  ;;  %v195_v6 = vld [vmem:[#allocation3 + $0x1f8] sm:$0xff] }
  0x7c   :  { %8543 = vst [vmem:[#allocation85_spill] sm:$0xff] %v7265_v46  ;;  %v7287_v4 = vpack.c.bf16 %v193_v15, %v189_v60  ;;  %v7289_v48 = vpack.c.bf16 %v195_v6, %v191_v63  ;;  %v192_v25 = vld [vmem:[#allocation3 + $0x1e0] sm:$0xff]  ;;  %v262_v63 = vlaneseq  ;;  %v6721_v15 = vmov 1983009808  }
  0x7d   :  { %4941 = vmatpush1.bf16.msra.mxu0 %v7257_v7  ;;  %8545 = vst [vmem:[#allocation87_spill] sm:$0xff] %v7275_v16  ;;  %8546 = vst [vmem:[#allocation88_spill] sm:$0xff] %v7277_v49  ;;  %v184_v7 = vld [vmem:[#allocation3 + $0x1a0] sm:$0xff] }
  0x7e   :  { %4973 = vmatpush1.bf16.msra.mxu1 %v7260_v22  ;;  %4943 = vmatprep.subr.bf16.mxu0 %v7263_v43  ;;  %v182_v22 = vld [vmem:[#allocation3 + $0x190] sm:$0xff]  ;;  %8549 = vst [vmem:[#allocation91_spill] sm:$0xff] %v7287_v4  ;;  %8550 = vst [vmem:[#allocation92_spill] sm:$0xff] %v7289_v48 }
  0x7f   :  { %4975 = vmatprep.subr.bf16.mxu1 %v7265_v46  ;;  %v7281_v46 = vpack.c.bf16 %v184_v7, %v180_v1  ;;  %v7283_v62 = vpack.c.bf16 %v186_v59, %v182_v22  ;;  %v190_v43 = vld [vmem:[#allocation3 + $0x1d0] sm:$0xff]  ;;  %v7293_v1 = vpack.c.bf16 %v192_v25, %v188_v31  ;;  %v432_v7 = vunpack.c.l.s4 %v6721_v15  ;;  %v282_v15 = vld [vmem:[%s8276_s0] sm:$0xff] }
  0x80   :  { %v7295_v22 = vpack.c.bf16 %v194_v57, %v190_v43  ;;  %v7303_v59 = vshrl.u32 %v262_v63, 7 }
  0x81   :  { %4945 = vmatpush1.bf16.msra.mxu0 %v7269_v30  ;;  %8547 = vst [vmem:[#allocation89_spill] sm:$0xff] %v7281_v46  ;;  %8548 = vst [vmem:[#allocation90_spill] sm:$0xff] %v7283_v62  ;;  %v433_v60 = vunpack.c.0.s8 %v432_v7 }
  0x82   :  { %4977 = vmatpush1.bf16.msra.mxu1 %v7273_v29  ;;  %4947 = vmatprep.subr.bf16.mxu0 %v7275_v16  ;;  %8551 = vst [vmem:[#allocation93_spill] sm:$0xff] %v7293_v1  ;;  %8552 = vst [vmem:[#allocation94_spill] sm:$0xff] %v7295_v22 }
  0x83   :  { %4979 = vmatprep.subr.bf16.mxu1 %v7277_v49  ;;  %v7306_v43 = vsub.s32 %v433_v60, %v7303_v59 }
  0x85   :  { %4949 = vmatpush1.bf16.msra.mxu0 %v7281_v46 }
  0x86   :  { %4981 = vmatpush1.bf16.msra.mxu1 %v7283_v62  ;;  %4951 = vmatprep.subr.bf16.mxu0 %v7287_v4 }
  0x87   :  { %4983 = vmatprep.subr.bf16.mxu1 %v7289_v48 }
  0x89   :  { %4953 = vmatpush1.bf16.msra.mxu0 %v7293_v1 }
  0x8a   :  { %4985 = vmatpush1.bf16.msra.mxu1 %v7295_v22  ;;  %4987 = vmatprep.subr.bf16.mxu0 %v6822_v5 }
  0x8b   :  { %5019 = vmatprep.subr.bf16.mxu1 %v6833_v9 }
 0x11f   :  { %v349_v57 = vpop.f32.mrb[0].mxu0 }
 0x120   :  { %v420_v6 = vpop.f32.mrb[0].mxu1  ;;  %v351_v31 = vpop.f32.mrb[1].mxu0 }
 0x121   :  { %v429_v25 = vcombine.low %v349_v57, %v351_v31  ;;  %v422_v1 = vpop.f32.mrb[1].mxu1 }
 0x122   :  { %v430_v48 = vcombine.low %v420_v6, %v422_v1 }
 0x123   :  { %v437_v22 = vrot.slane %v429_v25, %v7306_v43 }
 0x124   :  { %v444_v5 = vrot.slane %v430_v48, %v7306_v43 }
 0x126   :  { %v445_v63 = vcombine.low %v437_v22, %v444_v5 }
 0x128   :  { %v447_v9 = vadd.f32 %v445_v63, %v282_v15 }
 0x12a   :  { %v4638_v7 = vmul.f32 -1.442695, %v447_v9  ;;  %v455_v4 = vrot.slane %v447_v9, 2  ;;  %v466_v62 = vrot.slane %v447_v9, 6  ;;  %v463_v31 = vrot.slane %v447_v9, 4 }
 0x12c   :  { %6412 = vpow2.f32 %v4638_v7  ;;  %v4639_v60 = vmul.f32 -1.442695, %v455_v4  ;;  %v4640_v46 = vmul.f32 -1.442695, %v466_v62 }
 0x12e   :  { %6414 = vpow2.f32 %v4639_v60 }
 0x12f   :  { %6416 = vpow2.f32 %v4640_v46  ;;  %v8554_v46 = vld [vmem:[#allocation44_spill] sm:$0xff] }
 0x136   :  { %v6413_v57 = vpop.eup %6412 }
 0x137   :  { %v451_v1 = vadd.f32 1.0, %v6413_v57  ;;  %v8555_v57 = vld [vmem:[#allocation45_spill] sm:$0xff] }
 0x138   :  { %v6415_v6 = vpop.eup %6414 }
 0x139   :  { %6418 = vrcp.f32 %v451_v1  ;;  %v460_v48 = vadd.f32 1.0, %v6415_v6  ;;  %v6417_v25 = vpop.eup %6416  ;;  %v8557_v1 = vld [vmem:[#allocation47_spill] sm:$0xff]  ;;  %v8558_v6 = vld [vmem:[#allocation48_spill] sm:$0xff] }
 0x13a   :  { %6420 = vtanh.f32 %v463_v31  ;;  %v471_v15 = vadd.f32 1.0, %v6417_v25  ;;  %v8556_v31 = vld [vmem:[#allocation46_spill] sm:$0xff] }
 0x13b   :  { %6422 = vrcp.f32 %v460_v48  ;;  %v8559_v48 = vld [vmem:[#allocation49_spill] sm:$0xff]  ;;  %v8560_v25 = vld [vmem:[#allocation50_spill] sm:$0xff] }
 0x13c   :  { %6424 = vrcp.f32 %v471_v15  ;;  %v8563_v15 = vld [vmem:[#allocation53_spill] sm:$0xff] }
 0x143   :  { %v6419_v49 = vpop.eup %6418 }
 0x144   :  { %v6421_v5 = vpop.eup %6420 }
 0x145   :  { %v6423_v22 = vpop.eup %6422  ;;  %v475_v7 = vmul.f32 %v6421_v5, %v6419_v49  ;;  %v8553_v49 = vld [vmem:[#allocation43_spill] sm:$0xff] }
 0x146   :  { %v474_v63 = vmul.f32 0.0, %v6423_v22  ;;  %v6425_v9 = vpop.eup %6424  ;;  %v8561_v5 = vld [vmem:[#allocation51_spill] sm:$0xff]  ;;  %v8562_v22 = vld [vmem:[#allocation52_spill] sm:$0xff] }
 0x148   :  { %v7313_v4 = vadd.f32 %v475_v7, %v474_v63  ;;  %v8564_v63 = vld [vmem:[#allocation54_spill] sm:$0xff]  ;;  %v8565_v7 = vld [vmem:[#allocation55_spill] sm:$0xff] }
 0x14a   :  { %6426 = vtanh.f32 %v7313_v4 }
 0x154   :  { %v6427_v62 = vpop.eup %6426 }
 0x155   :  { %v478_v60 = vmul.f32 %v6427_v62, %v6425_v9  ;;  %v8566_v9 = vld [vmem:[#allocation56_spill] sm:$0xff]  ;;  %v8567_v62 = vld [vmem:[#allocation57_spill] sm:$0xff] }
 0x157   :  { %686 = vmatmul.mubr.f32.vlgmr.msra.gmra.mrb[2].mxu0 %v478_v60  ;;  %757 = vmatmul.mubr.f32.vlgmr.msra.gmra.mrb[2].mxu1 %v478_v60 }
 0x158   :  { %4989 = vmatpush1.bf16.msra.mxu0 %v6835_v10  ;;  %5021 = vmatpush1.bf16.msra.mxu1 %v6847_v14 }
 0x159   :  { %4991 = vmatprep.subr.bf16.mxu0 %v6860_v18  ;;  %5023 = vmatprep.subr.bf16.mxu1 %v6862_v19 }
 0x15a   :  { %857 = vmatprep.mubr.f32.mxu0 %v8524_v33  ;;  %928 = vmatprep.mubr.f32.mxu1 %v8524_v33 }
 0x15c   :  { %4993 = vmatpush1.bf16.msra.mxu0 %v6874_v23  ;;  %5025 = vmatpush1.bf16.msra.mxu1 %v6887_v27 }
 0x15d   :  { %4995 = vmatprep.subr.bf16.mxu0 %v6889_v28  ;;  %5027 = vmatprep.subr.bf16.mxu1 %v6900_v32 }
 0x160   :  { %4997 = vmatpush1.bf16.msra.mxu0 %v6912_v36  ;;  %5029 = vmatpush1.bf16.msra.mxu1 %v6925_v40 }
 0x161   :  { %4999 = vmatprep.subr.bf16.mxu0 %v6927_v41  ;;  %5031 = vmatprep.subr.bf16.mxu1 %v6939_v45 }
 0x164   :  { %5001 = vmatpush1.bf16.msra.mxu0 %v6960_v52  ;;  %5033 = vmatpush1.bf16.msra.mxu1 %v6964_v53 }
 0x165   :  { %5003 = vmatprep.subr.bf16.mxu0 %v6966_v54  ;;  %5035 = vmatprep.subr.bf16.mxu1 %v6978_v58 }
 0x168   :  { %5005 = vmatpush1.bf16.msra.mxu0 %v6996_v0  ;;  %5037 = vmatpush1.bf16.msra.mxu1 %v7000_v2 }
 0x169   :  { %5007 = vmatprep.subr.bf16.mxu0 %v7002_v3  ;;  %5039 = vmatprep.subr.bf16.mxu1 %v7014_v8 }
 0x16c   :  { %5009 = vmatpush1.bf16.msra.mxu0 %v7032_v17  ;;  %5041 = vmatpush1.bf16.msra.mxu1 %v7036_v20 }
 0x16d   :  { %5011 = vmatprep.subr.bf16.mxu0 %v7038_v21  ;;  %5043 = vmatprep.subr.bf16.mxu1 %v7050_v26 }
 0x170   :  { %5013 = vmatpush1.bf16.msra.mxu0 %v7068_v35  ;;  %5045 = vmatpush1.bf16.msra.mxu1 %v7072_v37 }
 0x171   :  { %5015 = vmatprep.subr.bf16.mxu0 %v7074_v38  ;;  %5047 = vmatprep.subr.bf16.mxu1 %v7086_v44 }
 0x174   :  { %5017 = vmatpush1.bf16.msra.mxu0 %v7092_v51  ;;  %5049 = vmatpush1.bf16.msra.mxu1 %v7096_v55 }
 0x175   :  { %5051 = vmatprep.subr.bf16.mxu0 %v7098_v56  ;;  %5083 = vmatprep.subr.bf16.mxu1 %v7101_v61 }
 0x177   :  { %858 = vmatmul.mubr.f32.vlgmr.msra.gmra.mrb[4].mxu0 %v478_v60  ;;  %929 = vmatmul.mubr.f32.vlgmr.msra.gmra.mrb[4].mxu1 %v478_v60  ;;  %v8568_v60 = vld [vmem:[#allocation58_spill] sm:$0xff] }
 0x178   :  { %5053 = vmatpush1.bf16.msra.mxu0 %v7104_v11  ;;  %5085 = vmatpush1.bf16.msra.mxu1 %v7108_v12 }
 0x179   :  { %5055 = vmatprep.subr.bf16.mxu0 %v7110_v13  ;;  %5087 = vmatprep.subr.bf16.mxu1 %v7113_v24 }
 0x17a   :  { %1053 = vmatprep.mubr.f32.mxu0 %v8524_v33  ;;  %1124 = vmatprep.mubr.f32.mxu1 %v8524_v33 }
 0x17c   :  { %5057 = vmatpush1.bf16.msra.mxu0 %v7118_v34  ;;  %5089 = vmatpush1.bf16.msra.mxu1 %v7122_v39 }
 0x17d   :  { %5059 = vmatprep.subr.bf16.mxu0 %v7124_v42  ;;  %5091 = vmatprep.subr.bf16.mxu1 %v7127_v47 }
 0x180   :  { %5061 = vmatpush1.bf16.msra.mxu0 %v7132_v50  ;;  %5093 = vmatpush1.bf16.msra.mxu1 %v8553_v49 }
 0x181   :  { %5063 = vmatprep.subr.bf16.mxu0 %v8554_v46  ;;  %5095 = vmatprep.subr.bf16.mxu1 %v8555_v57 }
 0x184   :  { %5065 = vmatpush1.bf16.msra.mxu0 %v8556_v31  ;;  %5097 = vmatpush1.bf16.msra.mxu1 %v8557_v1 }
 0x185   :  { %5067 = vmatprep.subr.bf16.mxu0 %v8558_v6  ;;  %5099 = vmatprep.subr.bf16.mxu1 %v8559_v48  ;;  %v8569_v6 = vld [vmem:[#allocation59_spill] sm:$0xff]  ;;  %v8570_v48 = vld [vmem:[#allocation60_spill] sm:$0xff] }
 0x188   :  { %5069 = vmatpush1.bf16.msra.mxu0 %v8560_v25  ;;  %5101 = vmatpush1.bf16.msra.mxu1 %v8561_v5  ;;  %v8571_v25 = vld [vmem:[#allocation61_spill] sm:$0xff]  ;;  %v8572_v5 = vld [vmem:[#allocation62_spill] sm:$0xff] }
 0x189   :  { %5071 = vmatprep.subr.bf16.mxu0 %v8562_v22  ;;  %5103 = vmatprep.subr.bf16.mxu1 %v8563_v15  ;;  %v8573_v22 = vld [vmem:[#allocation63_spill] sm:$0xff]  ;;  %v8574_v15 = vld [vmem:[#allocation64_spill] sm:$0xff] }
 0x18c   :  { %5073 = vmatpush1.bf16.msra.mxu0 %v8564_v63  ;;  %5105 = vmatpush1.bf16.msra.mxu1 %v8565_v7  ;;  %v8575_v63 = vld [vmem:[#allocation65_spill] sm:$0xff] }
 0x18d   :  { %5075 = vmatprep.subr.bf16.mxu0 %v8566_v9  ;;  %5107 = vmatprep.subr.bf16.mxu1 %v8567_v62  ;;  %v264_v9 = vsub.s32 0, %v7303_v59 }
 0x190   :  { %5077 = vmatpush1.bf16.msra.mxu0 %v8568_v60  ;;  %5109 = vmatpush1.bf16.msra.mxu1 %v8569_v6  ;;  %v260_v60 = vld [vmem:[%s8280_s4] sm:$0xf]  ;;  %v268_v6 = vsub.s32 1, %v7303_v59 }
 0x191   :  { %5079 = vmatprep.subr.bf16.mxu0 %v8570_v48  ;;  %5111 = vmatprep.subr.bf16.mxu1 %v8571_v25  ;;  %v7389_v62 = vrot.slane %v260_v60, %v264_v9  ;;  %v272_v9 = vsub.s32 2, %v7303_v59 }
 0x192   :  { %v7391_v48 = vrot.slane %v260_v60, %v268_v6 }
 0x193   :  { %8576 = vst [vmem:[#allocation95_spill] sm:$0xff] %v7389_v62  ;;  %v7400_v49 = vrot.slane %v260_v60, %v272_v9 }
 0x194   :  { %5081 = vmatpush1.bf16.msra.mxu0 %v8572_v5  ;;  %5113 = vmatpush1.bf16.msra.mxu1 %v8573_v22  ;;  %v276_v22 = vsub.s32 3, %v7303_v59 }
 0x195   :  { %5115 = vmatprep.subr.bf16.mxu0 %v8574_v15  ;;  %5147 = vmatprep.subr.bf16.mxu1 %v8575_v63  ;;  %8577 = vst [vmem:[#allocation96_spill] sm:$0xff] %v7400_v49 }
 0x196   :  { %v7396_v46 = vrot.slane %v260_v60, %v276_v22 }
 0x22a   :  { %v687_v25 = vpop.f32.mrb[2].mxu0  ;;  %v758_v5 = vpop.f32.mrb[2].mxu1 }
 0x22b   :  { %v763_v15 = vadd.f32 %v687_v25, %v7389_v62  ;;  %v689_v7 = vpop.f32.mrb[3].mxu0  ;;  %v760_v63 = vpop.f32.mrb[3].mxu1  ;;  %v765_v47 = vadd.f32 %v758_v5, %v7400_v49 }
 0x22c   :  { %v764_v1 = vadd.f32 %v689_v7, %v7391_v48  ;;  %v766_v6 = vadd.f32 %v760_v63, %v7396_v46 }
 0x22d   :  { %v4641_v31 = vmul.f32 -1.442695, %v763_v15 }
 0x22e   :  { %v4642_v57 = vmul.f32 -1.442695, %v764_v1  ;;  %v4643_v50 = vmul.f32 -1.442695, %v766_v6 }
 0x22f   :  { %6428 = vpow2.f32 %v4641_v31 }
 0x230   :  { %6430 = vpow2.f32 %v4642_v57 }
 0x231   :  { %6432 = vpow2.f32 %v4643_v50 }
 0x232   :  { %6434 = vtanh.f32 %v765_v47 }
 0x239   :  { %v6429_v25 = vpop.eup %6428 }
 0x23a   :  { %v6431_v62 = vpop.eup %6430  ;;  %v770_v42 = vadd.f32 1.0, %v6429_v25  ;;  %v4644_v25 = vld [vmem:[%s8276_s0 + $0x8] sm:$0xff] }
 0x23b   :  { %v776_v15 = vadd.f32 1.0, %v6431_v62  ;;  %v6433_v1 = vpop.eup %6432 }
 0x23c   :  { %6436 = vrcp.f32 %v770_v42  ;;  %v6435_v31 = vpop.eup %6434  ;;  %v783_v7 = vadd.f32 1.0, %v6433_v1 }
 0x23d   :  { %6438 = vrcp.f32 %v776_v15 }
 0x23e   :  { %6440 = vrcp.f32 %v783_v7 }
 0x246   :  { %v6437_v22 = vpop.eup %6436 }
 0x247   :  { %v6439_v59 = vpop.eup %6438  ;;  %v787_v57 = vmul.f32 %v6437_v22, %v6435_v31 }
 0x248   :  { %v786_v63 = vmul.f32 0.0, %v6439_v59  ;;  %v6441_v59 = vpop.eup %6440 }
 0x24a   :  { %v7403_v60 = vadd.f32 %v787_v57, %v786_v63  ;;  %v859_v9 = vpop.f32.mrb[4].mxu0  ;;  %v930_v6 = vpop.f32.mrb[4].mxu1 }
 0x24b   :  { %v861_v5 = vpop.f32.mrb[5].mxu0  ;;  %v932_v49 = vpop.f32.mrb[5].mxu1 }
 0x24c   :  { %6442 = vtanh.f32 %v7403_v60  ;;  %v939_v47 = vcombine.low %v859_v9, %v861_v5  ;;  %v940_v50 = vcombine.low %v930_v6, %v932_v49  ;;  %v8578_v9 = vld [vmem:[#allocation66_spill] sm:$0xff]  ;;  %v8579_v6 = vld [vmem:[#allocation67_spill] sm:$0xff]  ;;  %v8580_v5 = vld [vmem:[#allocation68_spill] sm:$0xff] }
 0x24e   :  { %v947_v42 = vrot.slane %v939_v47, %v7306_v43  ;;  %v954_v62 = vrot.slane %v940_v50, %v7306_v43  ;;  %v8581_v47 = vld [vmem:[#allocation69_spill] sm:$0xff] }
 0x250   :  { %v955_v15 = vcombine.low %v947_v42, %v954_v62  ;;  %v8582_v42 = vld [vmem:[#allocation70_spill] sm:$0xff]  ;;  %v8583_v62 = vld [vmem:[#allocation71_spill] sm:$0xff] }
 0x252   :  { %v957_v1 = vadd.f32 %v4644_v25, %v955_v15  ;;  %v8584_v25 = vld [vmem:[#allocation72_spill] sm:$0xff]  ;;  %v8585_v15 = vld [vmem:[#allocation73_spill] sm:$0xff] }
 0x254   :  { %v4645_v31 = vmul.f32 -1.442695, %v957_v1  ;;  %v965_v22 = vrot.slane %v957_v1, 2  ;;  %v976_v49 = vrot.slane %v957_v1, 6 }
 0x256   :  { %v6443_v57 = vpop.eup %6442  ;;  %6444 = vpow2.f32 %v4645_v31  ;;  %v4646_v7 = vmul.f32 -1.442695, %v965_v22  ;;  %v4647_v50 = vmul.f32 -1.442695, %v976_v49  ;;  %v973_v22 = vrot.slane %v957_v1, 4  ;;  %v8588_v49 = vld [vmem:[#allocation76_spill] sm:$0xff] }
 0x257   :  { %v790_v63 = vmul.f32 %v6443_v57, %v6441_v59  ;;  %v8592_v1 = vld [vmem:[#allocation80_spill] sm:$0xff] }
 0x258   :  { %6446 = vpow2.f32 %v4646_v7  ;;  %v8586_v7 = vld [vmem:[#allocation74_spill] sm:$0xff] }
 0x259   :  { %1054 = vmatmul.mubr.f32.vlgmr.msra.gmra.mrb[6].mxu0 %v790_v63  ;;  %1125 = vmatmul.mubr.f32.vlgmr.msra.gmra.mrb[6].mxu1 %v790_v63  ;;  %6448 = vpow2.f32 %v4647_v50  ;;  %v8587_v63 = vld [vmem:[#allocation75_spill] sm:$0xff]  ;;  %v8594_v50 = vld [vmem:[#allocation82_spill] sm:$0xff] }
 0x25a   :  { %5117 = vmatpush1.bf16.msra.mxu0 %v8578_v9  ;;  %5149 = vmatpush1.bf16.msra.mxu1 %v8579_v6 }
 0x25b   :  { %5119 = vmatprep.subr.bf16.mxu0 %v8580_v5  ;;  %5151 = vmatprep.subr.bf16.mxu1 %v8581_v47 }
 0x25c   :  { %1195 = vmatprep.mubr.f32.mxu0 %v8524_v33  ;;  %1266 = vmatprep.mubr.f32.mxu1 %v8524_v33 }
 0x25e   :  { %5121 = vmatpush1.bf16.msra.mxu0 %v8582_v42  ;;  %5153 = vmatpush1.bf16.msra.mxu1 %v8583_v62  ;;  %v8589_v42 = vld [vmem:[#allocation77_spill] sm:$0xff] }
 0x25f   :  { %5123 = vmatprep.subr.bf16.mxu0 %v8584_v25  ;;  %5155 = vmatprep.subr.bf16.mxu1 %v8585_v15  ;;  %v8590_v25 = vld [vmem:[#allocation78_spill] sm:$0xff]  ;;  %v8591_v15 = vld [vmem:[#allocation79_spill] sm:$0xff] }
 0x260   :  { %v6445_v31 = vpop.eup %6444 }
 0x261   :  { %v961_v59 = vadd.f32 1.0, %v6445_v31  ;;  %v8593_v31 = vld [vmem:[#allocation81_spill] sm:$0xff] }
 0x262   :  { %v6447_v57 = vpop.eup %6446  ;;  %5125 = vmatpush1.bf16.msra.mxu0 %v8586_v7  ;;  %5157 = vmatpush1.bf16.msra.mxu1 %v8587_v63  ;;  %v8595_v7 = vld [vmem:[#allocation83_spill] sm:$0xff] }
 0x263   :  { %6450 = vrcp.f32 %v961_v59  ;;  %v970_v47 = vadd.f32 1.0, %v6447_v57  ;;  %5127 = vmatprep.subr.bf16.mxu0 %v8588_v49  ;;  %5159 = vmatprep.subr.bf16.mxu1 %v8589_v42  ;;  %v8596_v59 = vld [vmem:[#allocation84_spill] sm:$0xff]  ;;  %v8597_v57 = vld [vmem:[#allocation85_spill] sm:$0xff]  ;;  %v6449_v49 = vpop.eup %6448 }
 0x264   :  { %6452 = vtanh.f32 %v973_v22 }
 0x265   :  { %6454 = vrcp.f32 %v970_v47 }
 0x266   :  { %5129 = vmatpush1.bf16.msra.mxu0 %v8590_v25  ;;  %5161 = vmatpush1.bf16.msra.mxu1 %v8591_v15  ;;  %v981_v15 = vadd.f32 1.0, %v6449_v49  ;;  %v8601_v25 = vld [vmem:[#allocation91_spill] sm:$0xff]  ;;  %v8603_v49 = vld [vmem:[#allocation93_spill] sm:$0xff] }
 0x267   :  { %5131 = vmatprep.subr.bf16.mxu0 %v8592_v1  ;;  %5163 = vmatprep.subr.bf16.mxu1 %v8593_v31  ;;  %v8598_v31 = vld [vmem:[#allocation88_spill] sm:$0xff]  ;;  %v8599_v1 = vld [vmem:[#allocation89_spill] sm:$0xff] }
 0x268   :  { %6456 = vrcp.f32 %v981_v15  ;;  %v8607_v15 = vld [vmem:[#allocation40_spill] sm:$0xff] }
 0x26a   :  { %5133 = vmatpush1.bf16.msra.mxu0 %v8594_v50  ;;  %5165 = vmatpush1.bf16.msra.mxu1 %v8595_v7 }
 0x26b   :  { %5135 = vmatprep.subr.bf16.mxu0 %v8596_v59  ;;  %5167 = vmatprep.subr.bf16.mxu1 %v8597_v57  ;;  %v8600_v59 = vld [vmem:[#allocation90_spill] sm:$0xff] }
 0x26d   :  { %v6451_v42 = vpop.eup %6450 }
 0x26e   :  { %v6453_v22 = vpop.eup %6452  ;;  %5137 = vmatpush1.bf16.msra.mxu0 %v7269_v30  ;;  %5169 = vmatpush1.bf16.msra.mxu1 %v7273_v29  ;;  %v8602_v30 = vld [vmem:[#allocation92_spill] sm:$0xff] }
 0x26f   :  { %v6455_v47 = vpop.eup %6454  ;;  %5139 = vmatprep.subr.bf16.mxu0 %v7275_v16  ;;  %5171 = vmatprep.subr.bf16.mxu1 %v8598_v31  ;;  %v985_v7 = vmul.f32 %v6453_v22, %v6451_v42  ;;  %v8604_v16 = vld [vmem:[#allocation94_spill] sm:$0xff]  ;;  %v8605_v31 = vld [vmem:[#allocation9_spill] sm:$0xff] }
 0x270   :  { %v984_v50 = vmul.f32 %v6455_v47, %v7313_v4  ;;  %v8606_v4 = vld [vmem:[#allocation10_spill] sm:$0xff] }
 0x272   :  { %5141 = vmatpush1.bf16.msra.mxu0 %v8599_v1  ;;  %5173 = vmatpush1.bf16.msra.mxu1 %v8600_v59  ;;  %v7440_v57 = vadd.f32 %v985_v7, %v984_v50  ;;  %v6457_v42 = vpop.eup %6456  ;;  %v8608_v7 = vld [vmem:[#allocation41_spill] sm:$0xff]  ;;  %v8609_v50 = vld [vmem:[#allocation42_spill] sm:$0xff] }
 0x273   :  { %5143 = vmatprep.subr.bf16.mxu0 %v8601_v25  ;;  %5175 = vmatprep.subr.bf16.mxu1 %v8602_v30 }
 0x274   :  { %6458 = vtanh.f32 %v7440_v57 }
 0x276   :  { %5145 = vmatpush1.bf16.msra.mxu0 %v8603_v49  ;;  %5177 = vmatpush1.bf16.msra.mxu1 %v8604_v16 }
 0x277   :  { %5179 = vmatprep.subr.bf16.mxu0 %v8605_v31  ;;  %5211 = vmatprep.subr.bf16.mxu1 %v8606_v4 }
 0x27e   :  { %v6459_v22 = vpop.eup %6458 }
 0x27f   :  { %v988_v47 = vmul.f32 %v6459_v22, %v6457_v42  ;;  %v8610_v42 = vld [vmem:[#allocation43_spill] sm:$0xff]  ;;  %v8611_v22 = vld [vmem:[#allocation44_spill] sm:$0xff] }
 0x281   :  { %1196 = vmatmul.mubr.f32.vlgmr.msra.gmra.mrb[6].mxu0 %v988_v47  ;;  %1267 = vmatmul.mubr.f32.vlgmr.msra.gmra.mrb[6].mxu1 %v988_v47 }
 0x282   :  { %5181 = vmatpush1.bf16.msra.mxu0 %v6835_v10  ;;  %5213 = vmatpush1.bf16.msra.mxu1 %v6847_v14 }
 0x283   :  { %5183 = vmatprep.subr.bf16.mxu0 %v6860_v18  ;;  %5215 = vmatprep.subr.bf16.mxu1 %v6862_v19 }
 0x284   :  { %1367 = vmatprep.mubr.f32.mxu0 %v8524_v33  ;;  %1438 = vmatprep.mubr.f32.mxu1 %v8524_v33 }
 0x286   :  { %5185 = vmatpush1.bf16.msra.mxu0 %v6874_v23  ;;  %5217 = vmatpush1.bf16.msra.mxu1 %v6887_v27 }
 0x287   :  { %5187 = vmatprep.subr.bf16.mxu0 %v6889_v28  ;;  %5219 = vmatprep.subr.bf16.mxu1 %v6900_v32 }
 0x28a   :  { %5189 = vmatpush1.bf16.msra.mxu0 %v6912_v36  ;;  %5221 = vmatpush1.bf16.msra.mxu1 %v6925_v40 }
 0x28b   :  { %5191 = vmatprep.subr.bf16.mxu0 %v6927_v41  ;;  %5223 = vmatprep.subr.bf16.mxu1 %v6939_v45 }
 0x28e   :  { %5193 = vmatpush1.bf16.msra.mxu0 %v6960_v52  ;;  %5225 = vmatpush1.bf16.msra.mxu1 %v6964_v53 }
 0x28f   :  { %5195 = vmatprep.subr.bf16.mxu0 %v6966_v54  ;;  %5227 = vmatprep.subr.bf16.mxu1 %v6978_v58 }
 0x292   :  { %5197 = vmatpush1.bf16.msra.mxu0 %v6996_v0  ;;  %5229 = vmatpush1.bf16.msra.mxu1 %v7000_v2 }
 0x293   :  { %5199 = vmatprep.subr.bf16.mxu0 %v7002_v3  ;;  %5231 = vmatprep.subr.bf16.mxu1 %v7014_v8 }
 0x296   :  { %5201 = vmatpush1.bf16.msra.mxu0 %v7032_v17  ;;  %5233 = vmatpush1.bf16.msra.mxu1 %v7036_v20 }
 0x297   :  { %5203 = vmatprep.subr.bf16.mxu0 %v7038_v21  ;;  %5235 = vmatprep.subr.bf16.mxu1 %v7050_v26 }
 0x29a   :  { %5205 = vmatpush1.bf16.msra.mxu0 %v7068_v35  ;;  %5237 = vmatpush1.bf16.msra.mxu1 %v7072_v37 }
 0x29b   :  { %5207 = vmatprep.subr.bf16.mxu0 %v7074_v38  ;;  %5239 = vmatprep.subr.bf16.mxu1 %v7086_v44 }
 0x29e   :  { %5209 = vmatpush1.bf16.msra.mxu0 %v7092_v51  ;;  %5241 = vmatpush1.bf16.msra.mxu1 %v7096_v55 }
 0x29f   :  { %5243 = vmatprep.subr.bf16.mxu0 %v7098_v56  ;;  %5275 = vmatprep.subr.bf16.mxu1 %v7101_v61 }
 0x2a1   :  { %1368 = vmatmul.mubr.f32.vlgmr.msra.gmra.mrb[8].mxu0 %v988_v47  ;;  %1439 = vmatmul.mubr.f32.vlgmr.msra.gmra.mrb[8].mxu1 %v988_v47  ;;  %v8612_v47 = vld [vmem:[#allocation45_spill] sm:$0xff] }
 0x2a2   :  { %5245 = vmatpush1.bf16.msra.mxu0 %v7104_v11  ;;  %5277 = vmatpush1.bf16.msra.mxu1 %v7108_v12  ;;  %v8615_v12 = vld [vmem:[#allocation48_spill] sm:$0xff]  ;;  %v8633_v11 = vld [vmem:[#allocation95_spill] sm:$0xff] }
 0x2a3   :  { %5247 = vmatprep.subr.bf16.mxu0 %v7110_v13  ;;  %5279 = vmatprep.subr.bf16.mxu1 %v7113_v24  ;;  %v8613_v24 = vld [vmem:[#allocation46_spill] sm:$0xff]  ;;  %v8614_v13 = vld [vmem:[#allocation47_spill] sm:$0xff] }
 0x2a4   :  { %1563 = vmatprep.mubr.f32.mxu0 %v8524_v33  ;;  %1634 = vmatprep.mubr.f32.mxu1 %v8524_v33 }
 0x2a6   :  { %5249 = vmatpush1.bf16.msra.mxu0 %v7118_v34  ;;  %5281 = vmatpush1.bf16.msra.mxu1 %v7122_v39  ;;  %v8616_v34 = vld [vmem:[#allocation49_spill] sm:$0xff]  ;;  %v8617_v39 = vld [vmem:[#allocation50_spill] sm:$0xff] }
 0x2a7   :  { %5251 = vmatprep.subr.bf16.mxu0 %v8607_v15  ;;  %5283 = vmatprep.subr.bf16.mxu1 %v8608_v7  ;;  %v8618_v15 = vld [vmem:[#allocation51_spill] sm:$0xff]  ;;  %v8619_v7 = vld [vmem:[#allocation52_spill] sm:$0xff] }
 0x2aa   :  { %5253 = vmatpush1.bf16.msra.mxu0 %v8609_v50  ;;  %5285 = vmatpush1.bf16.msra.mxu1 %v8610_v42  ;;  %v8620_v50 = vld [vmem:[#allocation53_spill] sm:$0xff]  ;;  %v8621_v42 = vld [vmem:[#allocation54_spill] sm:$0xff] }
 0x2ab   :  { %5255 = vmatprep.subr.bf16.mxu0 %v8611_v22  ;;  %5287 = vmatprep.subr.bf16.mxu1 %v8612_v47  ;;  %v8622_v22 = vld [vmem:[#allocation55_spill] sm:$0xff]  ;;  %v8623_v47 = vld [vmem:[#allocation56_spill] sm:$0xff] }
 0x2ae   :  { %5257 = vmatpush1.bf16.msra.mxu0 %v8613_v24  ;;  %5289 = vmatpush1.bf16.msra.mxu1 %v8614_v13  ;;  %v8624_v24 = vld [vmem:[#allocation57_spill] sm:$0xff]  ;;  %v8625_v13 = vld [vmem:[#allocation58_spill] sm:$0xff] }
 0x2af   :  { %5259 = vmatprep.subr.bf16.mxu0 %v8615_v12  ;;  %5291 = vmatprep.subr.bf16.mxu1 %v8616_v34  ;;  %v8626_v12 = vld [vmem:[#allocation59_spill] sm:$0xff]  ;;  %v8627_v34 = vld [vmem:[#allocation60_spill] sm:$0xff] }
 0x2b2   :  { %5261 = vmatpush1.bf16.msra.mxu0 %v8617_v39  ;;  %5293 = vmatpush1.bf16.msra.mxu1 %v8618_v15  ;;  %v8628_v39 = vld [vmem:[#allocation61_spill] sm:$0xff]  ;;  %v8629_v15 = vld [vmem:[#allocation62_spill] sm:$0xff] }
 0x2b3   :  { %5263 = vmatprep.subr.bf16.mxu0 %v8619_v7  ;;  %5295 = vmatprep.subr.bf16.mxu1 %v8620_v50  ;;  %v8630_v7 = vld [vmem:[#allocation63_spill] sm:$0xff]  ;;  %v8631_v50 = vld [vmem:[#allocation64_spill] sm:$0xff] }
 0x2b6   :  { %5265 = vmatpush1.bf16.msra.mxu0 %v8621_v42  ;;  %5297 = vmatpush1.bf16.msra.mxu1 %v8622_v22  ;;  %v8632_v42 = vld [vmem:[#allocation65_spill] sm:$0xff] }
 0x2b7   :  { %5267 = vmatprep.subr.bf16.mxu0 %v8623_v47  ;;  %5299 = vmatprep.subr.bf16.mxu1 %v8624_v24 }
 0x2ba   :  { %5269 = vmatpush1.bf16.msra.mxu0 %v8625_v13  ;;  %5301 = vmatpush1.bf16.msra.mxu1 %v8626_v12 }
 0x2bb   :  { %5271 = vmatprep.subr.bf16.mxu0 %v8627_v34  ;;  %5303 = vmatprep.subr.bf16.mxu1 %v8628_v39 }
 0x2be   :  { %5273 = vmatpush1.bf16.msra.mxu0 %v8629_v15  ;;  %5305 = vmatpush1.bf16.msra.mxu1 %v8630_v7  ;;  %v8634_v7 = vld [vmem:[#allocation96_spill] sm:$0xff] }
 0x2bf   :  { %5307 = vmatprep.subr.bf16.mxu0 %v8631_v50  ;;  %5339 = vmatprep.subr.bf16.mxu1 %v8632_v42 }
 0x354   :  { %v1197_v22 = vpop.f32.mrb[6].mxu0  ;;  %v1268_v47 = vpop.f32.mrb[6].mxu1 }
 0x355   :  { %v1273_v24 = vadd.f32 %v1197_v22, %v8633_v11  ;;  %v1199_v61 = vpop.f32.mrb[7].mxu0  ;;  %v1270_v13 = vpop.f32.mrb[7].mxu1  ;;  %v1275_v55 = vadd.f32 %v1268_v47, %v8634_v7 }
 0x356   :  { %v1274_v12 = vadd.f32 %v1199_v61, %v7391_v48  ;;  %v1276_v15 = vadd.f32 %v1270_v13, %v7396_v46 }
 0x357   :  { %v4648_v56 = vmul.f32 -1.442695, %v1273_v24 }
 0x358   :  { %v4649_v34 = vmul.f32 -1.442695, %v1274_v12  ;;  %v4650_v39 = vmul.f32 -1.442695, %v1276_v15 }
 0x359   :  { %6460 = vpow2.f32 %v4648_v56 }
 0x35a   :  { %6462 = vpow2.f32 %v4649_v34 }
 0x35b   :  { %6464 = vpow2.f32 %v4650_v39 }
 0x35c   :  { %6466 = vtanh.f32 %v1275_v55 }
 0x363   :  { %v6461_v50 = vpop.eup %6460 }
 0x364   :  { %v6463_v51 = vpop.eup %6462  ;;  %v1280_v42 = vadd.f32 1.0, %v6461_v50 }
 0x365   :  { %v1286_v44 = vadd.f32 1.0, %v6463_v51  ;;  %v6465_v22 = vpop.eup %6464 }
 0x366   :  { %6468 = vrcp.f32 %v1280_v42  ;;  %v6467_v11 = vpop.eup %6466  ;;  %v1293_v56 = vadd.f32 1.0, %v6465_v22 }
 0x367   :  { %6470 = vrcp.f32 %v1286_v44 }
 0x368   :  { %6472 = vrcp.f32 %v1293_v56 }
 0x370   :  { %v6469_v61 = vpop.eup %6468 }
 0x371   :  { %v6471_v24 = vpop.eup %6470  ;;  %v1297_v12 = vmul.f32 %v6469_v61, %v6467_v11  ;;  %v4651_v11 = vld [vmem:[%s8276_s0 + $0x10] sm:$0xff] }
 0x372   :  { %v1296_v34 = vmul.f32 %v6471_v24, %v7403_v60  ;;  %v6473_v24 = vpop.eup %6472 }
 0x374   :  { %v7522_v13 = vadd.f32 %v1297_v12, %v1296_v34  ;;  %v1369_v15 = vpop.f32.mrb[8].mxu0  ;;  %v1440_v47 = vpop.f32.mrb[8].mxu1 }
 0x375   :  { %v1371_v7 = vpop.f32.mrb[9].mxu0  ;;  %v1442_v50 = vpop.f32.mrb[9].mxu1 }
 0x376   :  { %v1449_v39 = vcombine.low %v1369_v15, %v1371_v7  ;;  %v1450_v55 = vcombine.low %v1440_v47, %v1442_v50  ;;  %6474 = vtanh.f32 %v7522_v13  ;;  %v8635_v15 = vld [vmem:[#allocation69_spill] sm:$0xff]  ;;  %v8636_v50 = vld [vmem:[#allocation70_spill] sm:$0xff] }
 0x378   :  { %v1457_v44 = vrot.slane %v1449_v39, %v7306_v43  ;;  %v1464_v51 = vrot.slane %v1450_v55, %v7306_v43  ;;  %v8637_v39 = vld [vmem:[#allocation72_spill] sm:$0xff]  ;;  %v8638_v55 = vld [vmem:[#allocation73_spill] sm:$0xff] }
 0x37a   :  { %v1465_v60 = vcombine.low %v1457_v44, %v1464_v51 }
 0x37c   :  { %v1467_v42 = vadd.f32 %v4651_v11, %v1465_v60 }
 0x37e   :  { %v4652_v22 = vmul.f32 -1.442695, %v1467_v42  ;;  %v1475_v61 = vrot.slane %v1467_v42, 2  ;;  %v1486_v34 = vrot.slane %v1467_v42, 6  ;;  %v1483_v51 = vrot.slane %v1467_v42, 4  ;;  %v8644_v42 = vld [vmem:[#allocation80_spill] sm:$0xff] }
 0x380   :  { %v6475_v12 = vpop.eup %6474  ;;  %6476 = vpow2.f32 %v4652_v22  ;;  %v4653_v56 = vmul.f32 -1.442695, %v1475_v61  ;;  %v4654_v47 = vmul.f32 -1.442695, %v1486_v34  ;;  %v8639_v22 = vld [vmem:[#allocation74_spill] sm:$0xff]  ;;  %v8645_v34 = vld [vmem:[#allocation81_spill] sm:$0xff] }
 0x381   :  { %v1300_v7 = vmul.f32 %v6475_v12, %v6473_v24  ;;  %v8640_v24 = vld [vmem:[#allocation76_spill] sm:$0xff]  ;;  %v8641_v12 = vld [vmem:[#allocation77_spill] sm:$0xff] }
 0x382   :  { %6478 = vpow2.f32 %v4653_v56  ;;  %v8642_v56 = vld [vmem:[#allocation78_spill] sm:$0xff] }
 0x383   :  { %1564 = vmatmul.mubr.f32.vlgmr.msra.gmra.mrb[10].mxu0 %v1300_v7  ;;  %1635 = vmatmul.mubr.f32.vlgmr.msra.gmra.mrb[10].mxu1 %v1300_v7  ;;  %6480 = vpow2.f32 %v4654_v47  ;;  %v8643_v7 = vld [vmem:[#allocation79_spill] sm:$0xff]  ;;  %v8646_v47 = vld [vmem:[#allocation82_spill] sm:$0xff] }
 0x384   :  { %5309 = vmatpush1.bf16.msra.mxu0 %v8578_v9  ;;  %5341 = vmatpush1.bf16.msra.mxu1 %v8579_v6 }
 0x385   :  { %5311 = vmatprep.subr.bf16.mxu0 %v8580_v5  ;;  %5343 = vmatprep.subr.bf16.mxu1 %v8635_v15 }
 0x386   :  { %1705 = vmatprep.mubr.f32.mxu0 %v8524_v33  ;;  %1776 = vmatprep.mubr.f32.mxu1 %v8524_v33 }
 0x388   :  { %5313 = vmatpush1.bf16.msra.mxu0 %v8636_v50  ;;  %5345 = vmatpush1.bf16.msra.mxu1 %v8583_v62 }
 0x389   :  { %5315 = vmatprep.subr.bf16.mxu0 %v8637_v39  ;;  %5347 = vmatprep.subr.bf16.mxu1 %v8638_v55 }
 0x38a   :  { %v6477_v44 = vpop.eup %6476 }
 0x38b   :  { %v1471_v11 = vadd.f32 1.0, %v6477_v44  ;;  %v8647_v44 = vld [vmem:[#allocation83_spill] sm:$0xff] }
 0x38c   :  { %v6479_v60 = vpop.eup %6478  ;;  %5317 = vmatpush1.bf16.msra.mxu0 %v8639_v22  ;;  %5349 = vmatpush1.bf16.msra.mxu1 %v8587_v63 }
 0x38d   :  { %6482 = vrcp.f32 %v1471_v11  ;;  %v1480_v61 = vadd.f32 1.0, %v6479_v60  ;;  %5319 = vmatprep.subr.bf16.mxu0 %v8640_v24  ;;  %5351 = vmatprep.subr.bf16.mxu1 %v8641_v12  ;;  %v8648_v11 = vld [vmem:[#allocation84_spill] sm:$0xff]  ;;  %v8649_v60 = vld [vmem:[#allocation85_spill] sm:$0xff]  ;;  %v6481_v24 = vpop.eup %6480 }
 0x38e   :  { %6484 = vtanh.f32 %v1483_v51 }
 0x38f   :  { %6486 = vrcp.f32 %v1480_v61  ;;  %v8650_v61 = vld [vmem:[#allocation86_spill] sm:$0xff] }
 0x390   :  { %5321 = vmatpush1.bf16.msra.mxu0 %v8642_v56  ;;  %5353 = vmatpush1.bf16.msra.mxu1 %v8643_v7  ;;  %v1491_v56 = vadd.f32 1.0, %v6481_v24 }
 0x391   :  { %5323 = vmatprep.subr.bf16.mxu0 %v8644_v42  ;;  %5355 = vmatprep.subr.bf16.mxu1 %v8645_v34  ;;  %v8651_v42 = vld [vmem:[#allocation87_spill] sm:$0xff]  ;;  %v8652_v34 = vld [vmem:[#allocation88_spill] sm:$0xff] }
 0x392   :  { %6488 = vrcp.f32 %v1491_v56  ;;  %v8653_v56 = vld [vmem:[#allocation29_spill] sm:$0xff] }
 0x394   :  { %5325 = vmatpush1.bf16.msra.mxu0 %v8646_v47  ;;  %5357 = vmatpush1.bf16.msra.mxu1 %v8647_v44 }
 0x395   :  { %5327 = vmatprep.subr.bf16.mxu0 %v8648_v11  ;;  %5359 = vmatprep.subr.bf16.mxu1 %v8649_v60 }
 0x397   :  { %v6483_v12 = vpop.eup %6482 }
 0x398   :  { %v6485_v51 = vpop.eup %6484  ;;  %5329 = vmatpush1.bf16.msra.mxu0 %v8650_v61  ;;  %5361 = vmatpush1.bf16.msra.mxu1 %v7273_v29 }
 0x399   :  { %v6487_v7 = vpop.eup %6486  ;;  %5331 = vmatprep.subr.bf16.mxu0 %v8651_v42  ;;  %5363 = vmatprep.subr.bf16.mxu1 %v8652_v34  ;;  %v1495_v44 = vmul.f32 %v6485_v51, %v6483_v12  ;;  %v8657_v51 = vld [vmem:[#allocation33_spill] sm:$0xff] }
 0x39a   :  { %v1494_v47 = vmul.f32 %v6487_v7, %v7440_v57  ;;  %v8654_v7 = vld [vmem:[#allocation30_spill] sm:$0xff] }
 0x39c   :  { %5333 = vmatpush1.bf16.msra.mxu0 %v8599_v1  ;;  %5365 = vmatpush1.bf16.msra.mxu1 %v8600_v59  ;;  %v7559_v60 = vadd.f32 %v1495_v44, %v1494_v47  ;;  %v6489_v57 = vpop.eup %6488  ;;  %v8655_v47 = vld [vmem:[#allocation31_spill] sm:$0xff]  ;;  %v8656_v44 = vld [vmem:[#allocation32_spill] sm:$0xff] }
 0x39d   :  { %5335 = vmatprep.subr.bf16.mxu0 %v8601_v25  ;;  %5367 = vmatprep.subr.bf16.mxu1 %v8602_v30 }
 0x39e   :  { %6490 = vtanh.f32 %v7559_v60 }
 0x3a0   :  { %5337 = vmatpush1.bf16.msra.mxu0 %v8603_v49  ;;  %5369 = vmatpush1.bf16.msra.mxu1 %v8604_v16 }
 0x3a1   :  { %5371 = vmatprep.subr.bf16.mxu0 %v8605_v31  ;;  %5403 = vmatprep.subr.bf16.mxu1 %v8606_v4 }
 0x3a8   :  { %v6491_v24 = vpop.eup %6490 }
 0x3a9   :  { %v1498_v12 = vmul.f32 %v6491_v24, %v6489_v57  ;;  %v8658_v57 = vld [vmem:[#allocation34_spill] sm:$0xff]  ;;  %v8659_v24 = vld [vmem:[#allocation35_spill] sm:$0xff] }
 0x3ab   :  { %1706 = vmatmul.mubr.f32.vlgmr.msra.gmra.mrb[10].mxu0 %v1498_v12  ;;  %1777 = vmatmul.mubr.f32.vlgmr.msra.gmra.mrb[10].mxu1 %v1498_v12 }
 0x3ac   :  { %5373 = vmatpush1.bf16.msra.mxu0 %v6835_v10  ;;  %5405 = vmatpush1.bf16.msra.mxu1 %v6847_v14 }
 0x3ad   :  { %5375 = vmatprep.subr.bf16.mxu0 %v6860_v18  ;;  %5407 = vmatprep.subr.bf16.mxu1 %v6862_v19 }
 0x3ae   :  { %1877 = vmatprep.mubr.f32.mxu0 %v8524_v33  ;;  %1948 = vmatprep.mubr.f32.mxu1 %v8524_v33 }
 0x3b0   :  { %5377 = vmatpush1.bf16.msra.mxu0 %v6874_v23  ;;  %5409 = vmatpush1.bf16.msra.mxu1 %v6887_v27 }
 0x3b1   :  { %5379 = vmatprep.subr.bf16.mxu0 %v6889_v28  ;;  %5411 = vmatprep.subr.bf16.mxu1 %v6900_v32 }
 0x3b4   :  { %5381 = vmatpush1.bf16.msra.mxu0 %v6912_v36  ;;  %5413 = vmatpush1.bf16.msra.mxu1 %v6925_v40 }
 0x3b5   :  { %5383 = vmatprep.subr.bf16.mxu0 %v6927_v41  ;;  %5415 = vmatprep.subr.bf16.mxu1 %v6939_v45 }
 0x3b8   :  { %5385 = vmatpush1.bf16.msra.mxu0 %v6960_v52  ;;  %5417 = vmatpush1.bf16.msra.mxu1 %v6964_v53 }
 0x3b9   :  { %5387 = vmatprep.subr.bf16.mxu0 %v6966_v54  ;;  %5419 = vmatprep.subr.bf16.mxu1 %v6978_v58 }
 0x3bc   :  { %5389 = vmatpush1.bf16.msra.mxu0 %v6996_v0  ;;  %5421 = vmatpush1.bf16.msra.mxu1 %v7000_v2 }
 0x3bd   :  { %5391 = vmatprep.subr.bf16.mxu0 %v7002_v3  ;;  %5423 = vmatprep.subr.bf16.mxu1 %v7014_v8 }
 0x3c0   :  { %5393 = vmatpush1.bf16.msra.mxu0 %v7032_v17  ;;  %5425 = vmatpush1.bf16.msra.mxu1 %v7036_v20 }
 0x3c1   :  { %5395 = vmatprep.subr.bf16.mxu0 %v7038_v21  ;;  %5427 = vmatprep.subr.bf16.mxu1 %v7050_v26  ;;  %v8690_v26 = vld [vmem:[#allocation95_spill] sm:$0xff] }
 0x3c4   :  { %5397 = vmatpush1.bf16.msra.mxu0 %v7068_v35  ;;  %5429 = vmatpush1.bf16.msra.mxu1 %v7072_v37  ;;  %v8660_v35 = vld [vmem:[#allocation36_spill] sm:$0xff]  ;;  %v8661_v37 = vld [vmem:[#allocation37_spill] sm:$0xff] }
 0x3c5   :  { %5399 = vmatprep.subr.bf16.mxu0 %v7074_v38  ;;  %5431 = vmatprep.subr.bf16.mxu1 %v8653_v56  ;;  %v8671_v56 = vld [vmem:[#allocation47_spill] sm:$0xff]  ;;  %v8672_v38 = vld [vmem:[#allocation48_spill] sm:$0xff] }
 0x3c8   :  { %5401 = vmatpush1.bf16.msra.mxu0 %v8654_v7  ;;  %5433 = vmatpush1.bf16.msra.mxu1 %v8655_v47  ;;  %v8662_v7 = vld [vmem:[#allocation38_spill] sm:$0xff]  ;;  %v8663_v47 = vld [vmem:[#allocation39_spill] sm:$0xff] }
 0x3c9   :  { %5435 = vmatprep.subr.bf16.mxu0 %v8656_v44  ;;  %5467 = vmatprep.subr.bf16.mxu1 %v8657_v51  ;;  %v8664_v44 = vld [vmem:[#allocation40_spill] sm:$0xff]  ;;  %v8665_v51 = vld [vmem:[#allocation41_spill] sm:$0xff] }
 0x3cb   :  { %1878 = vmatmul.mubr.f32.vlgmr.msra.gmra.mrb[12].mxu0 %v1498_v12  ;;  %1949 = vmatmul.mubr.f32.vlgmr.msra.gmra.mrb[12].mxu1 %v1498_v12  ;;  %v8666_v12 = vld [vmem:[#allocation42_spill] sm:$0xff] }
 0x3cc   :  { %5437 = vmatpush1.bf16.msra.mxu0 %v8658_v57  ;;  %5469 = vmatpush1.bf16.msra.mxu1 %v8659_v24  ;;  %v8667_v57 = vld [vmem:[#allocation43_spill] sm:$0xff]  ;;  %v8668_v24 = vld [vmem:[#allocation44_spill] sm:$0xff] }
 0x3cd   :  { %5439 = vmatprep.subr.bf16.mxu0 %v8660_v35  ;;  %5471 = vmatprep.subr.bf16.mxu1 %v8661_v37  ;;  %v8669_v35 = vld [vmem:[#allocation45_spill] sm:$0xff]  ;;  %v8670_v37 = vld [vmem:[#allocation46_spill] sm:$0xff] }
 0x3ce   :  { %2073 = vmatprep.mubr.f32.mxu0 %v8524_v33  ;;  %2144 = vmatprep.mubr.f32.mxu1 %v8524_v33 }
 0x3d0   :  { %5441 = vmatpush1.bf16.msra.mxu0 %v8662_v7  ;;  %5473 = vmatpush1.bf16.msra.mxu1 %v8663_v47  ;;  %v8673_v7 = vld [vmem:[#allocation49_spill] sm:$0xff]  ;;  %v8674_v47 = vld [vmem:[#allocation50_spill] sm:$0xff] }
 0x3d1   :  { %5443 = vmatprep.subr.bf16.mxu0 %v8664_v44  ;;  %5475 = vmatprep.subr.bf16.mxu1 %v8665_v51  ;;  %v8675_v44 = vld [vmem:[#allocation51_spill] sm:$0xff]  ;;  %v8676_v51 = vld [vmem:[#allocation52_spill] sm:$0xff] }
 0x3d4   :  { %5445 = vmatpush1.bf16.msra.mxu0 %v8666_v12  ;;  %5477 = vmatpush1.bf16.msra.mxu1 %v8667_v57  ;;  %v8677_v12 = vld [vmem:[#allocation53_spill] sm:$0xff]  ;;  %v8678_v57 = vld [vmem:[#allocation54_spill] sm:$0xff] }
 0x3d5   :  { %5447 = vmatprep.subr.bf16.mxu0 %v8668_v24  ;;  %5479 = vmatprep.subr.bf16.mxu1 %v8669_v35  ;;  %v8679_v24 = vld [vmem:[#allocation55_spill] sm:$0xff]  ;;  %v8680_v35 = vld [vmem:[#allocation56_spill] sm:$0xff] }
 0x3d8   :  { %5449 = vmatpush1.bf16.msra.mxu0 %v8670_v37  ;;  %5481 = vmatpush1.bf16.msra.mxu1 %v8671_v56  ;;  %v8681_v37 = vld [vmem:[#allocation57_spill] sm:$0xff]  ;;  %v8682_v56 = vld [vmem:[#allocation58_spill] sm:$0xff] }
 0x3d9   :  { %5451 = vmatprep.subr.bf16.mxu0 %v8672_v38  ;;  %5483 = vmatprep.subr.bf16.mxu1 %v8673_v7  ;;  %v8683_v38 = vld [vmem:[#allocation59_spill] sm:$0xff]  ;;  %v8684_v7 = vld [vmem:[#allocation60_spill] sm:$0xff] }
 0x3dc   :  { %5453 = vmatpush1.bf16.msra.mxu0 %v8674_v47  ;;  %5485 = vmatpush1.bf16.msra.mxu1 %v8675_v44  ;;  %v8685_v47 = vld [vmem:[#allocation61_spill] sm:$0xff]  ;;  %v8686_v44 = vld [vmem:[#allocation62_spill] sm:$0xff] }
 0x3dd   :  { %5455 = vmatprep.subr.bf16.mxu0 %v8676_v51  ;;  %5487 = vmatprep.subr.bf16.mxu1 %v8677_v12  ;;  %v8687_v51 = vld [vmem:[#allocation63_spill] sm:$0xff]  ;;  %v8688_v12 = vld [vmem:[#allocation64_spill] sm:$0xff] }
 0x3e0   :  { %5457 = vmatpush1.bf16.msra.mxu0 %v8678_v57  ;;  %5489 = vmatpush1.bf16.msra.mxu1 %v8679_v24  ;;  %v8689_v57 = vld [vmem:[#allocation65_spill] sm:$0xff] }
 0x3e1   :  { %5459 = vmatprep.subr.bf16.mxu0 %v8680_v35  ;;  %5491 = vmatprep.subr.bf16.mxu1 %v8681_v37 }
 0x3e4   :  { %5461 = vmatpush1.bf16.msra.mxu0 %v8682_v56  ;;  %5493 = vmatpush1.bf16.msra.mxu1 %v8683_v38 }
 0x3e5   :  { %5463 = vmatprep.subr.bf16.mxu0 %v8684_v7  ;;  %5495 = vmatprep.subr.bf16.mxu1 %v8685_v47 }
 0x3e8   :  { %5465 = vmatpush1.bf16.msra.mxu0 %v8686_v44  ;;  %5497 = vmatpush1.bf16.msra.mxu1 %v8687_v51  ;;  %v8691_v51 = vld [vmem:[#allocation96_spill] sm:$0xff] }
 0x3e9   :  { %5499 = vmatprep.subr.bf16.mxu0 %v8688_v12  ;;  %5531 = vmatprep.subr.bf16.mxu1 %v8689_v57 }
 0x47e   :  { %v1707_v24 = vpop.f32.mrb[10].mxu0  ;;  %v1778_v35 = vpop.f32.mrb[10].mxu1 }
 0x47f   :  { %v1783_v37 = vadd.f32 %v1707_v24, %v8690_v26  ;;  %v1709_v21 = vpop.f32.mrb[11].mxu0  ;;  %v1780_v56 = vpop.f32.mrb[11].mxu1  ;;  %v1785_v17 = vadd.f32 %v1778_v35, %v8691_v51 }
 0x480   :  { %v1784_v38 = vadd.f32 %v1709_v21, %v7391_v48  ;;  %v1786_v44 = vadd.f32 %v1780_v56, %v7396_v46 }
 0x481   :  { %v4655_v20 = vmul.f32 -1.442695, %v1783_v37 }
 0x482   :  { %v4656_v7 = vmul.f32 -1.442695, %v1784_v38  ;;  %v4657_v47 = vmul.f32 -1.442695, %v1786_v44 }
 0x483   :  { %6492 = vpow2.f32 %v4655_v20 }
 0x484   :  { %6494 = vpow2.f32 %v4656_v7 }
 0x485   :  { %6496 = vpow2.f32 %v4657_v47 }
 0x486   :  { %6498 = vtanh.f32 %v1785_v17 }
 0x48d   :  { %v6493_v12 = vpop.eup %6492 }
 0x48e   :  { %v6495_v8 = vpop.eup %6494  ;;  %v1790_v57 = vadd.f32 1.0, %v6493_v12 }
 0x48f   :  { %v1796_v3 = vadd.f32 1.0, %v6495_v8  ;;  %v6497_v24 = vpop.eup %6496 }
 0x490   :  { %6500 = vrcp.f32 %v1790_v57  ;;  %v6499_v26 = vpop.eup %6498  ;;  %v1803_v20 = vadd.f32 1.0, %v6497_v24 }
 0x491   :  { %6502 = vrcp.f32 %v1796_v3 }
 0x492   :  { %6504 = vrcp.f32 %v1803_v20 }
 0x49a   :  { %v6501_v21 = vpop.eup %6500 }
 0x49b   :  { %v6503_v37 = vpop.eup %6502  ;;  %v1807_v38 = vmul.f32 %v6501_v21, %v6499_v26  ;;  %v4658_v26 = vld [vmem:[%s8276_s0 + $0x18] sm:$0xff] }
 0x49c   :  { %v1806_v7 = vmul.f32 %v6503_v37, %v7522_v13  ;;  %v6505_v37 = vpop.eup %6504 }
 0x49e   :  { %v7641_v56 = vadd.f32 %v1807_v38, %v1806_v7  ;;  %v1879_v44 = vpop.f32.mrb[12].mxu0  ;;  %v1950_v35 = vpop.f32.mrb[12].mxu1 }
 0x49f   :  { %v1881_v51 = vpop.f32.mrb[13].mxu0  ;;  %v1952_v12 = vpop.f32.mrb[13].mxu1 }
 0x4a0   :  { %v1959_v47 = vcombine.low %v1879_v44, %v1881_v51  ;;  %v1960_v17 = vcombine.low %v1950_v35, %v1952_v12  ;;  %6506 = vtanh.f32 %v7641_v56 }
 0x4a2   :  { %v1967_v3 = vrot.slane %v1959_v47, %v7306_v43  ;;  %v1974_v8 = vrot.slane %v1960_v17, %v7306_v43 }
 0x4a4   :  { %v1975_v13 = vcombine.low %v1967_v3, %v1974_v8  ;;  %v8692_v8 = vld [vmem:[#allocation76_spill] sm:$0xff] }
 0x4a6   :  { %v1977_v57 = vadd.f32 %v4658_v26, %v1975_v13  ;;  %v8693_v26 = vld [vmem:[#allocation77_spill] sm:$0xff]  ;;  %v8694_v13 = vld [vmem:[#allocation78_spill] sm:$0xff] }
 0x4a8   :  { %v4659_v24 = vmul.f32 -1.442695, %v1977_v57  ;;  %v1985_v21 = vrot.slane %v1977_v57, 2  ;;  %v1996_v7 = vrot.slane %v1977_v57, 6  ;;  %v1993_v12 = vrot.slane %v1977_v57, 4  ;;  %v8696_v57 = vld [vmem:[#allocation80_spill] sm:$0xff] }
 0x4aa   :  { %v6507_v38 = vpop.eup %6506  ;;  %6508 = vpow2.f32 %v4659_v24  ;;  %v4660_v20 = vmul.f32 -1.442695, %v1985_v21  ;;  %v4661_v44 = vmul.f32 -1.442695, %v1996_v7  ;;  %v8695_v24 = vld [vmem:[#allocation79_spill] sm:$0xff]  ;;  %v8697_v21 = vld [vmem:[#allocation81_spill] sm:$0xff] }
 0x4ab   :  { %v1810_v51 = vmul.f32 %v6507_v38, %v6505_v37  ;;  %v8698_v37 = vld [vmem:[#allocation82_spill] sm:$0xff]  ;;  %v8699_v38 = vld [vmem:[#allocation83_spill] sm:$0xff] }
 0x4ac   :  { %6510 = vpow2.f32 %v4660_v20  ;;  %v8700_v20 = vld [vmem:[#allocation85_spill] sm:$0xff] }
 0x4ad   :  { %2074 = vmatmul.mubr.f32.vlgmr.msra.gmra.mrb[14].mxu0 %v1810_v51  ;;  %2145 = vmatmul.mubr.f32.vlgmr.msra.gmra.mrb[14].mxu1 %v1810_v51  ;;  %6512 = vpow2.f32 %v4661_v44 }
 0x4ae   :  { %5501 = vmatpush1.bf16.msra.mxu0 %v8578_v9  ;;  %5533 = vmatpush1.bf16.msra.mxu1 %v8579_v6 }
 0x4af   :  { %5503 = vmatprep.subr.bf16.mxu0 %v8580_v5  ;;  %5535 = vmatprep.subr.bf16.mxu1 %v8635_v15 }
 0x4b0   :  { %2215 = vmatprep.mubr.f32.mxu0 %v8524_v33  ;;  %2286 = vmatprep.mubr.f32.mxu1 %v8524_v33 }
 0x4b2   :  { %5505 = vmatpush1.bf16.msra.mxu0 %v8636_v50  ;;  %5537 = vmatpush1.bf16.msra.mxu1 %v8583_v62 }
 0x4b3   :  { %5507 = vmatprep.subr.bf16.mxu0 %v8637_v39  ;;  %5539 = vmatprep.subr.bf16.mxu1 %v8638_v55 }
 0x4b4   :  { %v6509_v35 = vpop.eup %6508 }
 0x4b5   :  { %v1981_v47 = vadd.f32 1.0, %v6509_v35 }
 0x4b6   :  { %v6511_v17 = vpop.eup %6510  ;;  %5509 = vmatpush1.bf16.msra.mxu0 %v8639_v22  ;;  %5541 = vmatpush1.bf16.msra.mxu1 %v8587_v63 }
 0x4b7   :  { %6514 = vrcp.f32 %v1981_v47  ;;  %v1990_v3 = vadd.f32 1.0, %v6511_v17  ;;  %5511 = vmatprep.subr.bf16.mxu0 %v8692_v8  ;;  %5543 = vmatprep.subr.bf16.mxu1 %v8693_v26  ;;  %v6513_v51 = vpop.eup %6512 }
 0x4b8   :  { %6516 = vtanh.f32 %v1993_v12  ;;  %v2001_v12 = vadd.f32 1.0, %v6513_v51 }
 0x4b9   :  { %6518 = vrcp.f32 %v1990_v3 }
 0x4ba   :  { %5513 = vmatpush1.bf16.msra.mxu0 %v8694_v13  ;;  %5545 = vmatpush1.bf16.msra.mxu1 %v8695_v24  ;;  %6520 = vrcp.f32 %v2001_v12  ;;  %v8703_v12 = vld [vmem:[#allocation22_spill] sm:$0xff] }
 0x4bb   :  { %5515 = vmatprep.subr.bf16.mxu0 %v8696_v57  ;;  %5547 = vmatprep.subr.bf16.mxu1 %v8697_v21 }
 0x4be   :  { %5517 = vmatpush1.bf16.msra.mxu0 %v8698_v37  ;;  %5549 = vmatpush1.bf16.msra.mxu1 %v8699_v38 }
 0x4bf   :  { %5519 = vmatprep.subr.bf16.mxu0 %v8648_v11  ;;  %5551 = vmatprep.subr.bf16.mxu1 %v8700_v20 }
 0x4c1   :  { %v6515_v7 = vpop.eup %6514 }
 0x4c2   :  { %v6517_v44 = vpop.eup %6516  ;;  %5521 = vmatpush1.bf16.msra.mxu0 %v8650_v61  ;;  %5553 = vmatpush1.bf16.msra.mxu1 %v7273_v29 }
 0x4c3   :  { %v6519_v35 = vpop.eup %6518  ;;  %5523 = vmatprep.subr.bf16.mxu0 %v8651_v42  ;;  %5555 = vmatprep.subr.bf16.mxu1 %v8652_v34  ;;  %v2005_v17 = vmul.f32 %v6517_v44, %v6515_v7  ;;  %v8701_v44 = vld [vmem:[#allocation20_spill] sm:$0xff] }
 0x4c4   :  { %v2004_v47 = vmul.f32 %v6519_v35, %v7559_v60  ;;  %v6521_v60 = vpop.eup %6520  ;;  %v8702_v35 = vld [vmem:[#allocation21_spill] sm:$0xff] }
 0x4c6   :  { %5525 = vmatpush1.bf16.msra.mxu0 %v8599_v1  ;;  %5557 = vmatpush1.bf16.msra.mxu1 %v8600_v59  ;;  %v7678_v3 = vadd.f32 %v2005_v17, %v2004_v47  ;;  %v8704_v47 = vld [vmem:[#allocation23_spill] sm:$0xff]  ;;  %v8705_v17 = vld [vmem:[#allocation24_spill] sm:$0xff] }
 0x4c7   :  { %5527 = vmatprep.subr.bf16.mxu0 %v8601_v25  ;;  %5559 = vmatprep.subr.bf16.mxu1 %v8602_v30 }
 0x4c8   :  { %6522 = vtanh.f32 %v7678_v3 }
 0x4ca   :  { %5529 = vmatpush1.bf16.msra.mxu0 %v8603_v49  ;;  %5561 = vmatpush1.bf16.msra.mxu1 %v8604_v16 }
 0x4cb   :  { %5563 = vmatprep.subr.bf16.mxu0 %v8605_v31  ;;  %5595 = vmatprep.subr.bf16.mxu1 %v8606_v4 }
 0x4d2   :  { %v6523_v51 = vpop.eup %6522 }
 0x4d3   :  { %v2008_v7 = vmul.f32 %v6523_v51, %v6521_v60  ;;  %v8706_v60 = vld [vmem:[#allocation25_spill] sm:$0xff]  ;;  %v8707_v51 = vld [vmem:[#allocation26_spill] sm:$0xff] }
 0x4d5   :  { %2216 = vmatmul.mubr.f32.vlgmr.msra.gmra.mrb[14].mxu0 %v2008_v7  ;;  %2287 = vmatmul.mubr.f32.vlgmr.msra.gmra.mrb[14].mxu1 %v2008_v7 }
 0x4d6   :  { %5565 = vmatpush1.bf16.msra.mxu0 %v6835_v10  ;;  %5597 = vmatpush1.bf16.msra.mxu1 %v6847_v14 }
 0x4d7   :  { %5567 = vmatprep.subr.bf16.mxu0 %v6860_v18  ;;  %5599 = vmatprep.subr.bf16.mxu1 %v6862_v19 }
 0x4d8   :  { %2387 = vmatprep.mubr.f32.mxu0 %v8524_v33  ;;  %2458 = vmatprep.mubr.f32.mxu1 %v8524_v33 }
 0x4da   :  { %5569 = vmatpush1.bf16.msra.mxu0 %v6874_v23  ;;  %5601 = vmatpush1.bf16.msra.mxu1 %v6887_v27 }
 0x4db   :  { %5571 = vmatprep.subr.bf16.mxu0 %v6889_v28  ;;  %5603 = vmatprep.subr.bf16.mxu1 %v6900_v32 }
 0x4de   :  { %5573 = vmatpush1.bf16.msra.mxu0 %v6912_v36  ;;  %5605 = vmatpush1.bf16.msra.mxu1 %v6925_v40 }
 0x4df   :  { %5575 = vmatprep.subr.bf16.mxu0 %v6927_v41  ;;  %5607 = vmatprep.subr.bf16.mxu1 %v6939_v45 }
 0x4e2   :  { %5577 = vmatpush1.bf16.msra.mxu0 %v6960_v52  ;;  %5609 = vmatpush1.bf16.msra.mxu1 %v6964_v53 }
 0x4e3   :  { %5579 = vmatprep.subr.bf16.mxu0 %v6966_v54  ;;  %5611 = vmatprep.subr.bf16.mxu1 %v6978_v58  ;;  %v8708_v54 = vld [vmem:[#allocation27_spill] sm:$0xff]  ;;  %v8709_v58 = vld [vmem:[#allocation28_spill] sm:$0xff] }
 0x4e6   :  { %5581 = vmatpush1.bf16.msra.mxu0 %v6996_v0  ;;  %5613 = vmatpush1.bf16.msra.mxu1 %v7000_v2  ;;  %v8710_v0 = vld [vmem:[#allocation29_spill] sm:$0xff]  ;;  %v8711_v2 = vld [vmem:[#allocation30_spill] sm:$0xff] }
 0x4e7   :  { %5583 = vmatprep.subr.bf16.mxu0 %v8701_v44  ;;  %5615 = vmatprep.subr.bf16.mxu1 %v8702_v35  ;;  %v8712_v44 = vld [vmem:[#allocation31_spill] sm:$0xff]  ;;  %v8713_v35 = vld [vmem:[#allocation32_spill] sm:$0xff] }
 0x4ea   :  { %5585 = vmatpush1.bf16.msra.mxu0 %v8703_v12  ;;  %5617 = vmatpush1.bf16.msra.mxu1 %v8704_v47  ;;  %v8714_v12 = vld [vmem:[#allocation33_spill] sm:$0xff]  ;;  %v8747_v47 = vld [vmem:[#allocation95_spill] sm:$0xff] }
 0x4eb   :  { %5587 = vmatprep.subr.bf16.mxu0 %v8705_v17  ;;  %5619 = vmatprep.subr.bf16.mxu1 %v8706_v60  ;;  %v8715_v17 = vld [vmem:[#allocation34_spill] sm:$0xff]  ;;  %v8716_v60 = vld [vmem:[#allocation35_spill] sm:$0xff] }
 0x4ee   :  { %5589 = vmatpush1.bf16.msra.mxu0 %v8707_v51  ;;  %5621 = vmatpush1.bf16.msra.mxu1 %v8708_v54  ;;  %v8717_v51 = vld [vmem:[#allocation36_spill] sm:$0xff]  ;;  %v8718_v54 = vld [vmem:[#allocation37_spill] sm:$0xff] }
 0x4ef   :  { %5591 = vmatprep.subr.bf16.mxu0 %v8709_v58  ;;  %5623 = vmatprep.subr.bf16.mxu1 %v8710_v0  ;;  %v8728_v0 = vld [vmem:[#allocation47_spill] sm:$0xff]  ;;  %v8729_v58 = vld [vmem:[#allocation48_spill] sm:$0xff] }
 0x4f2   :  { %5593 = vmatpush1.bf16.msra.mxu0 %v8711_v2  ;;  %5625 = vmatpush1.bf16.msra.mxu1 %v8712_v44  ;;  %v8719_v2 = vld [vmem:[#allocation38_spill] sm:$0xff]  ;;  %v8720_v44 = vld [vmem:[#allocation39_spill] sm:$0xff] }
 0x4f3   :  { %5627 = vmatprep.subr.bf16.mxu0 %v8713_v35  ;;  %5659 = vmatprep.subr.bf16.mxu1 %v8714_v12  ;;  %v8721_v35 = vld [vmem:[#allocation40_spill] sm:$0xff]  ;;  %v8722_v12 = vld [vmem:[#allocation41_spill] sm:$0xff] }
 0x4f5   :  { %2388 = vmatmul.mubr.f32.vlgmr.msra.gmra.mrb[16].mxu0 %v2008_v7  ;;  %2459 = vmatmul.mubr.f32.vlgmr.msra.gmra.mrb[16].mxu1 %v2008_v7  ;;  %v8723_v7 = vld [vmem:[#allocation42_spill] sm:$0xff] }
 0x4f6   :  { %5629 = vmatpush1.bf16.msra.mxu0 %v8715_v17  ;;  %5661 = vmatpush1.bf16.msra.mxu1 %v8716_v60  ;;  %v8724_v17 = vld [vmem:[#allocation43_spill] sm:$0xff]  ;;  %v8725_v60 = vld [vmem:[#allocation44_spill] sm:$0xff] }
 0x4f7   :  { %5631 = vmatprep.subr.bf16.mxu0 %v8717_v51  ;;  %5663 = vmatprep.subr.bf16.mxu1 %v8718_v54  ;;  %v8726_v51 = vld [vmem:[#allocation45_spill] sm:$0xff]  ;;  %v8727_v54 = vld [vmem:[#allocation46_spill] sm:$0xff] }
 0x4f8   :  { %2583 = vmatprep.mubr.f32.mxu0 %v8524_v33  ;;  %2654 = vmatprep.mubr.f32.mxu1 %v8524_v33 }
 0x4fa   :  { %5633 = vmatpush1.bf16.msra.mxu0 %v8719_v2  ;;  %5665 = vmatpush1.bf16.msra.mxu1 %v8720_v44  ;;  %v8730_v2 = vld [vmem:[#allocation49_spill] sm:$0xff]  ;;  %v8731_v44 = vld [vmem:[#allocation50_spill] sm:$0xff] }
 0x4fb   :  { %5635 = vmatprep.subr.bf16.mxu0 %v8721_v35  ;;  %5667 = vmatprep.subr.bf16.mxu1 %v8722_v12  ;;  %v8732_v35 = vld [vmem:[#allocation51_spill] sm:$0xff]  ;;  %v8733_v12 = vld [vmem:[#allocation52_spill] sm:$0xff] }
 0x4fe   :  { %5637 = vmatpush1.bf16.msra.mxu0 %v8723_v7  ;;  %5669 = vmatpush1.bf16.msra.mxu1 %v8724_v17  ;;  %v8734_v7 = vld [vmem:[#allocation53_spill] sm:$0xff]  ;;  %v8735_v17 = vld [vmem:[#allocation54_spill] sm:$0xff] }
 0x4ff   :  { %5639 = vmatprep.subr.bf16.mxu0 %v8725_v60  ;;  %5671 = vmatprep.subr.bf16.mxu1 %v8726_v51  ;;  %v8736_v60 = vld [vmem:[#allocation55_spill] sm:$0xff]  ;;  %v8737_v51 = vld [vmem:[#allocation56_spill] sm:$0xff] }
 0x502   :  { %5641 = vmatpush1.bf16.msra.mxu0 %v8727_v54  ;;  %5673 = vmatpush1.bf16.msra.mxu1 %v8728_v0  ;;  %v8738_v54 = vld [vmem:[#allocation57_spill] sm:$0xff]  ;;  %v8739_v0 = vld [vmem:[#allocation58_spill] sm:$0xff] }
 0x503   :  { %5643 = vmatprep.subr.bf16.mxu0 %v8729_v58  ;;  %5675 = vmatprep.subr.bf16.mxu1 %v8730_v2  ;;  %v8740_v58 = vld [vmem:[#allocation59_spill] sm:$0xff]  ;;  %v8741_v2 = vld [vmem:[#allocation60_spill] sm:$0xff] }
 0x506   :  { %5645 = vmatpush1.bf16.msra.mxu0 %v8731_v44  ;;  %5677 = vmatpush1.bf16.msra.mxu1 %v8732_v35  ;;  %v8742_v44 = vld [vmem:[#allocation61_spill] sm:$0xff]  ;;  %v8743_v35 = vld [vmem:[#allocation62_spill] sm:$0xff] }
 0x507   :  { %5647 = vmatprep.subr.bf16.mxu0 %v8733_v12  ;;  %5679 = vmatprep.subr.bf16.mxu1 %v8734_v7  ;;  %v8744_v12 = vld [vmem:[#allocation63_spill] sm:$0xff]  ;;  %v8745_v7 = vld [vmem:[#allocation64_spill] sm:$0xff] }
 0x50a   :  { %5649 = vmatpush1.bf16.msra.mxu0 %v8735_v17  ;;  %5681 = vmatpush1.bf16.msra.mxu1 %v8736_v60  ;;  %v8746_v17 = vld [vmem:[#allocation65_spill] sm:$0xff] }
 0x50b   :  { %5651 = vmatprep.subr.bf16.mxu0 %v8737_v51  ;;  %5683 = vmatprep.subr.bf16.mxu1 %v8738_v54 }
 0x50e   :  { %5653 = vmatpush1.bf16.msra.mxu0 %v8739_v0  ;;  %5685 = vmatpush1.bf16.msra.mxu1 %v8740_v58 }
 0x50f   :  { %5655 = vmatprep.subr.bf16.mxu0 %v8741_v2  ;;  %5687 = vmatprep.subr.bf16.mxu1 %v8742_v44 }
 0x512   :  { %5657 = vmatpush1.bf16.msra.mxu0 %v8743_v35  ;;  %5689 = vmatpush1.bf16.msra.mxu1 %v8744_v12  ;;  %v8748_v12 = vld [vmem:[#allocation96_spill] sm:$0xff] }
 0x513   :  { %5691 = vmatprep.subr.bf16.mxu0 %v8745_v7  ;;  %5723 = vmatprep.subr.bf16.mxu1 %v8746_v17 }
 0x5a8   :  { %v2217_v60 = vpop.f32.mrb[14].mxu0  ;;  %v2288_v51 = vpop.f32.mrb[14].mxu1 }
 0x5a9   :  { %v2293_v54 = vadd.f32 %v2217_v60, %v8747_v47  ;;  %v2219_v53 = vpop.f32.mrb[15].mxu0  ;;  %v2290_v0 = vpop.f32.mrb[15].mxu1  ;;  %v2295_v45 = vadd.f32 %v2288_v51, %v8748_v12 }
 0x5aa   :  { %v2294_v58 = vadd.f32 %v2219_v53, %v7391_v48  ;;  %v2296_v35 = vadd.f32 %v2290_v0, %v7396_v46 }
 0x5ab   :  { %v4662_v52 = vmul.f32 -1.442695, %v2293_v54 }
 0x5ac   :  { %v4663_v2 = vmul.f32 -1.442695, %v2294_v58  ;;  %v4664_v44 = vmul.f32 -1.442695, %v2296_v35 }
 0x5ad   :  { %6524 = vpow2.f32 %v4662_v52 }
 0x5ae   :  { %6526 = vpow2.f32 %v4663_v2 }
 0x5af   :  { %6528 = vpow2.f32 %v4664_v44 }
 0x5b0   :  { %6530 = vtanh.f32 %v2295_v45 }
 0x5b7   :  { %v6525_v7 = vpop.eup %6524 }
 0x5b8   :  { %v6527_v41 = vpop.eup %6526  ;;  %v2300_v17 = vadd.f32 1.0, %v6525_v7 }
 0x5b9   :  { %v2306_v40 = vadd.f32 1.0, %v6527_v41  ;;  %v6529_v60 = vpop.eup %6528 }
 0x5ba   :  { %6532 = vrcp.f32 %v2300_v17  ;;  %v6531_v47 = vpop.eup %6530  ;;  %v2313_v52 = vadd.f32 1.0, %v6529_v60 }
 0x5bb   :  { %6534 = vrcp.f32 %v2306_v40 }
 0x5bc   :  { %6536 = vrcp.f32 %v2313_v52 }
 0x5c4   :  { %v6533_v53 = vpop.eup %6532 }
 0x5c5   :  { %v6535_v54 = vpop.eup %6534  ;;  %v2317_v58 = vmul.f32 %v6533_v53, %v6531_v47  ;;  %v4665_v47 = vld [vmem:[%s8276_s0 + $0x20] sm:$0xff] }
 0x5c6   :  { %v2316_v2 = vmul.f32 %v6535_v54, %v7641_v56  ;;  %v6537_v54 = vpop.eup %6536 }
 0x5c8   :  { %v7760_v0 = vadd.f32 %v2317_v58, %v2316_v2  ;;  %v2389_v35 = vpop.f32.mrb[16].mxu0  ;;  %v2460_v51 = vpop.f32.mrb[16].mxu1 }
 0x5c9   :  { %v2391_v12 = vpop.f32.mrb[17].mxu0  ;;  %v2462_v7 = vpop.f32.mrb[17].mxu1 }
 0x5ca   :  { %v2469_v44 = vcombine.low %v2389_v35, %v2391_v12  ;;  %v2470_v45 = vcombine.low %v2460_v51, %v2462_v7  ;;  %6538 = vtanh.f32 %v7760_v0 }
 0x5cc   :  { %v2477_v40 = vrot.slane %v2469_v44, %v7306_v43  ;;  %v2484_v41 = vrot.slane %v2470_v45, %v7306_v43 }
 0x5ce   :  { %v2485_v56 = vcombine.low %v2477_v40, %v2484_v41 }
 0x5d0   :  { %v2487_v17 = vadd.f32 %v4665_v47, %v2485_v56 }
 0x5d2   :  { %v4666_v60 = vmul.f32 -1.442695, %v2487_v17  ;;  %v2495_v53 = vrot.slane %v2487_v17, 2  ;;  %v2506_v2 = vrot.slane %v2487_v17, 6  ;;  %v2503_v7 = vrot.slane %v2487_v17, 4 }
 0x5d4   :  { %v6539_v58 = vpop.eup %6538  ;;  %6540 = vpow2.f32 %v4666_v60  ;;  %v4667_v52 = vmul.f32 -1.442695, %v2495_v53  ;;  %v4668_v35 = vmul.f32 -1.442695, %v2506_v2  ;;  %v8749_v2 = vld [vmem:[#allocation11_spill] sm:$0xff] }
 0x5d5   :  { %v2320_v12 = vmul.f32 %v6539_v58, %v6537_v54 }
 0x5d6   :  { %6542 = vpow2.f32 %v4667_v52 }
 0x5d7   :  { %2584 = vmatmul.mubr.f32.vlgmr.msra.gmra.mrb[18].mxu0 %v2320_v12  ;;  %2655 = vmatmul.mubr.f32.vlgmr.msra.gmra.mrb[18].mxu1 %v2320_v12  ;;  %6544 = vpow2.f32 %v4668_v35  ;;  %v8750_v35 = vld [vmem:[#allocation12_spill] sm:$0xff] }
 0x5d8   :  { %5693 = vmatpush1.bf16.msra.mxu0 %v8578_v9  ;;  %5725 = vmatpush1.bf16.msra.mxu1 %v8579_v6 }
 0x5d9   :  { %5695 = vmatprep.subr.bf16.mxu0 %v8580_v5  ;;  %5727 = vmatprep.subr.bf16.mxu1 %v8635_v15 }
 0x5da   :  { %2725 = vmatprep.mubr.f32.mxu0 %v8524_v33  ;;  %2796 = vmatprep.mubr.f32.mxu1 %v8524_v33 }
 0x5dc   :  { %5697 = vmatpush1.bf16.msra.mxu0 %v8636_v50  ;;  %5729 = vmatpush1.bf16.msra.mxu1 %v8583_v62 }
 0x5dd   :  { %5699 = vmatprep.subr.bf16.mxu0 %v8637_v39  ;;  %5731 = vmatprep.subr.bf16.mxu1 %v8638_v55 }
 0x5de   :  { %v6541_v51 = vpop.eup %6540 }
 0x5df   :  { %v2491_v44 = vadd.f32 1.0, %v6541_v51  ;;  %v8751_v51 = vld [vmem:[#allocation13_spill] sm:$0xff] }
 0x5e0   :  { %v6543_v45 = vpop.eup %6542  ;;  %5701 = vmatpush1.bf16.msra.mxu0 %v8639_v22  ;;  %5733 = vmatpush1.bf16.msra.mxu1 %v8587_v63 }
 0x5e1   :  { %6546 = vrcp.f32 %v2491_v44  ;;  %v2500_v40 = vadd.f32 1.0, %v6543_v45  ;;  %5703 = vmatprep.subr.bf16.mxu0 %v8692_v8  ;;  %5735 = vmatprep.subr.bf16.mxu1 %v8693_v26  ;;  %v6545_v41 = vpop.eup %6544  ;;  %v8753_v44 = vld [vmem:[#allocation15_spill] sm:$0xff]  ;;  %v8754_v45 = vld [vmem:[#allocation16_spill] sm:$0xff] }
 0x5e2   :  { %6548 = vtanh.f32 %v2503_v7  ;;  %v2511_v60 = vadd.f32 1.0, %v6545_v41  ;;  %v8752_v7 = vld [vmem:[#allocation14_spill] sm:$0xff] }
 0x5e3   :  { %6550 = vrcp.f32 %v2500_v40  ;;  %v8755_v40 = vld [vmem:[#allocation17_spill] sm:$0xff]  ;;  %v8756_v41 = vld [vmem:[#allocation18_spill] sm:$0xff] }
 0x5e4   :  { %5705 = vmatpush1.bf16.msra.mxu0 %v8694_v13  ;;  %5737 = vmatpush1.bf16.msra.mxu1 %v8695_v24  ;;  %6552 = vrcp.f32 %v2511_v60  ;;  %v8760_v60 = vld [vmem:[#allocation22_spill] sm:$0xff] }
 0x5e5   :  { %5707 = vmatprep.subr.bf16.mxu0 %v8696_v57  ;;  %5739 = vmatprep.subr.bf16.mxu1 %v8697_v21 }
 0x5e8   :  { %5709 = vmatpush1.bf16.msra.mxu0 %v8698_v37  ;;  %5741 = vmatpush1.bf16.msra.mxu1 %v8699_v38 }
 0x5e9   :  { %5711 = vmatprep.subr.bf16.mxu0 %v8648_v11  ;;  %5743 = vmatprep.subr.bf16.mxu1 %v8700_v20 }
 0x5eb   :  { %v6547_v47 = vpop.eup %6546 }
 0x5ec   :  { %v6549_v56 = vpop.eup %6548  ;;  %5713 = vmatpush1.bf16.msra.mxu0 %v8650_v61  ;;  %5745 = vmatpush1.bf16.msra.mxu1 %v7273_v29 }
 0x5ed   :  { %v6551_v17 = vpop.eup %6550  ;;  %5715 = vmatprep.subr.bf16.mxu0 %v8651_v42  ;;  %5747 = vmatprep.subr.bf16.mxu1 %v8652_v34  ;;  %v2515_v54 = vmul.f32 %v6549_v56, %v6547_v47  ;;  %v8757_v47 = vld [vmem:[#allocation19_spill] sm:$0xff]  ;;  %v8758_v56 = vld [vmem:[#allocation20_spill] sm:$0xff] }
 0x5ee   :  { %v2514_v53 = vmul.f32 %v6551_v17, %v7678_v3  ;;  %v6553_v3 = vpop.eup %6552  ;;  %v8759_v17 = vld [vmem:[#allocation21_spill] sm:$0xff] }
 0x5f0   :  { %5717 = vmatpush1.bf16.msra.mxu0 %v8599_v1  ;;  %5749 = vmatpush1.bf16.msra.mxu1 %v8600_v59  ;;  %v7797_v58 = vadd.f32 %v2515_v54, %v2514_v53  ;;  %v8761_v53 = vld [vmem:[#allocation23_spill] sm:$0xff]  ;;  %v8762_v54 = vld [vmem:[#allocation24_spill] sm:$0xff] }
 0x5f1   :  { %5719 = vmatprep.subr.bf16.mxu0 %v8601_v25  ;;  %5751 = vmatprep.subr.bf16.mxu1 %v8602_v30 }
 0x5f2   :  { %6554 = vtanh.f32 %v7797_v58 }
 0x5f4   :  { %5721 = vmatpush1.bf16.msra.mxu0 %v8603_v49  ;;  %5753 = vmatpush1.bf16.msra.mxu1 %v8604_v16 }
 0x5f5   :  { %5755 = vmatprep.subr.bf16.mxu0 %v8605_v31  ;;  %5787 = vmatprep.subr.bf16.mxu1 %v8606_v4 }
 0x5fc   :  { %v6555_v52 = vpop.eup %6554 }
 0x5fd   :  { %v2518_v12 = vmul.f32 %v6555_v52, %v6553_v3  ;;  %v8763_v3 = vld [vmem:[#allocation25_spill] sm:$0xff]  ;;  %v8764_v52 = vld [vmem:[#allocation26_spill] sm:$0xff] }
 0x5ff   :  { %2726 = vmatmul.mubr.f32.vlgmr.msra.gmra.mrb[18].mxu0 %v2518_v12  ;;  %2797 = vmatmul.mubr.f32.vlgmr.msra.gmra.mrb[18].mxu1 %v2518_v12 }
 0x600   :  { %5757 = vmatpush1.bf16.msra.mxu0 %v6835_v10  ;;  %5789 = vmatpush1.bf16.msra.mxu1 %v6847_v14 }
 0x601   :  { %5759 = vmatprep.subr.bf16.mxu0 %v6860_v18  ;;  %5791 = vmatprep.subr.bf16.mxu1 %v6862_v19 }
 0x602   :  { %2897 = vmatprep.mubr.f32.mxu0 %v8524_v33  ;;  %2968 = vmatprep.mubr.f32.mxu1 %v8524_v33 }
 0x604   :  { %5761 = vmatpush1.bf16.msra.mxu0 %v6874_v23  ;;  %5793 = vmatpush1.bf16.msra.mxu1 %v6887_v27 }
 0x605   :  { %5763 = vmatprep.subr.bf16.mxu0 %v6889_v28  ;;  %5795 = vmatprep.subr.bf16.mxu1 %v6900_v32 }
 0x608   :  { %5765 = vmatpush1.bf16.msra.mxu0 %v6912_v36  ;;  %5797 = vmatpush1.bf16.msra.mxu1 %v8749_v2 }
 0x609   :  { %5767 = vmatprep.subr.bf16.mxu0 %v8750_v35  ;;  %5799 = vmatprep.subr.bf16.mxu1 %v8751_v51 }
 0x60c   :  { %5769 = vmatpush1.bf16.msra.mxu0 %v8752_v7  ;;  %5801 = vmatpush1.bf16.msra.mxu1 %v8753_v44 }
 0x60d   :  { %5771 = vmatprep.subr.bf16.mxu0 %v8754_v45  ;;  %5803 = vmatprep.subr.bf16.mxu1 %v8755_v40  ;;  %v8765_v45 = vld [vmem:[#allocation27_spill] sm:$0xff]  ;;  %v8766_v40 = vld [vmem:[#allocation28_spill] sm:$0xff] }
 0x610   :  { %5773 = vmatpush1.bf16.msra.mxu0 %v8756_v41  ;;  %5805 = vmatpush1.bf16.msra.mxu1 %v8757_v47  ;;  %v8767_v41 = vld [vmem:[#allocation29_spill] sm:$0xff]  ;;  %v8768_v47 = vld [vmem:[#allocation30_spill] sm:$0xff] }
 0x611   :  { %5775 = vmatprep.subr.bf16.mxu0 %v8758_v56  ;;  %5807 = vmatprep.subr.bf16.mxu1 %v8759_v17  ;;  %v8769_v56 = vld [vmem:[#allocation31_spill] sm:$0xff]  ;;  %v8770_v17 = vld [vmem:[#allocation32_spill] sm:$0xff] }
 0x614   :  { %5777 = vmatpush1.bf16.msra.mxu0 %v8760_v60  ;;  %5809 = vmatpush1.bf16.msra.mxu1 %v8761_v53  ;;  %v8771_v60 = vld [vmem:[#allocation33_spill] sm:$0xff]  ;;  %v8804_v53 = vld [vmem:[#allocation95_spill] sm:$0xff] }
 0x615   :  { %5779 = vmatprep.subr.bf16.mxu0 %v8762_v54  ;;  %5811 = vmatprep.subr.bf16.mxu1 %v8763_v3  ;;  %v8772_v54 = vld [vmem:[#allocation34_spill] sm:$0xff]  ;;  %v8773_v3 = vld [vmem:[#allocation35_spill] sm:$0xff] }
 0x618   :  { %5781 = vmatpush1.bf16.msra.mxu0 %v8764_v52  ;;  %5813 = vmatpush1.bf16.msra.mxu1 %v8765_v45  ;;  %v8774_v52 = vld [vmem:[#allocation36_spill] sm:$0xff]  ;;  %v8775_v45 = vld [vmem:[#allocation37_spill] sm:$0xff] }
 0x619   :  { %5783 = vmatprep.subr.bf16.mxu0 %v8766_v40  ;;  %5815 = vmatprep.subr.bf16.mxu1 %v8767_v41  ;;  %v8785_v41 = vld [vmem:[#allocation47_spill] sm:$0xff]  ;;  %v8786_v40 = vld [vmem:[#allocation48_spill] sm:$0xff] }
 0x61c   :  { %5785 = vmatpush1.bf16.msra.mxu0 %v8768_v47  ;;  %5817 = vmatpush1.bf16.msra.mxu1 %v8769_v56  ;;  %v8776_v47 = vld [vmem:[#allocation38_spill] sm:$0xff]  ;;  %v8777_v56 = vld [vmem:[#allocation39_spill] sm:$0xff] }
 0x61d   :  { %5819 = vmatprep.subr.bf16.mxu0 %v8770_v17  ;;  %5851 = vmatprep.subr.bf16.mxu1 %v8771_v60  ;;  %v8778_v17 = vld [vmem:[#allocation40_spill] sm:$0xff]  ;;  %v8779_v60 = vld [vmem:[#allocation41_spill] sm:$0xff] }
 0x61f   :  { %2898 = vmatmul.mubr.f32.vlgmr.msra.gmra.mrb[20].mxu0 %v2518_v12  ;;  %2969 = vmatmul.mubr.f32.vlgmr.msra.gmra.mrb[20].mxu1 %v2518_v12  ;;  %v8780_v12 = vld [vmem:[#allocation42_spill] sm:$0xff] }
 0x620   :  { %5821 = vmatpush1.bf16.msra.mxu0 %v8772_v54  ;;  %5853 = vmatpush1.bf16.msra.mxu1 %v8773_v3  ;;  %v8781_v54 = vld [vmem:[#allocation43_spill] sm:$0xff]  ;;  %v8782_v3 = vld [vmem:[#allocation44_spill] sm:$0xff] }
 0x621   :  { %5823 = vmatprep.subr.bf16.mxu0 %v8774_v52  ;;  %5855 = vmatprep.subr.bf16.mxu1 %v8775_v45  ;;  %v8783_v52 = vld [vmem:[#allocation45_spill] sm:$0xff]  ;;  %v8784_v45 = vld [vmem:[#allocation46_spill] sm:$0xff] }
 0x622   :  { %3093 = vmatprep.mubr.f32.mxu0 %v8524_v33  ;;  %3164 = vmatprep.mubr.f32.mxu1 %v8524_v33 }
 0x624   :  { %5825 = vmatpush1.bf16.msra.mxu0 %v8776_v47  ;;  %5857 = vmatpush1.bf16.msra.mxu1 %v8777_v56  ;;  %v8787_v47 = vld [vmem:[#allocation49_spill] sm:$0xff]  ;;  %v8788_v56 = vld [vmem:[#allocation50_spill] sm:$0xff] }
 0x625   :  { %5827 = vmatprep.subr.bf16.mxu0 %v8778_v17  ;;  %5859 = vmatprep.subr.bf16.mxu1 %v8779_v60  ;;  %v8789_v17 = vld [vmem:[#allocation51_spill] sm:$0xff]  ;;  %v8790_v60 = vld [vmem:[#allocation52_spill] sm:$0xff] }
 0x628   :  { %5829 = vmatpush1.bf16.msra.mxu0 %v8780_v12  ;;  %5861 = vmatpush1.bf16.msra.mxu1 %v8781_v54  ;;  %v8791_v12 = vld [vmem:[#allocation53_spill] sm:$0xff]  ;;  %v8792_v54 = vld [vmem:[#allocation54_spill] sm:$0xff] }
 0x629   :  { %5831 = vmatprep.subr.bf16.mxu0 %v8782_v3  ;;  %5863 = vmatprep.subr.bf16.mxu1 %v8783_v52  ;;  %v8793_v3 = vld [vmem:[#allocation55_spill] sm:$0xff]  ;;  %v8794_v52 = vld [vmem:[#allocation56_spill] sm:$0xff] }
 0x62c   :  { %5833 = vmatpush1.bf16.msra.mxu0 %v8784_v45  ;;  %5865 = vmatpush1.bf16.msra.mxu1 %v8785_v41  ;;  %v8795_v45 = vld [vmem:[#allocation57_spill] sm:$0xff]  ;;  %v8796_v41 = vld [vmem:[#allocation58_spill] sm:$0xff] }
 0x62d   :  { %5835 = vmatprep.subr.bf16.mxu0 %v8786_v40  ;;  %5867 = vmatprep.subr.bf16.mxu1 %v8787_v47  ;;  %v8797_v40 = vld [vmem:[#allocation59_spill] sm:$0xff]  ;;  %v8798_v47 = vld [vmem:[#allocation60_spill] sm:$0xff] }
 0x630   :  { %5837 = vmatpush1.bf16.msra.mxu0 %v8788_v56  ;;  %5869 = vmatpush1.bf16.msra.mxu1 %v8789_v17  ;;  %v8799_v56 = vld [vmem:[#allocation61_spill] sm:$0xff]  ;;  %v8800_v17 = vld [vmem:[#allocation62_spill] sm:$0xff] }
 0x631   :  { %5839 = vmatprep.subr.bf16.mxu0 %v8790_v60  ;;  %5871 = vmatprep.subr.bf16.mxu1 %v8791_v12  ;;  %v8801_v60 = vld [vmem:[#allocation63_spill] sm:$0xff]  ;;  %v8802_v12 = vld [vmem:[#allocation64_spill] sm:$0xff] }
 0x634   :  { %5841 = vmatpush1.bf16.msra.mxu0 %v8792_v54  ;;  %5873 = vmatpush1.bf16.msra.mxu1 %v8793_v3  ;;  %v8803_v54 = vld [vmem:[#allocation65_spill] sm:$0xff] }
 0x635   :  { %5843 = vmatprep.subr.bf16.mxu0 %v8794_v52  ;;  %5875 = vmatprep.subr.bf16.mxu1 %v8795_v45 }
 0x638   :  { %5845 = vmatpush1.bf16.msra.mxu0 %v8796_v41  ;;  %5877 = vmatpush1.bf16.msra.mxu1 %v8797_v40 }
 0x639   :  { %5847 = vmatprep.subr.bf16.mxu0 %v8798_v47  ;;  %5879 = vmatprep.subr.bf16.mxu1 %v8799_v56 }
 0x63c   :  { %5849 = vmatpush1.bf16.msra.mxu0 %v8800_v17  ;;  %5881 = vmatpush1.bf16.msra.mxu1 %v8801_v60  ;;  %v8805_v60 = vld [vmem:[#allocation96_spill] sm:$0xff] }
 0x63d   :  { %5883 = vmatprep.subr.bf16.mxu0 %v8802_v12  ;;  %5915 = vmatprep.subr.bf16.mxu1 %v8803_v54 }
 0x6d2   :  { %v2727_v3 = vpop.f32.mrb[18].mxu0  ;;  %v2798_v52 = vpop.f32.mrb[18].mxu1 }
 0x6d3   :  { %v2803_v45 = vadd.f32 %v2727_v3, %v8804_v53  ;;  %v2729_v44 = vpop.f32.mrb[19].mxu0  ;;  %v2800_v41 = vpop.f32.mrb[19].mxu1  ;;  %v2805_v51 = vadd.f32 %v2798_v52, %v8805_v60 }
 0x6d4   :  { %v2804_v40 = vadd.f32 %v2729_v44, %v7391_v48  ;;  %v2806_v17 = vadd.f32 %v2800_v41, %v7396_v46 }
 0x6d5   :  { %v4669_v7 = vmul.f32 -1.442695, %v2803_v45 }
 0x6d6   :  { %v4670_v47 = vmul.f32 -1.442695, %v2804_v40  ;;  %v4671_v56 = vmul.f32 -1.442695, %v2806_v17 }
 0x6d7   :  { %6556 = vpow2.f32 %v4669_v7 }
 0x6d8   :  { %6558 = vpow2.f32 %v4670_v47 }
 0x6d9   :  { %6560 = vpow2.f32 %v4671_v56 }
 0x6da   :  { %6562 = vtanh.f32 %v2805_v51 }
 0x6e1   :  { %v6557_v12 = vpop.eup %6556 }
 0x6e2   :  { %v6559_v35 = vpop.eup %6558  ;;  %v2810_v54 = vadd.f32 1.0, %v6557_v12 }
 0x6e3   :  { %v2816_v2 = vadd.f32 1.0, %v6559_v35  ;;  %v6561_v3 = vpop.eup %6560 }
 0x6e4   :  { %6564 = vrcp.f32 %v2810_v54  ;;  %v6563_v53 = vpop.eup %6562  ;;  %v2823_v7 = vadd.f32 1.0, %v6561_v3 }
 0x6e5   :  { %6566 = vrcp.f32 %v2816_v2 }
 0x6e6   :  { %6568 = vrcp.f32 %v2823_v7 }
 0x6ee   :  { %v6565_v44 = vpop.eup %6564 }
 0x6ef   :  { %v6567_v45 = vpop.eup %6566  ;;  %v2827_v40 = vmul.f32 %v6565_v44, %v6563_v53  ;;  %v4672_v53 = vld [vmem:[%s8276_s0 + $0x28] sm:$0xff] }
 0x6f0   :  { %v2826_v47 = vmul.f32 %v6567_v45, %v7760_v0  ;;  %v6569_v45 = vpop.eup %6568 }
 0x6f2   :  { %v7879_v41 = vadd.f32 %v2827_v40, %v2826_v47  ;;  %v2899_v17 = vpop.f32.mrb[20].mxu0  ;;  %v2970_v52 = vpop.f32.mrb[20].mxu1 }
 0x6f3   :  { %v2901_v60 = vpop.f32.mrb[21].mxu0  ;;  %v2972_v12 = vpop.f32.mrb[21].mxu1 }
 0x6f4   :  { %v2979_v56 = vcombine.low %v2899_v17, %v2901_v60  ;;  %v2980_v51 = vcombine.low %v2970_v52, %v2972_v12  ;;  %6570 = vtanh.f32 %v7879_v41 }
 0x6f6   :  { %v2987_v2 = vrot.slane %v2979_v56, %v7306_v43  ;;  %v2994_v35 = vrot.slane %v2980_v51, %v7306_v43 }
 0x6f8   :  { %v2995_v0 = vcombine.low %v2987_v2, %v2994_v35 }
 0x6fa   :  { %v2997_v54 = vadd.f32 %v4672_v53, %v2995_v0 }
 0x6fc   :  { %v4673_v3 = vmul.f32 -1.442695, %v2997_v54  ;;  %v3005_v44 = vrot.slane %v2997_v54, 2  ;;  %v3016_v47 = vrot.slane %v2997_v54, 6  ;;  %v3013_v12 = vrot.slane %v2997_v54, 4 }
 0x6fe   :  { %v6571_v40 = vpop.eup %6570  ;;  %6572 = vpow2.f32 %v4673_v3  ;;  %v4674_v7 = vmul.f32 -1.442695, %v3005_v44  ;;  %v4675_v17 = vmul.f32 -1.442695, %v3016_v47  ;;  %v8806_v47 = vld [vmem:[#allocation11_spill] sm:$0xff] }
 0x6ff   :  { %v2830_v60 = vmul.f32 %v6571_v40, %v6569_v45 }
 0x700   :  { %6574 = vpow2.f32 %v4674_v7 }
 0x701   :  { %3094 = vmatmul.mubr.f32.vlgmr.msra.gmra.mrb[22].mxu0 %v2830_v60  ;;  %3165 = vmatmul.mubr.f32.vlgmr.msra.gmra.mrb[22].mxu1 %v2830_v60  ;;  %6576 = vpow2.f32 %v4675_v17  ;;  %v8807_v17 = vld [vmem:[#allocation12_spill] sm:$0xff] }
 0x702   :  { %5885 = vmatpush1.bf16.msra.mxu0 %v8578_v9  ;;  %5917 = vmatpush1.bf16.msra.mxu1 %v8579_v6 }
 0x703   :  { %5887 = vmatprep.subr.bf16.mxu0 %v8580_v5  ;;  %5919 = vmatprep.subr.bf16.mxu1 %v8635_v15 }
 0x704   :  { %3235 = vmatprep.mubr.f32.mxu0 %v8524_v33  ;;  %3306 = vmatprep.mubr.f32.mxu1 %v8524_v33 }
 0x706   :  { %5889 = vmatpush1.bf16.msra.mxu0 %v8636_v50  ;;  %5921 = vmatpush1.bf16.msra.mxu1 %v8583_v62 }
 0x707   :  { %5891 = vmatprep.subr.bf16.mxu0 %v8637_v39  ;;  %5923 = vmatprep.subr.bf16.mxu1 %v8638_v55 }
 0x708   :  { %v6573_v52 = vpop.eup %6572 }
 0x709   :  { %v3001_v56 = vadd.f32 1.0, %v6573_v52  ;;  %v8808_v52 = vld [vmem:[#allocation13_spill] sm:$0xff] }
 0x70a   :  { %v6575_v51 = vpop.eup %6574  ;;  %5893 = vmatpush1.bf16.msra.mxu0 %v8639_v22  ;;  %5925 = vmatpush1.bf16.msra.mxu1 %v8587_v63 }
 0x70b   :  { %6578 = vrcp.f32 %v3001_v56  ;;  %v3010_v2 = vadd.f32 1.0, %v6575_v51  ;;  %5895 = vmatprep.subr.bf16.mxu0 %v8692_v8  ;;  %5927 = vmatprep.subr.bf16.mxu1 %v8693_v26  ;;  %v6577_v35 = vpop.eup %6576  ;;  %v8810_v56 = vld [vmem:[#allocation15_spill] sm:$0xff]  ;;  %v8811_v51 = vld [vmem:[#allocation16_spill] sm:$0xff] }
 0x70c   :  { %6580 = vtanh.f32 %v3013_v12  ;;  %v3021_v3 = vadd.f32 1.0, %v6577_v35  ;;  %v8809_v12 = vld [vmem:[#allocation14_spill] sm:$0xff] }
 0x70d   :  { %6582 = vrcp.f32 %v3010_v2  ;;  %v8812_v2 = vld [vmem:[#allocation17_spill] sm:$0xff]  ;;  %v8813_v35 = vld [vmem:[#allocation18_spill] sm:$0xff] }
 0x70e   :  { %5897 = vmatpush1.bf16.msra.mxu0 %v8694_v13  ;;  %5929 = vmatpush1.bf16.msra.mxu1 %v8695_v24  ;;  %6584 = vrcp.f32 %v3021_v3  ;;  %v8817_v3 = vld [vmem:[#allocation22_spill] sm:$0xff] }
 0x70f   :  { %5899 = vmatprep.subr.bf16.mxu0 %v8696_v57  ;;  %5931 = vmatprep.subr.bf16.mxu1 %v8697_v21 }
 0x712   :  { %5901 = vmatpush1.bf16.msra.mxu0 %v8698_v37  ;;  %5933 = vmatpush1.bf16.msra.mxu1 %v8699_v38 }
 0x713   :  { %5903 = vmatprep.subr.bf16.mxu0 %v8648_v11  ;;  %5935 = vmatprep.subr.bf16.mxu1 %v8700_v20 }
 0x715   :  { %v6579_v53 = vpop.eup %6578 }
 0x716   :  { %v6581_v0 = vpop.eup %6580  ;;  %5905 = vmatpush1.bf16.msra.mxu0 %v8650_v61  ;;  %5937 = vmatpush1.bf16.msra.mxu1 %v7273_v29 }
 0x717   :  { %v6583_v54 = vpop.eup %6582  ;;  %5907 = vmatprep.subr.bf16.mxu0 %v8651_v42  ;;  %5939 = vmatprep.subr.bf16.mxu1 %v8652_v34  ;;  %v3025_v45 = vmul.f32 %v6581_v0, %v6579_v53  ;;  %v8814_v53 = vld [vmem:[#allocation19_spill] sm:$0xff]  ;;  %v8815_v0 = vld [vmem:[#allocation20_spill] sm:$0xff] }
 0x718   :  { %v3024_v44 = vmul.f32 %v6583_v54, %v7797_v58  ;;  %v6585_v58 = vpop.eup %6584  ;;  %v8816_v54 = vld [vmem:[#allocation21_spill] sm:$0xff] }
 0x71a   :  { %5909 = vmatpush1.bf16.msra.mxu0 %v8599_v1  ;;  %5941 = vmatpush1.bf16.msra.mxu1 %v8600_v59  ;;  %v7916_v40 = vadd.f32 %v3025_v45, %v3024_v44  ;;  %v8818_v44 = vld [vmem:[#allocation23_spill] sm:$0xff]  ;;  %v8819_v45 = vld [vmem:[#allocation24_spill] sm:$0xff] }
 0x71b   :  { %5911 = vmatprep.subr.bf16.mxu0 %v8601_v25  ;;  %5943 = vmatprep.subr.bf16.mxu1 %v8602_v30 }
 0x71c   :  { %6586 = vtanh.f32 %v7916_v40 }
 0x71e   :  { %5913 = vmatpush1.bf16.msra.mxu0 %v8603_v49  ;;  %5945 = vmatpush1.bf16.msra.mxu1 %v8604_v16 }
 0x71f   :  { %5947 = vmatprep.subr.bf16.mxu0 %v8605_v31  ;;  %5979 = vmatprep.subr.bf16.mxu1 %v8606_v4 }
 0x726   :  { %v6587_v7 = vpop.eup %6586 }
 0x727   :  { %v3028_v60 = vmul.f32 %v6587_v7, %v6585_v58  ;;  %v8820_v58 = vld [vmem:[#allocation25_spill] sm:$0xff]  ;;  %v8821_v7 = vld [vmem:[#allocation26_spill] sm:$0xff] }
 0x729   :  { %3236 = vmatmul.mubr.f32.vlgmr.msra.gmra.mrb[22].mxu0 %v3028_v60  ;;  %3307 = vmatmul.mubr.f32.vlgmr.msra.gmra.mrb[22].mxu1 %v3028_v60 }
 0x72a   :  { %5949 = vmatpush1.bf16.msra.mxu0 %v6835_v10  ;;  %5981 = vmatpush1.bf16.msra.mxu1 %v6847_v14 }
 0x72b   :  { %5951 = vmatprep.subr.bf16.mxu0 %v6860_v18  ;;  %5983 = vmatprep.subr.bf16.mxu1 %v6862_v19 }
 0x72c   :  { %3407 = vmatprep.mubr.f32.mxu0 %v8524_v33  ;;  %3478 = vmatprep.mubr.f32.mxu1 %v8524_v33 }
 0x72e   :  { %5953 = vmatpush1.bf16.msra.mxu0 %v6874_v23  ;;  %5985 = vmatpush1.bf16.msra.mxu1 %v6887_v27 }
 0x72f   :  { %5955 = vmatprep.subr.bf16.mxu0 %v6889_v28  ;;  %5987 = vmatprep.subr.bf16.mxu1 %v6900_v32 }
 0x732   :  { %5957 = vmatpush1.bf16.msra.mxu0 %v6912_v36  ;;  %5989 = vmatpush1.bf16.msra.mxu1 %v8806_v47 }
 0x733   :  { %5959 = vmatprep.subr.bf16.mxu0 %v8807_v17  ;;  %5991 = vmatprep.subr.bf16.mxu1 %v8808_v52 }
 0x736   :  { %5961 = vmatpush1.bf16.msra.mxu0 %v8809_v12  ;;  %5993 = vmatpush1.bf16.msra.mxu1 %v8810_v56 }
 0x737   :  { %5963 = vmatprep.subr.bf16.mxu0 %v8811_v51  ;;  %5995 = vmatprep.subr.bf16.mxu1 %v8812_v2  ;;  %v8822_v51 = vld [vmem:[#allocation27_spill] sm:$0xff]  ;;  %v8823_v2 = vld [vmem:[#allocation28_spill] sm:$0xff] }
 0x73a   :  { %5965 = vmatpush1.bf16.msra.mxu0 %v8813_v35  ;;  %5997 = vmatpush1.bf16.msra.mxu1 %v8814_v53  ;;  %v8824_v35 = vld [vmem:[#allocation29_spill] sm:$0xff]  ;;  %v8825_v53 = vld [vmem:[#allocation30_spill] sm:$0xff] }
 0x73b   :  { %5967 = vmatprep.subr.bf16.mxu0 %v8815_v0  ;;  %5999 = vmatprep.subr.bf16.mxu1 %v8816_v54  ;;  %v8826_v0 = vld [vmem:[#allocation31_spill] sm:$0xff]  ;;  %v8827_v54 = vld [vmem:[#allocation32_spill] sm:$0xff] }
 0x73e   :  { %5969 = vmatpush1.bf16.msra.mxu0 %v8817_v3  ;;  %6001 = vmatpush1.bf16.msra.mxu1 %v8818_v44  ;;  %v8828_v3 = vld [vmem:[#allocation33_spill] sm:$0xff]  ;;  %v8861_v44 = vld [vmem:[#allocation95_spill] sm:$0xff] }
 0x73f   :  { %5971 = vmatprep.subr.bf16.mxu0 %v8819_v45  ;;  %6003 = vmatprep.subr.bf16.mxu1 %v8820_v58  ;;  %v8829_v45 = vld [vmem:[#allocation34_spill] sm:$0xff]  ;;  %v8830_v58 = vld [vmem:[#allocation35_spill] sm:$0xff] }
 0x742   :  { %5973 = vmatpush1.bf16.msra.mxu0 %v8821_v7  ;;  %6005 = vmatpush1.bf16.msra.mxu1 %v8822_v51  ;;  %v8831_v7 = vld [vmem:[#allocation36_spill] sm:$0xff]  ;;  %v8832_v51 = vld [vmem:[#allocation37_spill] sm:$0xff] }
 0x743   :  { %5975 = vmatprep.subr.bf16.mxu0 %v8823_v2  ;;  %6007 = vmatprep.subr.bf16.mxu1 %v8824_v35  ;;  %v8842_v35 = vld [vmem:[#allocation47_spill] sm:$0xff]  ;;  %v8843_v2 = vld [vmem:[#allocation48_spill] sm:$0xff] }
 0x746   :  { %5977 = vmatpush1.bf16.msra.mxu0 %v8825_v53  ;;  %6009 = vmatpush1.bf16.msra.mxu1 %v8826_v0  ;;  %v8833_v53 = vld [vmem:[#allocation38_spill] sm:$0xff]  ;;  %v8834_v0 = vld [vmem:[#allocation39_spill] sm:$0xff] }
 0x747   :  { %6011 = vmatprep.subr.bf16.mxu0 %v8827_v54  ;;  %6043 = vmatprep.subr.bf16.mxu1 %v8828_v3  ;;  %v8835_v54 = vld [vmem:[#allocation40_spill] sm:$0xff]  ;;  %v8836_v3 = vld [vmem:[#allocation41_spill] sm:$0xff] }
 0x749   :  { %3408 = vmatmul.mubr.f32.vlgmr.msra.gmra.mrb[24].mxu0 %v3028_v60  ;;  %3479 = vmatmul.mubr.f32.vlgmr.msra.gmra.mrb[24].mxu1 %v3028_v60  ;;  %v8837_v60 = vld [vmem:[#allocation42_spill] sm:$0xff] }
 0x74a   :  { %6013 = vmatpush1.bf16.msra.mxu0 %v8829_v45  ;;  %6045 = vmatpush1.bf16.msra.mxu1 %v8830_v58  ;;  %v8838_v45 = vld [vmem:[#allocation43_spill] sm:$0xff]  ;;  %v8839_v58 = vld [vmem:[#allocation44_spill] sm:$0xff] }
 0x74b   :  { %6015 = vmatprep.subr.bf16.mxu0 %v8831_v7  ;;  %6047 = vmatprep.subr.bf16.mxu1 %v8832_v51  ;;  %v8840_v7 = vld [vmem:[#allocation45_spill] sm:$0xff]  ;;  %v8841_v51 = vld [vmem:[#allocation46_spill] sm:$0xff] }
 0x74c   :  { %3603 = vmatprep.mubr.f32.mxu0 %v8524_v33  ;;  %3674 = vmatprep.mubr.f32.mxu1 %v8524_v33 }
 0x74e   :  { %6017 = vmatpush1.bf16.msra.mxu0 %v8833_v53  ;;  %6049 = vmatpush1.bf16.msra.mxu1 %v8834_v0  ;;  %v8844_v53 = vld [vmem:[#allocation49_spill] sm:$0xff]  ;;  %v8845_v0 = vld [vmem:[#allocation50_spill] sm:$0xff] }
 0x74f   :  { %6019 = vmatprep.subr.bf16.mxu0 %v8835_v54  ;;  %6051 = vmatprep.subr.bf16.mxu1 %v8836_v3  ;;  %v8846_v54 = vld [vmem:[#allocation51_spill] sm:$0xff]  ;;  %v8847_v3 = vld [vmem:[#allocation52_spill] sm:$0xff] }
 0x752   :  { %6021 = vmatpush1.bf16.msra.mxu0 %v8837_v60  ;;  %6053 = vmatpush1.bf16.msra.mxu1 %v8838_v45  ;;  %v8848_v60 = vld [vmem:[#allocation53_spill] sm:$0xff]  ;;  %v8849_v45 = vld [vmem:[#allocation54_spill] sm:$0xff] }
 0x753   :  { %6023 = vmatprep.subr.bf16.mxu0 %v8839_v58  ;;  %6055 = vmatprep.subr.bf16.mxu1 %v8840_v7  ;;  %v8850_v58 = vld [vmem:[#allocation55_spill] sm:$0xff]  ;;  %v8851_v7 = vld [vmem:[#allocation56_spill] sm:$0xff] }
 0x756   :  { %6025 = vmatpush1.bf16.msra.mxu0 %v8841_v51  ;;  %6057 = vmatpush1.bf16.msra.mxu1 %v8842_v35  ;;  %v8852_v51 = vld [vmem:[#allocation57_spill] sm:$0xff]  ;;  %v8853_v35 = vld [vmem:[#allocation58_spill] sm:$0xff] }
 0x757   :  { %6027 = vmatprep.subr.bf16.mxu0 %v8843_v2  ;;  %6059 = vmatprep.subr.bf16.mxu1 %v8844_v53  ;;  %v8854_v2 = vld [vmem:[#allocation59_spill] sm:$0xff]  ;;  %v8855_v53 = vld [vmem:[#allocation60_spill] sm:$0xff] }
 0x75a   :  { %6029 = vmatpush1.bf16.msra.mxu0 %v8845_v0  ;;  %6061 = vmatpush1.bf16.msra.mxu1 %v8846_v54  ;;  %v8856_v0 = vld [vmem:[#allocation61_spill] sm:$0xff]  ;;  %v8857_v54 = vld [vmem:[#allocation62_spill] sm:$0xff] }
 0x75b   :  { %6031 = vmatprep.subr.bf16.mxu0 %v8847_v3  ;;  %6063 = vmatprep.subr.bf16.mxu1 %v8848_v60  ;;  %v8858_v3 = vld [vmem:[#allocation63_spill] sm:$0xff]  ;;  %v8859_v60 = vld [vmem:[#allocation64_spill] sm:$0xff] }
 0x75e   :  { %6033 = vmatpush1.bf16.msra.mxu0 %v8849_v45  ;;  %6065 = vmatpush1.bf16.msra.mxu1 %v8850_v58  ;;  %v8860_v45 = vld [vmem:[#allocation65_spill] sm:$0xff] }
 0x75f   :  { %6035 = vmatprep.subr.bf16.mxu0 %v8851_v7  ;;  %6067 = vmatprep.subr.bf16.mxu1 %v8852_v51 }
 0x762   :  { %6037 = vmatpush1.bf16.msra.mxu0 %v8853_v35  ;;  %6069 = vmatpush1.bf16.msra.mxu1 %v8854_v2 }
 0x763   :  { %6039 = vmatprep.subr.bf16.mxu0 %v8855_v53  ;;  %6071 = vmatprep.subr.bf16.mxu1 %v8856_v0 }
 0x766   :  { %6041 = vmatpush1.bf16.msra.mxu0 %v8857_v54  ;;  %6073 = vmatpush1.bf16.msra.mxu1 %v8858_v3  ;;  %v8862_v3 = vld [vmem:[#allocation96_spill] sm:$0xff] }
 0x767   :  { %6075 = vmatprep.subr.bf16.mxu0 %v8859_v60  ;;  %6107 = vmatprep.subr.bf16.mxu1 %v8860_v45 }
 0x7fc   :  { %v3237_v58 = vpop.f32.mrb[22].mxu0  ;;  %v3308_v7 = vpop.f32.mrb[22].mxu1 }
 0x7fd   :  { %v3313_v51 = vadd.f32 %v3237_v58, %v8861_v44  ;;  %v3239_v56 = vpop.f32.mrb[23].mxu0  ;;  %v3310_v35 = vpop.f32.mrb[23].mxu1  ;;  %v3315_v52 = vadd.f32 %v3308_v7, %v8862_v3 }
 0x7fe   :  { %v3314_v2 = vadd.f32 %v3239_v56, %v7391_v48  ;;  %v3316_v54 = vadd.f32 %v3310_v35, %v7396_v46 }
 0x7ff   :  { %v4676_v12 = vmul.f32 -1.442695, %v3313_v51 }
 0x800   :  { %v4677_v53 = vmul.f32 -1.442695, %v3314_v2  ;;  %v4678_v0 = vmul.f32 -1.442695, %v3316_v54 }
 0x801   :  { %6588 = vpow2.f32 %v4676_v12 }
 0x802   :  { %6590 = vpow2.f32 %v4677_v53 }
 0x803   :  { %6592 = vpow2.f32 %v4678_v0 }
 0x804   :  { %6594 = vtanh.f32 %v3315_v52 }
 0x80b   :  { %v6589_v60 = vpop.eup %6588 }
 0x80c   :  { %v6591_v17 = vpop.eup %6590  ;;  %v3320_v45 = vadd.f32 1.0, %v6589_v60 }
 0x80d   :  { %v3326_v47 = vadd.f32 1.0, %v6591_v17  ;;  %v6593_v58 = vpop.eup %6592 }
 0x80e   :  { %6596 = vrcp.f32 %v3320_v45  ;;  %v6595_v44 = vpop.eup %6594  ;;  %v3333_v12 = vadd.f32 1.0, %v6593_v58 }
 0x80f   :  { %6598 = vrcp.f32 %v3326_v47 }
 0x810   :  { %6600 = vrcp.f32 %v3333_v12 }
 0x818   :  { %v6597_v56 = vpop.eup %6596 }
 0x819   :  { %v6599_v51 = vpop.eup %6598  ;;  %v3337_v2 = vmul.f32 %v6597_v56, %v6595_v44  ;;  %v4679_v44 = vld [vmem:[%s8276_s0 + $0x30] sm:$0xff] }
 0x81a   :  { %v3336_v53 = vmul.f32 %v6599_v51, %v7879_v41  ;;  %v6601_v51 = vpop.eup %6600 }
 0x81c   :  { %v7998_v35 = vadd.f32 %v3337_v2, %v3336_v53  ;;  %v3409_v54 = vpop.f32.mrb[24].mxu0  ;;  %v3480_v7 = vpop.f32.mrb[24].mxu1 }
 0x81d   :  { %v3411_v3 = vpop.f32.mrb[25].mxu0  ;;  %v3482_v60 = vpop.f32.mrb[25].mxu1 }
 0x81e   :  { %v3489_v0 = vcombine.low %v3409_v54, %v3411_v3  ;;  %v3490_v52 = vcombine.low %v3480_v7, %v3482_v60  ;;  %6602 = vtanh.f32 %v7998_v35 }
 0x820   :  { %v3497_v47 = vrot.slane %v3489_v0, %v7306_v43  ;;  %v3504_v17 = vrot.slane %v3490_v52, %v7306_v43 }
 0x822   :  { %v3505_v41 = vcombine.low %v3497_v47, %v3504_v17 }
 0x824   :  { %v3507_v45 = vadd.f32 %v4679_v44, %v3505_v41 }
 0x826   :  { %v4680_v58 = vmul.f32 -1.442695, %v3507_v45  ;;  %v3515_v56 = vrot.slane %v3507_v45, 2  ;;  %v3526_v53 = vrot.slane %v3507_v45, 6  ;;  %v3523_v60 = vrot.slane %v3507_v45, 4 }
 0x828   :  { %v6603_v2 = vpop.eup %6602  ;;  %6604 = vpow2.f32 %v4680_v58  ;;  %v4681_v12 = vmul.f32 -1.442695, %v3515_v56  ;;  %v4682_v54 = vmul.f32 -1.442695, %v3526_v53  ;;  %v8874_v53 = vld [vmem:[#allocation22_spill] sm:$0xff] }
 0x829   :  { %v3340_v3 = vmul.f32 %v6603_v2, %v6601_v51 }
 0x82a   :  { %6606 = vpow2.f32 %v4681_v12 }
 0x82b   :  { %3604 = vmatmul.mubr.f32.vlgmr.msra.gmra.mrb[26].mxu0 %v3340_v3  ;;  %3675 = vmatmul.mubr.f32.vlgmr.msra.gmra.mrb[26].mxu1 %v3340_v3  ;;  %6608 = vpow2.f32 %v4682_v54  ;;  %v8875_v54 = vld [vmem:[#allocation23_spill] sm:$0xff] }
 0x82c   :  { %6077 = vmatpush1.bf16.msra.mxu0 %v8578_v9  ;;  %6109 = vmatpush1.bf16.msra.mxu1 %v8579_v6 }
 0x82d   :  { %6079 = vmatprep.subr.bf16.mxu0 %v8580_v5  ;;  %6111 = vmatprep.subr.bf16.mxu1 %v8635_v15 }
 0x82e   :  { %3745 = vmatprep.mubr.f32.mxu0 %v8524_v33  ;;  %3816 = vmatprep.mubr.f32.mxu1 %v8524_v33 }
 0x830   :  { %6081 = vmatpush1.bf16.msra.mxu0 %v8636_v50  ;;  %6113 = vmatpush1.bf16.msra.mxu1 %v8583_v62 }
 0x831   :  { %6083 = vmatprep.subr.bf16.mxu0 %v8637_v39  ;;  %6115 = vmatprep.subr.bf16.mxu1 %v8638_v55 }
 0x832   :  { %v6605_v7 = vpop.eup %6604 }
 0x833   :  { %v3511_v0 = vadd.f32 1.0, %v6605_v7  ;;  %v8876_v7 = vld [vmem:[#allocation24_spill] sm:$0xff] }
 0x834   :  { %v6607_v52 = vpop.eup %6606  ;;  %6085 = vmatpush1.bf16.msra.mxu0 %v8639_v22  ;;  %6117 = vmatpush1.bf16.msra.mxu1 %v8587_v63 }
 0x835   :  { %6610 = vrcp.f32 %v3511_v0  ;;  %v3520_v47 = vadd.f32 1.0, %v6607_v52  ;;  %6087 = vmatprep.subr.bf16.mxu0 %v8692_v8  ;;  %6119 = vmatprep.subr.bf16.mxu1 %v8693_v26  ;;  %v6609_v17 = vpop.eup %6608  ;;  %v8878_v0 = vld [vmem:[#allocation26_spill] sm:$0xff]  ;;  %v8879_v52 = vld [vmem:[#allocation27_spill] sm:$0xff] }
 0x836   :  { %6612 = vtanh.f32 %v3523_v60  ;;  %v3531_v58 = vadd.f32 1.0, %v6609_v17  ;;  %v8877_v60 = vld [vmem:[#allocation25_spill] sm:$0xff] }
 0x837   :  { %6614 = vrcp.f32 %v3520_v47  ;;  %v8880_v47 = vld [vmem:[#allocation28_spill] sm:$0xff]  ;;  %v8881_v17 = vld [vmem:[#allocation29_spill] sm:$0xff] }
 0x838   :  { %6089 = vmatpush1.bf16.msra.mxu0 %v8694_v13  ;;  %6121 = vmatpush1.bf16.msra.mxu1 %v8695_v24  ;;  %6616 = vrcp.f32 %v3531_v58  ;;  %v8885_v58 = vld [vmem:[#allocation33_spill] sm:$0xff] }
 0x839   :  { %6091 = vmatprep.subr.bf16.mxu0 %v8696_v57  ;;  %6123 = vmatprep.subr.bf16.mxu1 %v8697_v21 }
 0x83c   :  { %6093 = vmatpush1.bf16.msra.mxu0 %v8698_v37  ;;  %6125 = vmatpush1.bf16.msra.mxu1 %v8699_v38 }
 0x83d   :  { %6095 = vmatprep.subr.bf16.mxu0 %v8648_v11  ;;  %6127 = vmatprep.subr.bf16.mxu1 %v8700_v20 }
 0x83f   :  { %v6611_v44 = vpop.eup %6610 }
 0x840   :  { %v6613_v41 = vpop.eup %6612  ;;  %6097 = vmatpush1.bf16.msra.mxu0 %v8650_v61  ;;  %6129 = vmatpush1.bf16.msra.mxu1 %v7273_v29 }
 0x841   :  { %v6615_v45 = vpop.eup %6614  ;;  %6099 = vmatprep.subr.bf16.mxu0 %v8651_v42  ;;  %6131 = vmatprep.subr.bf16.mxu1 %v8652_v34  ;;  %v3535_v51 = vmul.f32 %v6613_v41, %v6611_v44  ;;  %v8882_v44 = vld [vmem:[#allocation30_spill] sm:$0xff]  ;;  %v8883_v41 = vld [vmem:[#allocation31_spill] sm:$0xff] }
 0x842   :  { %v3534_v56 = vmul.f32 %v6615_v45, %v7916_v40  ;;  %v6617_v40 = vpop.eup %6616  ;;  %v8884_v45 = vld [vmem:[#allocation32_spill] sm:$0xff] }
 0x844   :  { %6101 = vmatpush1.bf16.msra.mxu0 %v8599_v1  ;;  %6133 = vmatpush1.bf16.msra.mxu1 %v8600_v59  ;;  %v8035_v2 = vadd.f32 %v3535_v51, %v3534_v56  ;;  %v8886_v56 = vld [vmem:[#allocation34_spill] sm:$0xff]  ;;  %v8887_v51 = vld [vmem:[#allocation35_spill] sm:$0xff] }
 0x845   :  { %6103 = vmatprep.subr.bf16.mxu0 %v8601_v25  ;;  %6135 = vmatprep.subr.bf16.mxu1 %v8602_v30 }
 0x846   :  { %6618 = vtanh.f32 %v8035_v2 }
 0x848   :  { %6105 = vmatpush1.bf16.msra.mxu0 %v8603_v49  ;;  %6137 = vmatpush1.bf16.msra.mxu1 %v8604_v16 }
 0x849   :  { %6139 = vmatprep.subr.bf16.mxu0 %v8605_v31  ;;  %6171 = vmatprep.subr.bf16.mxu1 %v8606_v4  ;;  %v8867_v31 = vld [vmem:[#allocation15_spill] sm:$0xff]  ;;  %v8868_v4 = vld [vmem:[#allocation16_spill] sm:$0xff] }
 0x850   :  { %v6619_v12 = vpop.eup %6618 }
 0x851   :  { %v3538_v3 = vmul.f32 %v6619_v12, %v6617_v40  ;;  %v8888_v40 = vld [vmem:[#allocation36_spill] sm:$0xff]  ;;  %v8889_v12 = vld [vmem:[#allocation37_spill] sm:$0xff] }
 0x853   :  { %3746 = vmatmul.mubr.f32.vlgmr.msra.gmra.mrb[26].mxu0 %v3538_v3  ;;  %3817 = vmatmul.mubr.f32.vlgmr.msra.gmra.mrb[26].mxu1 %v3538_v3 }
 0x854   :  { %6141 = vmatpush1.bf16.msra.mxu0 %v6835_v10  ;;  %6173 = vmatpush1.bf16.msra.mxu1 %v6847_v14  ;;  %v8863_v10 = vld [vmem:[#allocation11_spill] sm:$0xff]  ;;  %v8864_v14 = vld [vmem:[#allocation12_spill] sm:$0xff] }
 0x855   :  { %6143 = vmatprep.subr.bf16.mxu0 %v6860_v18  ;;  %6175 = vmatprep.subr.bf16.mxu1 %v6862_v19  ;;  %v8865_v18 = vld [vmem:[#allocation13_spill] sm:$0xff]  ;;  %v8866_v19 = vld [vmem:[#allocation14_spill] sm:$0xff] }
 0x856   :  { %3917 = vmatprep.mubr.f32.mxu0 %v8524_v33  ;;  %3988 = vmatprep.mubr.f32.mxu1 %v8524_v33 }
 0x858   :  { %6145 = vmatpush1.bf16.msra.mxu0 %v6874_v23  ;;  %6177 = vmatpush1.bf16.msra.mxu1 %v6887_v27  ;;  %v8869_v23 = vld [vmem:[#allocation17_spill] sm:$0xff]  ;;  %v8870_v27 = vld [vmem:[#allocation18_spill] sm:$0xff] }
 0x859   :  { %6147 = vmatprep.subr.bf16.mxu0 %v6889_v28  ;;  %6179 = vmatprep.subr.bf16.mxu1 %v6900_v32  ;;  %v8871_v28 = vld [vmem:[#allocation19_spill] sm:$0xff]  ;;  %v8872_v32 = vld [vmem:[#allocation20_spill] sm:$0xff] }
 0x85c   :  { %6149 = vmatpush1.bf16.msra.mxu0 %v6912_v36  ;;  %6181 = vmatpush1.bf16.msra.mxu1 %v8863_v10  ;;  %v8873_v36 = vld [vmem:[#allocation21_spill] sm:$0xff]  ;;  %v8890_v10 = vld [vmem:[#allocation38_spill] sm:$0xff] }
 0x85d   :  { %6151 = vmatprep.subr.bf16.mxu0 %v8864_v14  ;;  %6183 = vmatprep.subr.bf16.mxu1 %v8865_v18  ;;  %v8891_v14 = vld [vmem:[#allocation39_spill] sm:$0xff]  ;;  %v8892_v18 = vld [vmem:[#allocation40_spill] sm:$0xff] }
 0x860   :  { %6153 = vmatpush1.bf16.msra.mxu0 %v8866_v19  ;;  %6185 = vmatpush1.bf16.msra.mxu1 %v8867_v31  ;;  %v8893_v19 = vld [vmem:[#allocation41_spill] sm:$0xff]  ;;  %v8895_v31 = vld [vmem:[#allocation43_spill] sm:$0xff] }
 0x861   :  { %6155 = vmatprep.subr.bf16.mxu0 %v8868_v4  ;;  %6187 = vmatprep.subr.bf16.mxu1 %v8869_v23  ;;  %v8896_v4 = vld [vmem:[#allocation44_spill] sm:$0xff]  ;;  %v8897_v23 = vld [vmem:[#allocation45_spill] sm:$0xff] }
 0x864   :  { %6157 = vmatpush1.bf16.msra.mxu0 %v8870_v27  ;;  %6189 = vmatpush1.bf16.msra.mxu1 %v8871_v28  ;;  %v8898_v27 = vld [vmem:[#allocation46_spill] sm:$0xff]  ;;  %v8899_v28 = vld [vmem:[#allocation47_spill] sm:$0xff] }
 0x865   :  { %6159 = vmatprep.subr.bf16.mxu0 %v8872_v32  ;;  %6191 = vmatprep.subr.bf16.mxu1 %v8873_v36  ;;  %v8900_v32 = vld [vmem:[#allocation48_spill] sm:$0xff]  ;;  %v8901_v36 = vld [vmem:[#allocation49_spill] sm:$0xff] }
 0x868   :  { %6161 = vmatpush1.bf16.msra.mxu0 %v8874_v53  ;;  %6193 = vmatpush1.bf16.msra.mxu1 %v8875_v54  ;;  %v8902_v53 = vld [vmem:[#allocation50_spill] sm:$0xff]  ;;  %v8903_v54 = vld [vmem:[#allocation51_spill] sm:$0xff] }
 0x869   :  { %6163 = vmatprep.subr.bf16.mxu0 %v8876_v7  ;;  %6195 = vmatprep.subr.bf16.mxu1 %v8877_v60  ;;  %v8904_v7 = vld [vmem:[#allocation52_spill] sm:$0xff]  ;;  %v8905_v60 = vld [vmem:[#allocation53_spill] sm:$0xff] }
 0x86c   :  { %6165 = vmatpush1.bf16.msra.mxu0 %v8878_v0  ;;  %6197 = vmatpush1.bf16.msra.mxu1 %v8879_v52  ;;  %v8906_v0 = vld [vmem:[#allocation54_spill] sm:$0xff]  ;;  %v8907_v52 = vld [vmem:[#allocation55_spill] sm:$0xff] }
 0x86d   :  { %6167 = vmatprep.subr.bf16.mxu0 %v8880_v47  ;;  %6199 = vmatprep.subr.bf16.mxu1 %v8881_v17  ;;  %v8908_v47 = vld [vmem:[#allocation56_spill] sm:$0xff]  ;;  %v8909_v17 = vld [vmem:[#allocation57_spill] sm:$0xff] }
 0x870   :  { %6169 = vmatpush1.bf16.msra.mxu0 %v8882_v44  ;;  %6201 = vmatpush1.bf16.msra.mxu1 %v8883_v41  ;;  %v8910_v44 = vld [vmem:[#allocation58_spill] sm:$0xff]  ;;  %v8911_v41 = vld [vmem:[#allocation59_spill] sm:$0xff] }
 0x871   :  { %6203 = vmatprep.subr.bf16.mxu0 %v8884_v45  ;;  %6235 = vmatprep.subr.bf16.mxu1 %v8885_v58  ;;  %v8912_v45 = vld [vmem:[#allocation60_spill] sm:$0xff]  ;;  %v8913_v58 = vld [vmem:[#allocation61_spill] sm:$0xff] }
 0x873   :  { %3918 = vmatmul.mubr.f32.vlgmr.msra.gmra.mrb[28].mxu0 %v3538_v3  ;;  %3989 = vmatmul.mubr.f32.vlgmr.msra.gmra.mrb[28].mxu1 %v3538_v3  ;;  %v8894_v3 = vld [vmem:[#allocation42_spill] sm:$0xff] }
 0x874   :  { %6205 = vmatpush1.bf16.msra.mxu0 %v8886_v56  ;;  %6237 = vmatpush1.bf16.msra.mxu1 %v8887_v51  ;;  %v8914_v56 = vld [vmem:[#allocation62_spill] sm:$0xff]  ;;  %v8915_v51 = vld [vmem:[#allocation63_spill] sm:$0xff] }
 0x875   :  { %6207 = vmatprep.subr.bf16.mxu0 %v8888_v40  ;;  %6239 = vmatprep.subr.bf16.mxu1 %v8889_v12  ;;  %v8916_v40 = vld [vmem:[#allocation64_spill] sm:$0xff]  ;;  %v8917_v12 = vld [vmem:[#allocation65_spill] sm:$0xff] }
 0x876   :  { %4113 = vmatprep.mubr.f32.mxu0 %v8524_v33  ;;  %4184 = vmatprep.mubr.f32.mxu1 %v8524_v33 }
 0x878   :  { %6209 = vmatpush1.bf16.msra.mxu0 %v8890_v10  ;;  %6241 = vmatpush1.bf16.msra.mxu1 %v8891_v14 }
 0x879   :  { %6211 = vmatprep.subr.bf16.mxu0 %v8892_v18  ;;  %6243 = vmatprep.subr.bf16.mxu1 %v8893_v19  ;;  %v8918_v18 = vld [vmem:[#allocation95_spill] sm:$0xff] }
 0x87c   :  { %6213 = vmatpush1.bf16.msra.mxu0 %v8894_v3  ;;  %6245 = vmatpush1.bf16.msra.mxu1 %v8895_v31 }
 0x87d   :  { %6215 = vmatprep.subr.bf16.mxu0 %v8896_v4  ;;  %6247 = vmatprep.subr.bf16.mxu1 %v8897_v23 }
 0x880   :  { %6217 = vmatpush1.bf16.msra.mxu0 %v8898_v27  ;;  %6249 = vmatpush1.bf16.msra.mxu1 %v8899_v28 }
 0x881   :  { %6219 = vmatprep.subr.bf16.mxu0 %v8900_v32  ;;  %6251 = vmatprep.subr.bf16.mxu1 %v8901_v36  ;;  %v8919_v36 = vld [vmem:[#allocation96_spill] sm:$0xff] }
 0x884   :  { %6221 = vmatpush1.bf16.msra.mxu0 %v8902_v53  ;;  %6253 = vmatpush1.bf16.msra.mxu1 %v8903_v54 }
 0x885   :  { %6223 = vmatprep.subr.bf16.mxu0 %v8904_v7  ;;  %6255 = vmatprep.subr.bf16.mxu1 %v8905_v60 }
 0x888   :  { %6225 = vmatpush1.bf16.msra.mxu0 %v8906_v0  ;;  %6257 = vmatpush1.bf16.msra.mxu1 %v8907_v52 }
 0x889   :  { %6227 = vmatprep.subr.bf16.mxu0 %v8908_v47  ;;  %6259 = vmatprep.subr.bf16.mxu1 %v8909_v17 }
 0x88c   :  { %6229 = vmatpush1.bf16.msra.mxu0 %v8910_v44  ;;  %6261 = vmatpush1.bf16.msra.mxu1 %v8911_v41 }
 0x88d   :  { %6231 = vmatprep.subr.bf16.mxu0 %v8912_v45  ;;  %6263 = vmatprep.subr.bf16.mxu1 %v8913_v58 }
 0x890   :  { %6233 = vmatpush1.bf16.msra.mxu0 %v8914_v56  ;;  %6265 = vmatpush1.bf16.msra.mxu1 %v8915_v51 }
 0x891   :  { %6267 = vmatprep.subr.bf16.mxu0 %v8916_v40  ;;  %6299 = vmatprep.subr.bf16.mxu1 %v8917_v12 }
 0x926   :  { %v3747_v10 = vpop.f32.mrb[26].mxu0  ;;  %v3818_v14 = vpop.f32.mrb[26].mxu1 }
 0x927   :  { %v3823_v19 = vadd.f32 %v3747_v10, %v8918_v18  ;;  %v3749_v3 = vpop.f32.mrb[27].mxu0  ;;  %v3820_v31 = vpop.f32.mrb[27].mxu1  ;;  %v3825_v53 = vadd.f32 %v3818_v14, %v8919_v36 }
 0x928   :  { %v3824_v4 = vadd.f32 %v3749_v3, %v7391_v48  ;;  %v3826_v28 = vadd.f32 %v3820_v31, %v7396_v46 }
 0x929   :  { %v4683_v23 = vmul.f32 -1.442695, %v3823_v19 }
 0x92a   :  { %v4684_v27 = vmul.f32 -1.442695, %v3824_v4  ;;  %v4685_v32 = vmul.f32 -1.442695, %v3826_v28  ;;  %v4686_v4 = vld [vmem:[%s8276_s0 + $0x38] sm:$0xff] }
 0x92b   :  { %6620 = vpow2.f32 %v4683_v23 }
 0x92c   :  { %6622 = vpow2.f32 %v4684_v27 }
 0x92d   :  { %6624 = vpow2.f32 %v4685_v32 }
 0x92e   :  { %6626 = vtanh.f32 %v3825_v53 }
 0x935   :  { %v6621_v54 = vpop.eup %6620 }
 0x936   :  { %v6623_v7 = vpop.eup %6622  ;;  %v3830_v60 = vadd.f32 1.0, %v6621_v54 }
 0x937   :  { %v3836_v0 = vadd.f32 1.0, %v6623_v7  ;;  %v6625_v52 = vpop.eup %6624 }
 0x938   :  { %6628 = vrcp.f32 %v3830_v60  ;;  %v6627_v47 = vpop.eup %6626  ;;  %v3843_v45 = vadd.f32 1.0, %v6625_v52 }
 0x939   :  { %6630 = vrcp.f32 %v3836_v0 }
 0x93a   :  { %6632 = vrcp.f32 %v3843_v45 }
 0x942   :  { %v6629_v17 = vpop.eup %6628 }
 0x943   :  { %v6631_v44 = vpop.eup %6630  ;;  %v3847_v41 = vmul.f32 %v6629_v17, %v6627_v47  ;;  %v4372_v47 = vld [vmem:[%s8281_s5 + $0x58] sm:$0xff]  ;;  %v4373_v17 = vld [vmem:[%s8281_s5 + $0x60] sm:$0xff] }
 0x944   :  { %v3846_v58 = vmul.f32 %v6631_v44, %v7998_v35  ;;  %v6633_v32 = vpop.eup %6632 }
 0x946   :  { %v8117_v56 = vadd.f32 %v3847_v41, %v3846_v58  ;;  %v3919_v51 = vpop.f32.mrb[28].mxu0  ;;  %v3990_v40 = vpop.f32.mrb[28].mxu1  ;;  %v4374_v41 = vld [vmem:[%s8281_s5 + $0x68] sm:$0xff]  ;;  %v4375_v58 = vld [vmem:[%s8281_s5 + $0x70] sm:$0xff] }
 0x947   :  { %v3921_v12 = vpop.f32.mrb[29].mxu0  ;;  %v3992_v10 = vpop.f32.mrb[29].mxu1  ;;  %v6349_v45 = vpack.c.bf16 %v4374_v41, %v4373_v17 }
 0x948   :  { %v3999_v14 = vcombine.low %v3919_v51, %v3921_v12  ;;  %v4000_v19 = vcombine.low %v3990_v40, %v3992_v10  ;;  %6634 = vtanh.f32 %v8117_v56  ;;  %v4376_v51 = vld [vmem:[%s8281_s5 + $0x78] sm:$0xff]  ;;  %v4455_v12 = vld [vmem:[%s8283_s7] sm:$0xff]  ;;  %v4456_v10 = vld [vmem:[%s8283_s7 + $0x8] sm:$0xff] }
 0x949   :  { %v6352_v40 = vpack.c.bf16 %v4376_v51, %v4375_v58 }
 0x94a   :  { %v4007_v3 = vrot.slane %v3999_v14, %v7306_v43  ;;  %v4014_v31 = vrot.slane %v4000_v19, %v7306_v43  ;;  %v4457_v14 = vld [vmem:[%s8283_s7 + $0x10] sm:$0xff]  ;;  %v6355_v19 = vpack.c.bf16 %v4456_v10, %v4455_v12 }
 0x94c   :  { %v4015_v35 = vcombine.low %v4007_v3, %v4014_v31  ;;  %v4458_v3 = vld [vmem:[%s8283_s7 + $0x18] sm:$0xff] }
 0x94d   :  { %v6358_v31 = vpack.c.bf16 %v4458_v3, %v4457_v14 }
 0x94e   :  { %v4017_v23 = vadd.f32 %v4686_v4, %v4015_v35  ;;  %v4459_v4 = vld [vmem:[%s8283_s7 + $0x20] sm:$0xff]  ;;  %v4460_v35 = vld [vmem:[%s8283_s7 + $0x28] sm:$0xff] }
 0x950   :  { %v4687_v27 = vmul.f32 -1.442695, %v4017_v23  ;;  %v4025_v28 = vrot.slane %v4017_v23, 2  ;;  %v4036_v60 = vrot.slane %v4017_v23, 6  ;;  %v4033_v0 = vrot.slane %v4017_v23, 4 }
 0x951   :  { %v6361_v23 = vpack.c.bf16 %v4460_v35, %v4459_v4 }
 0x952   :  { %v6635_v53 = vpop.eup %6634  ;;  %6636 = vpow2.f32 %v4687_v27  ;;  %v4688_v54 = vmul.f32 -1.442695, %v4025_v28  ;;  %v4689_v43 = vmul.f32 -1.442695, %v4036_v60 }
 0x953   :  { %v3850_v7 = vmul.f32 %v6635_v53, %v6633_v32 }
 0x954   :  { %6638 = vpow2.f32 %v4688_v54 }
 0x955   :  { %4114 = vmatmul.mubr.f32.vlgmr.msra.gmra.mrb[30].mxu0 %v3850_v7  ;;  %4185 = vmatmul.mubr.f32.vlgmr.msra.gmra.mrb[30].mxu1 %v3850_v7  ;;  %6640 = vpow2.f32 %v4689_v43 }
 0x956   :  { %6269 = vmatpush1.bf16.msra.mxu0 %v8578_v9  ;;  %6301 = vmatpush1.bf16.msra.mxu1 %v8579_v6 }
 0x957   :  { %6271 = vmatprep.subr.bf16.mxu0 %v8580_v5  ;;  %6303 = vmatprep.subr.bf16.mxu1 %v8635_v15 }
 0x958   :  { %4255 = vmatprep.mubr.f32.mxu0 %v8524_v33  ;;  %4326 = vmatprep.mubr.f32.mxu1 %v8524_v33 }
 0x95a   :  { %6273 = vmatpush1.bf16.msra.mxu0 %v8636_v50  ;;  %6305 = vmatpush1.bf16.msra.mxu1 %v8583_v62 }
 0x95b   :  { %6275 = vmatprep.subr.bf16.mxu0 %v8637_v39  ;;  %6307 = vmatprep.subr.bf16.mxu1 %v8638_v55 }
 0x95c   :  { %v6637_v9 = vpop.eup %6636 }
 0x95d   :  { %v4021_v6 = vadd.f32 1.0, %v6637_v9 }
 0x95e   :  { %v6639_v52 = vpop.eup %6638  ;;  %6277 = vmatpush1.bf16.msra.mxu0 %v8639_v22  ;;  %6309 = vmatpush1.bf16.msra.mxu1 %v8587_v63 }
 0x95f   :  { %6642 = vrcp.f32 %v4021_v6  ;;  %v4030_v5 = vadd.f32 1.0, %v6639_v52  ;;  %6279 = vmatprep.subr.bf16.mxu0 %v8692_v8  ;;  %6311 = vmatprep.subr.bf16.mxu1 %v8693_v26  ;;  %v6641_v62 = vpop.eup %6640  ;;  %v4365_v8 = vld [vmem:[%s8281_s5 + $0x20] sm:$0xff]  ;;  %v4366_v26 = vld [vmem:[%s8281_s5 + $0x28] sm:$0xff] }
 0x960   :  { %6644 = vtanh.f32 %v4033_v0  ;;  %v4041_v39 = vadd.f32 1.0, %v6641_v62 }
 0x961   :  { %6646 = vrcp.f32 %v4030_v5 }
 0x962   :  { %6281 = vmatpush1.bf16.msra.mxu0 %v8694_v13  ;;  %6313 = vmatpush1.bf16.msra.mxu1 %v8695_v24  ;;  %6648 = vrcp.f32 %v4041_v39  ;;  %v6337_v13 = vpack.c.bf16 %v4366_v26, %v4365_v8  ;;  %v4367_v24 = vld [vmem:[%s8281_s5 + $0x30] sm:$0xff] }
 0x963   :  { %6283 = vmatprep.subr.bf16.mxu0 %v8696_v57  ;;  %6315 = vmatprep.subr.bf16.mxu1 %v8697_v21  ;;  %v4368_v57 = vld [vmem:[%s8281_s5 + $0x38] sm:$0xff] }
 0x964   :  { %v6340_v21 = vpack.c.bf16 %v4368_v57, %v4367_v24  ;;  %v4548_v24 = vld [vmem:[%s8285_s9 + $0x18] sm:$0xff] }
 0x966   :  { %6285 = vmatpush1.bf16.msra.mxu0 %v8698_v37  ;;  %6317 = vmatpush1.bf16.msra.mxu1 %v8699_v38  ;;  %v4369_v37 = vld [vmem:[%s8281_s5 + $0x40] sm:$0xff]  ;;  %v4370_v38 = vld [vmem:[%s8281_s5 + $0x48] sm:$0xff] }
 0x967   :  { %6287 = vmatprep.subr.bf16.mxu0 %v8648_v11  ;;  %6319 = vmatprep.subr.bf16.mxu1 %v8700_v20  ;;  %v6343_v20 = vpack.c.bf16 %v4370_v38, %v4369_v37 }
 0x969   :  { %v6643_v63 = vpop.eup %6642 }
 0x96a   :  { %v6645_v15 = vpop.eup %6644  ;;  %6289 = vmatpush1.bf16.msra.mxu0 %v8650_v61  ;;  %6321 = vmatpush1.bf16.msra.mxu1 %v7273_v29 }
 0x96b   :  { %v6647_v50 = vpop.eup %6646  ;;  %6291 = vmatprep.subr.bf16.mxu0 %v8651_v42  ;;  %6323 = vmatprep.subr.bf16.mxu1 %v8652_v34  ;;  %v4045_v22 = vmul.f32 %v6645_v15, %v6643_v63 }
 0x96c   :  { %v4044_v55 = vmul.f32 %v6647_v50, %v8035_v2  ;;  %v6649_v29 = vpop.eup %6648  ;;  %v4371_v2 = vld [vmem:[%s8281_s5 + $0x50] sm:$0xff] }
 0x96d   :  { %v6346_v44 = vpack.c.bf16 %v4372_v47, %v4371_v2 }
 0x96e   :  { %6293 = vmatpush1.bf16.msra.mxu0 %v8599_v1  ;;  %6325 = vmatpush1.bf16.msra.mxu1 %v8600_v59  ;;  %v4046_v11 = vadd.f32 %v4045_v22, %v4044_v55  ;;  %v4361_v1 = vld [vmem:[%s8281_s5] sm:$0xff]  ;;  %v6722_v59 = vmov 0.0|0.0  }
 0x96f   :  { %6295 = vmatprep.subr.bf16.mxu0 %v8601_v25  ;;  %6327 = vmatprep.subr.bf16.mxu1 %v8602_v30  ;;  %v4362_v25 = vld [vmem:[%s8281_s5 + $0x8] sm:$0xff] }
 0x970   :  { %6650 = vtanh.f32 %v4046_v11  ;;  %v6331_v30 = vpack.c.bf16 %v4362_v25, %v4361_v1  ;;  %v4545_v25 = vld [vmem:[%s8285_s9] sm:$0xff] }
 0x972   :  { %6297 = vmatpush1.bf16.msra.mxu0 %v8603_v49  ;;  %6329 = vmatpush1.bf16.msra.mxu1 %v8604_v16  ;;  %v4363_v16 = vld [vmem:[%s8281_s5 + $0x10] sm:$0xff]  ;;  %v4364_v49 = vld [vmem:[%s8281_s5 + $0x18] sm:$0xff] }
 0x973   :  { %6330 = vmatprep.subr.bf16.mxu0 %v6722_v59  ;;  %6354 = vmatprep.subr.bf16.mxu1 %v6722_v59  ;;  %v6334_v61 = vpack.c.bf16 %v4364_v49, %v4363_v16 }
 0x97a   :  { %v6651_v42 = vpop.eup %6650 }
 0x97b   :  { %v4048_v34 = vmul.f32 %v6651_v42, %v6649_v29  ;;  %v4461_v42 = vld [vmem:[%s8283_s7 + $0x30] sm:$0xff] }
 0x97d   :  { %4256 = vmatmul.mubr.f32.vlgmr.msra.gmra.mrb[30].mxu0 %v4048_v34  ;;  %4327 = vmatmul.mubr.f32.vlgmr.msra.gmra.mrb[30].mxu1 %v4048_v34  ;;  %v4462_v34 = vld [vmem:[%s8283_s7 + $0x38] sm:$0xff] }
 0x97e   :  { %6332 = vmatpush3.bf16.msra.mxu0 %v6331_v30  ;;  %4761 = vmatprep.mubr.msk.f32.mxu0 %vm6723_vm0, %v8524_v33  ;;  %v6364_v1 = vpack.c.bf16 %v4462_v34, %v4461_v42  ;;  %v4546_v30 = vld [vmem:[%s8285_s9 + $0x8] sm:$0xff] }
 0x97f   :  { %6333 = vmatprep.subr.bf16.mxu0 %v6722_v59  ;;  %4780 = vmatprep.mubr.msk.f32.mxu1 %vm6723_vm0, %v8524_v33  ;;  %v6367_v8 = vpack.c.bf16 %v4546_v30, %v4545_v25 }
 0x980   :  { %6356 = vmatpush3.bf16.msra.mxu1 %v6355_v19 }
 0x981   :  { %6357 = vmatprep.subr.bf16.mxu1 %v6722_v59 }
 0x982   :  { %6335 = vmatpush3.bf16.msra.mxu0 %v6334_v61 }
 0x983   :  { %6336 = vmatprep.subr.bf16.mxu0 %v6722_v59 }
 0x984   :  { %6359 = vmatpush3.bf16.msra.mxu1 %v6358_v31 }
 0x985   :  { %6360 = vmatprep.subr.bf16.mxu1 %v6722_v59 }
 0x986   :  { %6338 = vmatpush3.bf16.msra.mxu0 %v6337_v13  ;;  %v4547_v13 = vld [vmem:[%s8285_s9 + $0x10] sm:$0xff] }
 0x987   :  { %6339 = vmatprep.subr.bf16.mxu0 %v6722_v59  ;;  %v6370_v57 = vpack.c.bf16 %v4548_v24, %v4547_v13 }
 0x988   :  { %6362 = vmatpush3.bf16.msra.mxu1 %v6361_v23 }
 0x989   :  { %6363 = vmatprep.subr.bf16.mxu1 %v6722_v59 }
 0x98a   :  { %6341 = vmatpush3.bf16.msra.mxu0 %v6340_v21  ;;  %v4694_v21 = vld [vmem:[%s8284_s8] ss:$0 sm:$0xff] }
 0x98b   :  { %6342 = vmatprep.subr.bf16.mxu0 %v6722_v59 }
 0x98c   :  { %6365 = vmatpush3.bf16.msra.mxu1 %v6364_v1 }
 0x98d   :  { %6366 = vmatprep.subr.bf16.mxu1 %v6722_v59 }
 0x98e   :  { %6344 = vmatpush3.bf16.msra.mxu0 %v6343_v20 }
 0x98f   :  { %6345 = vmatprep.subr.bf16.mxu0 %v6722_v59 }
 0x992   :  { %6347 = vmatpush3.bf16.msra.mxu0 %v6346_v44 }
 0x993   :  { %6348 = vmatprep.subr.bf16.mxu0 %v6722_v59 }
 0x996   :  { %6350 = vmatpush3.bf16.msra.mxu0 %v6349_v45 }
 0x997   :  { %6351 = vmatprep.subr.bf16.mxu0 %v6722_v59 }
 0x99a   :  { %6353 = vmatpush3.bf16.msra.mxu0 %v6352_v40 }
 0xa50   :  { %v4257_v27 = vpop.f32.mrb[30].mxu0  ;;  %v4328_v28 = vpop.f32.mrb[30].mxu1 }
 0xa51   :  { %v4333_v32 = vadd.f32 %v4257_v27, %v8918_v18  ;;  %v4259_v53 = vpop.f32.mrb[31].mxu0  ;;  %v4330_v54 = vpop.f32.mrb[31].mxu1  ;;  %v4335_v6 = vadd.f32 %v4328_v28, %v8919_v36 }
 0xa52   :  { %v4334_v7 = vadd.f32 %v4259_v53, %v7391_v48  ;;  %v4336_v9 = vadd.f32 %v4330_v54, %v7396_v46 }
 0xa53   :  { %v4690_v60 = vmul.f32 -1.442695, %v4333_v32 }
 0xa54   :  { %v4691_v43 = vmul.f32 -1.442695, %v4334_v7  ;;  %v4692_v0 = vmul.f32 -1.442695, %v4336_v9 }
 0xa55   :  { %6652 = vpow2.f32 %v4690_v60 }
 0xa56   :  { %6654 = vpow2.f32 %v4691_v43 }
 0xa57   :  { %6656 = vpow2.f32 %v4692_v0 }
 0xa58   :  { %6658 = vtanh.f32 %v4335_v6 }
 0xa5f   :  { %v6653_v52 = vpop.eup %6652 }
 0xa60   :  { %v6655_v5 = vpop.eup %6654  ;;  %v4340_v62 = vadd.f32 1.0, %v6653_v52 }
 0xa61   :  { %v4346_v63 = vadd.f32 1.0, %v6655_v5  ;;  %v6657_v18 = vpop.eup %6656 }
 0xa62   :  { %6660 = vrcp.f32 %v4340_v62  ;;  %v6659_v15 = vpop.eup %6658  ;;  %v4353_v55 = vadd.f32 1.0, %v6657_v18 }
 0xa63   :  { %6662 = vrcp.f32 %v4346_v63 }
 0xa64   :  { %6664 = vrcp.f32 %v4353_v55 }
 0xa6c   :  { %v6661_v48 = vpop.eup %6660 }
 0xa6d   :  { %v6663_v50 = vpop.eup %6662  ;;  %v4357_v39 = vmul.f32 %v6661_v48, %v6659_v15 }
 0xa6e   :  { %v4356_v22 = vmul.f32 %v6663_v50, %v8117_v56  ;;  %v6665_v36 = vpop.eup %6664  ;;  %v4693_v56 = vld [vmem:[%s8282_s6] ss:$0 sm:$0xff] }
 0xa70   :  { %v4358_v46 = vadd.f32 %v4357_v39, %v4356_v22 }
 0xa72   :  { %6666 = vtanh.f32 %v4358_v46 }
 0xa7c   :  { %v6667_v11 = vpop.eup %6666 }
 0xa7d   :  { %v4360_v29 = vmul.f32 %v6667_v11, %v6665_v36 }
 0xa7f   :  { %4762 = vmatmul.mubr.f32.vlgmr.msra.gmra.mrb[32].mxu0 %v4360_v29 }
 0xb52   :  { %v4450_v16 = vpop.f32.mrb[32].mxu0 }
 0xb53   :  { %v4451_v49 = vadd.f32 %v4693_v56, %v4450_v16  ;;  %v4763_v61 = vpop.f32.mrb[33].mxu0 }
 0xb55   :  { %v4454_v26 = vmax.f32 %v4451_v49, 0.0 }
 0xb57   :  { %4781 = vmatmul.mubr.msk.f32.vlgmr.msra.gmra.mrb[32].mxu1 %vm4470_vm1, %v4454_v26 }
 0xb58   :  { %6368 = vmatpush3.bf16.msra.mxu1 %v6367_v8  ;;  %4791 = vmatprep.mubr.msk.f32.mxu1 %vm6723_vm0, %v8524_v33 }
 0xb59   :  { %6369 = vmatprep.subr.bf16.mxu1 %v6722_v59  ;;  %v4696_v59 = vld [vmem:[#allocation2] ss:$0 sm:$0xff] }
 0xb5c   :  { %6371 = vmatpush3.bf16.msra.mxu1 %v6370_v57 }
 0xc2a   :  { %v4540_v37 = vpop.f32.mrb[32].mxu1 }
 0xc2b   :  { %v4541_v38 = vadd.f32 %v4694_v21, %v4540_v37  ;;  %v4782_v20 = vpop.f32.mrb[33].mxu1 }
 0xc2d   :  { %v4544_v33 = vmax.f32 %v4541_v38, 0.0 }
 0xc2f   :  { %4792 = vmatmul.mubr.msk.f32.vlgmr.msra.gmra.mrb[34].mxu1 %vm4556_vm2, %v4544_v33 }
 0xd02   :  { %v4626_v2 = vpop.f32.mrb[34].mxu1 }
 0xd03   :  { %v4627_v47 = vadd.f32 %v4696_v59, %v4626_v2  ;;  %v4793_v17 = vpop.f32.mrb[35].mxu1 }
 0xd05   :  { %4631 = vst.msk [vmem:[%s8287_s11] sm:$0x3] %vm4630_vm3, %v4627_v47 }
 0xd06   :  { %4636 = vsyncpa [#allocation4], 1 }
 0xd07   :  { %4637 = vsyncpa [#allocation6], 1 }

</bundles_post_ra>
